<compile_context>
chip_gen: v5e
topology: v5e:2x2
jax: 0.10.0
libtpu: 0.0.40
codegen_flags: <defaults>
</compile_context>

<pallas_src>
import functools

import jax
import jax.numpy as jnp
import numpy as np
from jax.experimental import pallas as pl
from jax.experimental.pallas import tpu as pltpu


# ----------------------------------------------------------------------------
# Fused kernel: local MHA + attention centrality + top-K + non-local MHA
# ----------------------------------------------------------------------------
def _fused_kernel(x_ref, absx_ref, idx_ref, wq_ref, wkv_ref, wnl_ref, out_ref,
                  *, groups, l_ch, nl_ch, nbrs, npts):
    cg = l_ch // groups
    ncg = nl_ch // groups
    f32 = jnp.float32
    nt = (((1,), (1,)), ((), ()))   # contract last dims   (A @ B^T)
    tn = (((0,), (0,)), ((), ()))   # contract first dims  (A^T @ B)

    absx = absx_ref[0]                                     # (half, NP)
    x = x_ref[0]                                           # (C, K*NP), k-major columns
    idx = idx_ref[0]                                       # (K, NP) int32, lane-dense

    # ---- local 1x1 convs: q + fused [value ; key] -> two MXU matmuls ----
    q = jnp.dot(wq_ref[...], absx, preferred_element_type=f32)         # (L, NP)
    kv = jnp.dot(wkv_ref[...], x, preferred_element_type=f32)          # (2L, K*NP)
    vv = kv[:l_ch, :]                                                   # (L, K*NP)
    kk = kv[l_ch:, :]                                                   # (L, K*NP) == wk @ (x_lo+x_hi)

    # compile-time group selector (G, L): gsel[g, c] = 1 iff channel c belongs to group g
    row = jax.lax.broadcasted_iota(jnp.int32, (groups, l_ch), 0)
    col = jax.lax.broadcasted_iota(jnp.int32, (groups, l_ch), 1)
    gsel = ((col >= row * cg) & (col < (row + 1) * cg)).astype(f32)     # (G, L)

    # ---- per-neighbour attention logits: per-group channel reduce on the MXU ----
    lg = []
    for k in range(nbrs):
        prod_k = q * kk[:, k * npts:(k + 1) * npts]                     # (L, NP)
        lg.append(jnp.dot(gsel, prod_k, preferred_element_type=f32))    # (G, NP)

    # softmax over the K neighbours, per-k (no lane-replication concats)
    mx = lg[0]
    for k in range(1, nbrs):
        mx = jnp.maximum(mx, lg[k])
    e = [jnp.exp(lg[k] - mx) for k in range(nbrs)]
    se = e[0]
    for k in range(1, nbrs):
        se = se + e[k]
    # exact reciprocal (NOT approx): this attention feeds the centrality top-K node
    # selection and must stay numerically aligned with the f32 reference.
    inv_se = 1.0 / se                                                   # (G, NP)
    att = [e[k] * inv_se for k in range(nbrs)]                          # K x (G, NP)

    # ---- attention centrality (scatter-add) + local feature, accumulated per k ----
    sub_iota = jax.lax.broadcasted_iota(jnp.int32, (npts, npts), 0)     # (NP, NP): [m, n] = m
    cent = None
    lf = [None] * groups
    for k in range(nbrs):
        # transposed one-hot: ohT[m, n] = [idx[k, n] == m]  (64 KiB live, per-k form)
        ohT = (idx[k:k + 1, :] == sub_iota).astype(f32)                 # (NP, NP)
        ck = jax.lax.dot_general(att[k], ohT, nt,
                                 preferred_element_type=f32)            # (G, NP)
        cent = ck if cent is None else cent + ck
        vv_k = vv[:, k * npts:(k + 1) * npts]                           # (L, NP)
        for g in range(groups):
            term = vv_k[g * cg:(g + 1) * cg, :] * att[k][g:g + 1, :]    # (CG, NP)
            lf[g] = term if lf[g] is None else lf[g] + term
    for g in range(groups):
        out_ref[0, g * cg:(g + 1) * cg, :] = lf[g]                      # local features

    # ---- in-kernel top-K over centrality: K masked argmax passes on one (G, NP) vreg ----
    lane_f = jax.lax.broadcasted_iota(jnp.int32, (groups, npts), 1).astype(f32)
    cur = cent
    oh_rows = [[] for _ in range(groups)]      # per-group (1, NP) one-hot rows, rank order
    for _ in range(nbrs):
        m = jnp.max(cur, axis=1, keepdims=True)                         # (G, 1)
        sel = jnp.min(jnp.where(cur == m, lane_f, float(npts)),
                      axis=1, keepdims=True)                            # (G, 1) lowest tied index
        hit = lane_f == sel                                             # (G, NP) one-hot mask
        hit_f = hit.astype(f32)
        for g in range(groups):
            oh_rows[g].append(hit_f[g:g + 1, :])
        cur = jnp.where(hit, -jnp.inf, cur)

    # ---- non-local MHA over the selected nodes ----
    proj = jnp.dot(wnl_ref[...], absx, preferred_element_type=f32)      # (4*NL, NP) fused q/k/v1/v2
    nlq = proj[:nl_ch, :]
    nlv1 = proj[2 * nl_ch:3 * nl_ch, :]
    nlv2 = proj[3 * nl_ch:, :]

    for g in range(groups):
        oh_g = jnp.concatenate(oh_rows[g], axis=0)                      # (K, NP)
        # top-K centrality values recovered exactly via the one-hot (no scalar extraction)
        tv_g = jnp.tanh(jnp.sum(oh_g * cent[g:g + 1, :],
                                axis=1, keepdims=True))                 # (K, 1)

        # ONE gather matmul: every projection row at this group's selected nodes
        sel_all = jax.lax.dot_general(oh_g, proj, nt,
                                      preferred_element_type=f32)       # (K, 4*NL)
        k_sel = sel_all[:, nl_ch + g * ncg: nl_ch + (g + 1) * ncg]      # (K, CG)
        v2_sel = sel_all[:, 3 * nl_ch + g * ncg: 3 * nl_ch + (g + 1) * ncg]  # (K, CG)

        q_g = nlq[g * ncg:(g + 1) * ncg, :]                             # (CG, NP)
        v1_g = nlv1[g * ncg:(g + 1) * ncg, :]
        v2_g = nlv2[g * ncg:(g + 1) * ncg, :]

        # attention in (K, NP) layout: softmax over the K sublanes, exact divide
        logits = jnp.dot(k_sel, q_g, preferred_element_type=f32)        # (K, NP)
        mm = jnp.max(logits, axis=0, keepdims=True)
        ee = jnp.exp(logits - mm)
        att_nl = ee / jnp.sum(ee, axis=0, keepdims=True)                # (K, NP)
        # TODO(synk): nn.Dropout2d(p=0.2) on the attention map is identity in eval
        # mode; training-mode channel dropout is not implemented.

        # out = (v1 - v2) * sum_j att*tanh(val) + v2_sel^T @ (att*tanh(val))
        w = att_nl * tv_g                                               # (K, NP)
        s = jnp.sum(w, axis=0, keepdims=True)                           # (1, NP)
        out_g = (v1_g - v2_g) * s + jax.lax.dot_general(
            v2_sel, w, tn, preferred_element_type=f32)                  # (CG, NP)
        out_ref[0, l_ch + g * ncg: l_ch + (g + 1) * ncg, :] = out_g     # non-local features


# ----------------------------------------------------------------------------
# Wrapper (layout plumbing + weight fusion only; all compute is in the kernel)
# ----------------------------------------------------------------------------
def attention_conv_forward(params, x, abs_x, idx, points=None, *, groups):
    B, C, NP, K = x.shape
    half = C // 2
    L = params["wq"].shape[0]        # l_channels
    NL = params["wnlq"].shape[0]     # nl_channels
    KNP = K * NP
    f32 = jnp.float32

    # NOTE: NP is assumed to be a multiple of 128 (lane tile) and K <= 8 for the
    # single-vreg layouts used in the kernel; other shapes still lower but lose the
    # aligned-slice fast paths.
    # k-major flatten of the neighbour axis into lanes: (B,C,NP,K) -> (B,C,K*NP)
    x_flat = jnp.transpose(x, (0, 1, 3, 2)).reshape(B, C, KNP).astype(f32)
    absx = abs_x[:, :, :, 0].astype(f32)                                # (B, half, NP)
    # lane-dense neighbour indices: (B, K, NP) int32 -- one (8,128) vreg per batch
    idx_knp = jnp.transpose(idx[:, 0, :, :], (0, 2, 1)).astype(jnp.int32)

    # fused local weights: [wv ; wk|wk] so  [vv ; kk] = W @ x  in one matmul
    # ([wk|wk] @ x == wk @ (x[:half] + x[half:]) == wk @ key_flat)
    wkv = jnp.concatenate(
        [params["wv"],
         jnp.concatenate([params["wk"], params["wk"]], axis=1)], axis=0)     # (2L, C)
    # fused non-local weights: q / k / v1 / v2 stacked
    wnl = jnp.concatenate([params["wnlq"], params["wnlk"],
                           params["wnlv1"], params["wnlv2"]], axis=0)        # (4NL, half)

    kernel = functools.partial(_fused_kernel, groups=groups, l_ch=L, nl_ch=NL,
                               nbrs=K, npts=NP)
    out = pl.pallas_call(
        kernel,
        out_shape=jax.ShapeDtypeStruct((B, L + NL, NP), f32),
        grid_spec=pltpu.PrefetchScalarGridSpec(
            num_scalar_prefetch=0, grid=(B,),
            in_specs=[
                pl.BlockSpec((1, C, KNP), lambda b: (b, 0, 0)),
                pl.BlockSpec((1, half, NP), lambda b: (b, 0, 0)),
                pl.BlockSpec((1, K, NP), lambda b: (b, 0, 0)),
                pl.BlockSpec((L, half), lambda b: (0, 0)),
                pl.BlockSpec((2 * L, C), lambda b: (0, 0)),
                pl.BlockSpec((4 * NL, half), lambda b: (0, 0)),
            ],
            out_specs=pl.BlockSpec((1, L + NL, NP), lambda b: (b, 0, 0))),
        # grid=(B,) "parallel": one batch per TensorCore on v7x; on single-TC
        # v5e/v6e this is a cheap 2-step serial loop (could be merged to one block).
        compiler_params=pltpu.CompilerParams(
            dimension_semantics=("parallel",)),
    )(x_flat, absx, idx_knp, params["wq"], wkv, wnl)

    return out[..., None]                                               # (B, L+NL, NP, 1)


# ----------------------------------------------------------------------------
# Pure-JAX reference (mirrors the PyTorch forward) for a silent sanity check
# ----------------------------------------------------------------------------
def reference_forward(params, x, abs_x, idx, groups):
    B, C, NP, K = x.shape
    half = C // 2
    L = params["wq"].shape[0]
    NL = params["wnlq"].shape[0]
    cg_l, cg_nl = L // groups, NL // groups
    hp = jax.lax.Precision.HIGHEST
    conv = lambda w, a: jnp.einsum("oi,binj->bonj", w, a, precision=hp)

    lq = conv(params["wq"], abs_x).reshape(B, groups, cg_l, NP, 1)
    lk = conv(params["wk"], x[:, half:] + x[:, :half]).reshape(B, groups, cg_l, NP, K)
    lv = conv(params["wv"], x).reshape(B, groups, cg_l, NP, K)
    att = jax.nn.softmax(jnp.sum(lq * lk, axis=2), axis=-1)             # (B,G,NP,K)
    local_feat = jnp.einsum("bgnk,bgcnk->bgcn", att, lv, precision=hp).reshape(B, L, NP)

    onehot = jax.nn.one_hot(idx[:, 0], NP, dtype=jnp.float32)           # (B,NP,K,NP)
    cent = jnp.einsum("bgnk,bnkm->bgm", att, onehot, precision=hp)[:, :, None, :]
    top_val, top_idx = jax.lax.top_k(cent, K)                           # (B,G,1,K)

    absx2 = abs_x[:, :, :, 0]
    conv2 = lambda w: jnp.einsum("oi,bin->bon", w, absx2,
                                 precision=hp).reshape(B, groups, cg_nl, NP)
    nq, nk = conv2(params["wnlq"]), conv2(params["wnlk"])
    nv1, nv2 = conv2(params["wnlv1"]), conv2(params["wnlv2"])
    gidx = top_idx[:, :, 0, :]
    take = lambda a: jnp.take_along_axis(a, gidx[:, :, None, :], axis=3)
    nk_sel, nv2_sel = take(nk), take(nv2)
    logits = jnp.einsum("bgcn,bgck->bgnk", nq, nk_sel, precision=hp)
    att_nl = jax.nn.softmax(logits, axis=-1)
    val = nv1[..., None] - nv2[..., None] + nv2_sel[:, :, :, None, :]
    val = val * jnp.tanh(top_val)[:, :, :, None, :]
    nl_feat = jnp.einsum("bgnk,bgcnk->bgcn", att_nl, val, precision=hp).reshape(B, NL, NP)
    return jnp.concatenate([local_feat, nl_feat], axis=1)[..., None]


if __name__ == "__main__":
    # module config: in_channels=16, out_channels=64, groups=2
    #   -> nl_channels = 16, l_channels = 48
    B, C, NP, K = 2, 16, 128, 8
    out_channels, groups = 64, 2
    NL = int(0.25 * out_channels)
    L = out_channels - NL
    half = C // 2

    key = jax.random.PRNGKey(0)
    ks = jax.random.split(key, 12)

    def init_w(k, cout, cin):
        bound = 1.0 / np.sqrt(cin)
        return jax.random.uniform(k, (cout, cin), jnp.float32, -bound, bound)

    params = {
        "wq":    init_w(ks[0], L, half),
        "wk":    init_w(ks[1], L, half),
        "wv":    init_w(ks[2], L, C),
        "wnlq":  init_w(ks[3], NL, half),
        "wnlk":  init_w(ks[4], NL, half),
        "wnlv1": init_w(ks[5], NL, half),
        "wnlv2": init_w(ks[6], NL, half),
    }

    x = jax.random.normal(ks[7], (B, C, NP, K), jnp.float32)
    abs_x = jax.random.normal(ks[8], (B, half, NP, 1), jnp.float32)
    idx = jax.random.randint(ks[9], (B, 1, NP, K), 0, NP, jnp.int32)
    points = jax.random.normal(ks[10], (B, 3, NP), jnp.float32)  # unused (ape=False)

    fwd = jax.jit(functools.partial(attention_conv_forward, groups=groups))
    out = fwd(params, x, abs_x, idx, points)
    out = jax.block_until_ready(out)

    ref = reference_forward(params, x, abs_x, idx, groups)
    assert out.shape == (B, out_channels, NP, 1)
    assert np.allclose(np.asarray(out), np.asarray(ref), rtol=5e-2, atol=5e-3)
    print("KERNEL_OK")
</pallas_src>

<mosaic_0001>
module attributes {stable_mosaic.version = 11 : i64} {
  func.func @_fused_kernel(%arg0: i32, %arg1: memref<1x16x1024xf32, #tpu.memory_space<vmem>>, %arg2: memref<1x8x128xf32, #tpu.memory_space<vmem>>, %arg3: memref<1x8x128xi32, #tpu.memory_space<vmem>>, %arg4: memref<48x8xf32, #tpu.memory_space<vmem>>, %arg5: memref<96x16xf32, #tpu.memory_space<vmem>>, %arg6: memref<64x8xf32, #tpu.memory_space<vmem>>, %arg7: memref<1x64x128xf32, #tpu.memory_space<vmem>>) attributes {dimension_semantics = [#tpu.dimension_semantics<parallel>], iteration_bounds = array<i64: 2>, scalar_prefetch = 0 : i64, scratch_operands = 0 : i64, tpu.core_type = #tpu.core_type<tc>, window_params = [{transform_indices = @transform_0, window_bounds = array<i64: 1, 16, 1024>}, {transform_indices = @transform_1, window_bounds = array<i64: 1, 8, 128>}, {transform_indices = @transform_2, window_bounds = array<i64: 1, 8, 128>}, {pipeline_mode = #tpu.pipeline_mode<synchronous>, transform_indices = @transform_3, window_bounds = array<i64: 48, 8>}, {pipeline_mode = #tpu.pipeline_mode<synchronous>, transform_indices = @transform_4, window_bounds = array<i64: 96, 16>}, {pipeline_mode = #tpu.pipeline_mode<synchronous>, transform_indices = @transform_5, window_bounds = array<i64: 64, 8>}, {transform_indices = @transform_6, window_bounds = array<i64: 1, 64, 128>}]} {
    %c0 = arith.constant 0 : index
    %c0_0 = arith.constant 0 : index
    %c0_1 = arith.constant 0 : index
    %0 = vector.load %arg2[%c0, %c0_0, %c0_1] : memref<1x8x128xf32, #tpu.memory_space<vmem>>, vector<1x8x128xf32>
    %1 = vector.shape_cast %0 : vector<1x8x128xf32> to vector<8x128xf32>
    %c0_2 = arith.constant 0 : index
    %c0_3 = arith.constant 0 : index
    %c0_4 = arith.constant 0 : index
    %2 = vector.load %arg1[%c0_2, %c0_3, %c0_4] : memref<1x16x1024xf32, #tpu.memory_space<vmem>>, vector<1x16x1024xf32>
    %3 = vector.shape_cast %2 : vector<1x16x1024xf32> to vector<16x1024xf32>
    %c0_5 = arith.constant 0 : index
    %c0_6 = arith.constant 0 : index
    %c0_7 = arith.constant 0 : index
    %4 = vector.load %arg3[%c0_5, %c0_6, %c0_7] : memref<1x8x128xi32, #tpu.memory_space<vmem>>, vector<1x8x128xi32>
    %5 = vector.shape_cast %4 : vector<1x8x128xi32> to vector<8x128xi32>
    %c0_8 = arith.constant 0 : index
    %c0_9 = arith.constant 0 : index
    %6 = vector.load %arg4[%c0_8, %c0_9] : memref<48x8xf32, #tpu.memory_space<vmem>>, vector<48x8xf32>
    %cst = arith.constant dense<0.000000e+00> : vector<48x128xf32>
    %7 = tpu.matmul %6, %1, %cst {dimension_numbers = #tpu.dot_dimension_numbers<[1], [0], [0], [1], [0, 0, 1, 1], [], []>} : vector<48x8xf32>, vector<8x128xf32>, vector<48x128xf32> -> vector<48x128xf32>
    %c0_10 = arith.constant 0 : index
    %c0_11 = arith.constant 0 : index
    %8 = vector.load %arg5[%c0_10, %c0_11] : memref<96x16xf32, #tpu.memory_space<vmem>>, vector<96x16xf32>
    %cst_12 = arith.constant dense<0.000000e+00> : vector<96x1024xf32>
    %9 = tpu.matmul %8, %3, %cst_12 {dimension_numbers = #tpu.dot_dimension_numbers<[1], [0], [0], [1], [0, 0, 1, 1], [], []>} : vector<96x16xf32>, vector<16x1024xf32>, vector<96x1024xf32> -> vector<96x1024xf32>
    %10 = vector.extract_strided_slice %9 {offsets = [0, 0], sizes = [48, 1024], strides = [1, 1]} : vector<96x1024xf32> to vector<48x1024xf32>
    %11 = vector.extract_strided_slice %9 {offsets = [48, 0], sizes = [48, 1024], strides = [1, 1]} : vector<96x1024xf32> to vector<48x1024xf32>
    %12 = tpu.iota {dimensions = array<i32: 0>} : vector<2x48xi32>
    %13 = tpu.iota {dimensions = array<i32: 1>} : vector<2x48xi32>
    %c24_i32 = arith.constant 24 : i32
    %14 = vector.broadcast %c24_i32 : i32 to vector<2x48xi32>
    %15 = arith.muli %12, %14 : vector<2x48xi32>
    %16 = arith.cmpi sge, %13, %15 : vector<2x48xi32>
    %c1_i32 = arith.constant 1 : i32
    %17 = vector.broadcast %c1_i32 : i32 to vector<2x48xi32>
    %18 = arith.addi %12, %17 : vector<2x48xi32>
    %c24_i32_13 = arith.constant 24 : i32
    %19 = vector.broadcast %c24_i32_13 : i32 to vector<2x48xi32>
    %20 = arith.muli %18, %19 : vector<2x48xi32>
    %21 = arith.cmpi slt, %13, %20 : vector<2x48xi32>
    %22 = arith.andi %16, %21 : vector<2x48xi1>
    %23 = arith.extui %22 : vector<2x48xi1> to vector<2x48xi32>
    %24 = arith.sitofp %23 : vector<2x48xi32> to vector<2x48xf32>
    %25 = vector.extract_strided_slice %11 {offsets = [0, 0], sizes = [48, 128], strides = [1, 1]} : vector<48x1024xf32> to vector<48x128xf32>
    %26 = arith.mulf %7, %25 : vector<48x128xf32>
    %cst_14 = arith.constant dense<0.000000e+00> : vector<2x128xf32>
    %27 = tpu.matmul %24, %26, %cst_14 {dimension_numbers = #tpu.dot_dimension_numbers<[1], [0], [0], [1], [0, 0, 1, 1], [], []>} : vector<2x48xf32>, vector<48x128xf32>, vector<2x128xf32> -> vector<2x128xf32>
    %28 = vector.extract_strided_slice %11 {offsets = [0, 128], sizes = [48, 128], strides = [1, 1]} : vector<48x1024xf32> to vector<48x128xf32>
    %29 = arith.mulf %7, %28 : vector<48x128xf32>
    %cst_15 = arith.constant dense<0.000000e+00> : vector<2x128xf32>
    %30 = tpu.matmul %24, %29, %cst_15 {dimension_numbers = #tpu.dot_dimension_numbers<[1], [0], [0], [1], [0, 0, 1, 1], [], []>} : vector<2x48xf32>, vector<48x128xf32>, vector<2x128xf32> -> vector<2x128xf32>
    %31 = vector.extract_strided_slice %11 {offsets = [0, 256], sizes = [48, 128], strides = [1, 1]} : vector<48x1024xf32> to vector<48x128xf32>
    %32 = arith.mulf %7, %31 : vector<48x128xf32>
    %cst_16 = arith.constant dense<0.000000e+00> : vector<2x128xf32>
    %33 = tpu.matmul %24, %32, %cst_16 {dimension_numbers = #tpu.dot_dimension_numbers<[1], [0], [0], [1], [0, 0, 1, 1], [], []>} : vector<2x48xf32>, vector<48x128xf32>, vector<2x128xf32> -> vector<2x128xf32>
    %34 = vector.extract_strided_slice %11 {offsets = [0, 384], sizes = [48, 128], strides = [1, 1]} : vector<48x1024xf32> to vector<48x128xf32>
    %35 = arith.mulf %7, %34 : vector<48x128xf32>
    %cst_17 = arith.constant dense<0.000000e+00> : vector<2x128xf32>
    %36 = tpu.matmul %24, %35, %cst_17 {dimension_numbers = #tpu.dot_dimension_numbers<[1], [0], [0], [1], [0, 0, 1, 1], [], []>} : vector<2x48xf32>, vector<48x128xf32>, vector<2x128xf32> -> vector<2x128xf32>
    %37 = vector.extract_strided_slice %11 {offsets = [0, 512], sizes = [48, 128], strides = [1, 1]} : vector<48x1024xf32> to vector<48x128xf32>
    %38 = arith.mulf %7, %37 : vector<48x128xf32>
    %cst_18 = arith.constant dense<0.000000e+00> : vector<2x128xf32>
    %39 = tpu.matmul %24, %38, %cst_18 {dimension_numbers = #tpu.dot_dimension_numbers<[1], [0], [0], [1], [0, 0, 1, 1], [], []>} : vector<2x48xf32>, vector<48x128xf32>, vector<2x128xf32> -> vector<2x128xf32>
    %40 = vector.extract_strided_slice %11 {offsets = [0, 640], sizes = [48, 128], strides = [1, 1]} : vector<48x1024xf32> to vector<48x128xf32>
    %41 = arith.mulf %7, %40 : vector<48x128xf32>
    %cst_19 = arith.constant dense<0.000000e+00> : vector<2x128xf32>
    %42 = tpu.matmul %24, %41, %cst_19 {dimension_numbers = #tpu.dot_dimension_numbers<[1], [0], [0], [1], [0, 0, 1, 1], [], []>} : vector<2x48xf32>, vector<48x128xf32>, vector<2x128xf32> -> vector<2x128xf32>
    %43 = vector.extract_strided_slice %11 {offsets = [0, 768], sizes = [48, 128], strides = [1, 1]} : vector<48x1024xf32> to vector<48x128xf32>
    %44 = arith.mulf %7, %43 : vector<48x128xf32>
    %cst_20 = arith.constant dense<0.000000e+00> : vector<2x128xf32>
    %45 = tpu.matmul %24, %44, %cst_20 {dimension_numbers = #tpu.dot_dimension_numbers<[1], [0], [0], [1], [0, 0, 1, 1], [], []>} : vector<2x48xf32>, vector<48x128xf32>, vector<2x128xf32> -> vector<2x128xf32>
    %46 = vector.extract_strided_slice %11 {offsets = [0, 896], sizes = [48, 128], strides = [1, 1]} : vector<48x1024xf32> to vector<48x128xf32>
    %47 = arith.mulf %7, %46 : vector<48x128xf32>
    %cst_21 = arith.constant dense<0.000000e+00> : vector<2x128xf32>
    %48 = tpu.matmul %24, %47, %cst_21 {dimension_numbers = #tpu.dot_dimension_numbers<[1], [0], [0], [1], [0, 0, 1, 1], [], []>} : vector<2x48xf32>, vector<48x128xf32>, vector<2x128xf32> -> vector<2x128xf32>
    %49 = arith.maximumf %27, %30 : vector<2x128xf32>
    %50 = arith.maximumf %49, %33 : vector<2x128xf32>
    %51 = arith.maximumf %50, %36 : vector<2x128xf32>
    %52 = arith.maximumf %51, %39 : vector<2x128xf32>
    %53 = arith.maximumf %52, %42 : vector<2x128xf32>
    %54 = arith.maximumf %53, %45 : vector<2x128xf32>
    %55 = arith.maximumf %54, %48 : vector<2x128xf32>
    %56 = arith.subf %27, %55 : vector<2x128xf32>
    %57 = math.exp %56 : vector<2x128xf32>
    %58 = arith.subf %30, %55 : vector<2x128xf32>
    %59 = math.exp %58 : vector<2x128xf32>
    %60 = arith.subf %33, %55 : vector<2x128xf32>
    %61 = math.exp %60 : vector<2x128xf32>
    %62 = arith.subf %36, %55 : vector<2x128xf32>
    %63 = math.exp %62 : vector<2x128xf32>
    %64 = arith.subf %39, %55 : vector<2x128xf32>
    %65 = math.exp %64 : vector<2x128xf32>
    %66 = arith.subf %42, %55 : vector<2x128xf32>
    %67 = math.exp %66 : vector<2x128xf32>
    %68 = arith.subf %45, %55 : vector<2x128xf32>
    %69 = math.exp %68 : vector<2x128xf32>
    %70 = arith.subf %48, %55 : vector<2x128xf32>
    %71 = math.exp %70 : vector<2x128xf32>
    %72 = arith.addf %57, %59 : vector<2x128xf32>
    %73 = arith.addf %72, %61 : vector<2x128xf32>
    %74 = arith.addf %73, %63 : vector<2x128xf32>
    %75 = arith.addf %74, %65 : vector<2x128xf32>
    %76 = arith.addf %75, %67 : vector<2x128xf32>
    %77 = arith.addf %76, %69 : vector<2x128xf32>
    %78 = arith.addf %77, %71 : vector<2x128xf32>
    %cst_22 = arith.constant 1.000000e+00 : f32
    %79 = vector.broadcast %cst_22 : f32 to vector<2x128xf32>
    %80 = arith.divf %79, %78 : vector<2x128xf32>
    %81 = arith.mulf %57, %80 : vector<2x128xf32>
    %82 = arith.mulf %59, %80 : vector<2x128xf32>
    %83 = arith.mulf %61, %80 : vector<2x128xf32>
    %84 = arith.mulf %63, %80 : vector<2x128xf32>
    %85 = arith.mulf %65, %80 : vector<2x128xf32>
    %86 = arith.mulf %67, %80 : vector<2x128xf32>
    %87 = arith.mulf %69, %80 : vector<2x128xf32>
    %88 = arith.mulf %71, %80 : vector<2x128xf32>
    %89 = tpu.iota {dimensions = array<i32: 0>} : vector<128x128xi32>
    %90 = vector.extract_strided_slice %5 {offsets = [0, 0], sizes = [1, 128], strides = [1, 1]} : vector<8x128xi32> to vector<1x128xi32>
    %91 = vector.broadcast %90 : vector<1x128xi32> to vector<128x128xi32>
    %92 = arith.cmpi eq, %91, %89 : vector<128x128xi32>
    %93 = arith.extui %92 : vector<128x128xi1> to vector<128x128xi32>
    %94 = arith.sitofp %93 : vector<128x128xi32> to vector<128x128xf32>
    %cst_23 = arith.constant dense<0.000000e+00> : vector<2x128xf32>
    %95 = tpu.matmul %81, %94, %cst_23 {dimension_numbers = #tpu.dot_dimension_numbers<[1], [1], [0], [0], [0, 0, 1, 0], [], []>} : vector<2x128xf32>, vector<128x128xf32>, vector<2x128xf32> -> vector<2x128xf32>
    %96 = vector.extract_strided_slice %10 {offsets = [0, 0], sizes = [48, 128], strides = [1, 1]} : vector<48x1024xf32> to vector<48x128xf32>
    %97 = vector.extract_strided_slice %96 {offsets = [0, 0], sizes = [24, 128], strides = [1, 1]} : vector<48x128xf32> to vector<24x128xf32>
    %98 = vector.extract_strided_slice %81 {offsets = [0, 0], sizes = [1, 128], strides = [1, 1]} : vector<2x128xf32> to vector<1x128xf32>
    %99 = vector.broadcast %98 : vector<1x128xf32> to vector<24x128xf32>
    %100 = arith.mulf %97, %99 : vector<24x128xf32>
    %101 = vector.extract_strided_slice %96 {offsets = [24, 0], sizes = [24, 128], strides = [1, 1]} : vector<48x128xf32> to vector<24x128xf32>
    %102 = vector.extract_strided_slice %81 {offsets = [1, 0], sizes = [1, 128], strides = [1, 1]} : vector<2x128xf32> to vector<1x128xf32>
    %103 = vector.broadcast %102 : vector<1x128xf32> to vector<24x128xf32>
    %104 = arith.mulf %101, %103 : vector<24x128xf32>
    %105 = vector.extract_strided_slice %5 {offsets = [1, 0], sizes = [1, 128], strides = [1, 1]} : vector<8x128xi32> to vector<1x128xi32>
    %106 = vector.broadcast %105 : vector<1x128xi32> to vector<128x128xi32>
    %107 = arith.cmpi eq, %106, %89 : vector<128x128xi32>
    %108 = arith.extui %107 : vector<128x128xi1> to vector<128x128xi32>
    %109 = arith.sitofp %108 : vector<128x128xi32> to vector<128x128xf32>
    %cst_24 = arith.constant dense<0.000000e+00> : vector<2x128xf32>
    %110 = tpu.matmul %82, %109, %cst_24 {dimension_numbers = #tpu.dot_dimension_numbers<[1], [1], [0], [0], [0, 0, 1, 0], [], []>} : vector<2x128xf32>, vector<128x128xf32>, vector<2x128xf32> -> vector<2x128xf32>
    %111 = arith.addf %95, %110 : vector<2x128xf32>
    %112 = vector.extract_strided_slice %10 {offsets = [0, 128], sizes = [48, 128], strides = [1, 1]} : vector<48x1024xf32> to vector<48x128xf32>
    %113 = vector.extract_strided_slice %112 {offsets = [0, 0], sizes = [24, 128], strides = [1, 1]} : vector<48x128xf32> to vector<24x128xf32>
    %114 = vector.extract_strided_slice %82 {offsets = [0, 0], sizes = [1, 128], strides = [1, 1]} : vector<2x128xf32> to vector<1x128xf32>
    %115 = vector.broadcast %114 : vector<1x128xf32> to vector<24x128xf32>
    %116 = arith.mulf %113, %115 : vector<24x128xf32>
    %117 = arith.addf %100, %116 : vector<24x128xf32>
    %118 = vector.extract_strided_slice %112 {offsets = [24, 0], sizes = [24, 128], strides = [1, 1]} : vector<48x128xf32> to vector<24x128xf32>
    %119 = vector.extract_strided_slice %82 {offsets = [1, 0], sizes = [1, 128], strides = [1, 1]} : vector<2x128xf32> to vector<1x128xf32>
    %120 = vector.broadcast %119 : vector<1x128xf32> to vector<24x128xf32>
    %121 = arith.mulf %118, %120 : vector<24x128xf32>
    %122 = arith.addf %104, %121 : vector<24x128xf32>
    %123 = vector.extract_strided_slice %5 {offsets = [2, 0], sizes = [1, 128], strides = [1, 1]} : vector<8x128xi32> to vector<1x128xi32>
    %124 = vector.broadcast %123 : vector<1x128xi32> to vector<128x128xi32>
    %125 = arith.cmpi eq, %124, %89 : vector<128x128xi32>
    %126 = arith.extui %125 : vector<128x128xi1> to vector<128x128xi32>
    %127 = arith.sitofp %126 : vector<128x128xi32> to vector<128x128xf32>
    %cst_25 = arith.constant dense<0.000000e+00> : vector<2x128xf32>
    %128 = tpu.matmul %83, %127, %cst_25 {dimension_numbers = #tpu.dot_dimension_numbers<[1], [1], [0], [0], [0, 0, 1, 0], [], []>} : vector<2x128xf32>, vector<128x128xf32>, vector<2x128xf32> -> vector<2x128xf32>
    %129 = arith.addf %111, %128 : vector<2x128xf32>
    %130 = vector.extract_strided_slice %10 {offsets = [0, 256], sizes = [48, 128], strides = [1, 1]} : vector<48x1024xf32> to vector<48x128xf32>
    %131 = vector.extract_strided_slice %130 {offsets = [0, 0], sizes = [24, 128], strides = [1, 1]} : vector<48x128xf32> to vector<24x128xf32>
    %132 = vector.extract_strided_slice %83 {offsets = [0, 0], sizes = [1, 128], strides = [1, 1]} : vector<2x128xf32> to vector<1x128xf32>
    %133 = vector.broadcast %132 : vector<1x128xf32> to vector<24x128xf32>
    %134 = arith.mulf %131, %133 : vector<24x128xf32>
    %135 = arith.addf %117, %134 : vector<24x128xf32>
    %136 = vector.extract_strided_slice %130 {offsets = [24, 0], sizes = [24, 128], strides = [1, 1]} : vector<48x128xf32> to vector<24x128xf32>
    %137 = vector.extract_strided_slice %83 {offsets = [1, 0], sizes = [1, 128], strides = [1, 1]} : vector<2x128xf32> to vector<1x128xf32>
    %138 = vector.broadcast %137 : vector<1x128xf32> to vector<24x128xf32>
    %139 = arith.mulf %136, %138 : vector<24x128xf32>
    %140 = arith.addf %122, %139 : vector<24x128xf32>
    %141 = vector.extract_strided_slice %5 {offsets = [3, 0], sizes = [1, 128], strides = [1, 1]} : vector<8x128xi32> to vector<1x128xi32>
    %142 = vector.broadcast %141 : vector<1x128xi32> to vector<128x128xi32>
    %143 = arith.cmpi eq, %142, %89 : vector<128x128xi32>
    %144 = arith.extui %143 : vector<128x128xi1> to vector<128x128xi32>
    %145 = arith.sitofp %144 : vector<128x128xi32> to vector<128x128xf32>
    %cst_26 = arith.constant dense<0.000000e+00> : vector<2x128xf32>
    %146 = tpu.matmul %84, %145, %cst_26 {dimension_numbers = #tpu.dot_dimension_numbers<[1], [1], [0], [0], [0, 0, 1, 0], [], []>} : vector<2x128xf32>, vector<128x128xf32>, vector<2x128xf32> -> vector<2x128xf32>
    %147 = arith.addf %129, %146 : vector<2x128xf32>
    %148 = vector.extract_strided_slice %10 {offsets = [0, 384], sizes = [48, 128], strides = [1, 1]} : vector<48x1024xf32> to vector<48x128xf32>
    %149 = vector.extract_strided_slice %148 {offsets = [0, 0], sizes = [24, 128], strides = [1, 1]} : vector<48x128xf32> to vector<24x128xf32>
    %150 = vector.extract_strided_slice %84 {offsets = [0, 0], sizes = [1, 128], strides = [1, 1]} : vector<2x128xf32> to vector<1x128xf32>
    %151 = vector.broadcast %150 : vector<1x128xf32> to vector<24x128xf32>
    %152 = arith.mulf %149, %151 : vector<24x128xf32>
    %153 = arith.addf %135, %152 : vector<24x128xf32>
    %154 = vector.extract_strided_slice %148 {offsets = [24, 0], sizes = [24, 128], strides = [1, 1]} : vector<48x128xf32> to vector<24x128xf32>
    %155 = vector.extract_strided_slice %84 {offsets = [1, 0], sizes = [1, 128], strides = [1, 1]} : vector<2x128xf32> to vector<1x128xf32>
    %156 = vector.broadcast %155 : vector<1x128xf32> to vector<24x128xf32>
    %157 = arith.mulf %154, %156 : vector<24x128xf32>
    %158 = arith.addf %140, %157 : vector<24x128xf32>
    %159 = vector.extract_strided_slice %5 {offsets = [4, 0], sizes = [1, 128], strides = [1, 1]} : vector<8x128xi32> to vector<1x128xi32>
    %160 = vector.broadcast %159 : vector<1x128xi32> to vector<128x128xi32>
    %161 = arith.cmpi eq, %160, %89 : vector<128x128xi32>
    %162 = arith.extui %161 : vector<128x128xi1> to vector<128x128xi32>
    %163 = arith.sitofp %162 : vector<128x128xi32> to vector<128x128xf32>
    %cst_27 = arith.constant dense<0.000000e+00> : vector<2x128xf32>
    %164 = tpu.matmul %85, %163, %cst_27 {dimension_numbers = #tpu.dot_dimension_numbers<[1], [1], [0], [0], [0, 0, 1, 0], [], []>} : vector<2x128xf32>, vector<128x128xf32>, vector<2x128xf32> -> vector<2x128xf32>
    %165 = arith.addf %147, %164 : vector<2x128xf32>
    %166 = vector.extract_strided_slice %10 {offsets = [0, 512], sizes = [48, 128], strides = [1, 1]} : vector<48x1024xf32> to vector<48x128xf32>
    %167 = vector.extract_strided_slice %166 {offsets = [0, 0], sizes = [24, 128], strides = [1, 1]} : vector<48x128xf32> to vector<24x128xf32>
    %168 = vector.extract_strided_slice %85 {offsets = [0, 0], sizes = [1, 128], strides = [1, 1]} : vector<2x128xf32> to vector<1x128xf32>
    %169 = vector.broadcast %168 : vector<1x128xf32> to vector<24x128xf32>
    %170 = arith.mulf %167, %169 : vector<24x128xf32>
    %171 = arith.addf %153, %170 : vector<24x128xf32>
    %172 = vector.extract_strided_slice %166 {offsets = [24, 0], sizes = [24, 128], strides = [1, 1]} : vector<48x128xf32> to vector<24x128xf32>
    %173 = vector.extract_strided_slice %85 {offsets = [1, 0], sizes = [1, 128], strides = [1, 1]} : vector<2x128xf32> to vector<1x128xf32>
    %174 = vector.broadcast %173 : vector<1x128xf32> to vector<24x128xf32>
    %175 = arith.mulf %172, %174 : vector<24x128xf32>
    %176 = arith.addf %158, %175 : vector<24x128xf32>
    %177 = vector.extract_strided_slice %5 {offsets = [5, 0], sizes = [1, 128], strides = [1, 1]} : vector<8x128xi32> to vector<1x128xi32>
    %178 = vector.broadcast %177 : vector<1x128xi32> to vector<128x128xi32>
    %179 = arith.cmpi eq, %178, %89 : vector<128x128xi32>
    %180 = arith.extui %179 : vector<128x128xi1> to vector<128x128xi32>
    %181 = arith.sitofp %180 : vector<128x128xi32> to vector<128x128xf32>
    %cst_28 = arith.constant dense<0.000000e+00> : vector<2x128xf32>
    %182 = tpu.matmul %86, %181, %cst_28 {dimension_numbers = #tpu.dot_dimension_numbers<[1], [1], [0], [0], [0, 0, 1, 0], [], []>} : vector<2x128xf32>, vector<128x128xf32>, vector<2x128xf32> -> vector<2x128xf32>
    %183 = arith.addf %165, %182 : vector<2x128xf32>
    %184 = vector.extract_strided_slice %10 {offsets = [0, 640], sizes = [48, 128], strides = [1, 1]} : vector<48x1024xf32> to vector<48x128xf32>
    %185 = vector.extract_strided_slice %184 {offsets = [0, 0], sizes = [24, 128], strides = [1, 1]} : vector<48x128xf32> to vector<24x128xf32>
    %186 = vector.extract_strided_slice %86 {offsets = [0, 0], sizes = [1, 128], strides = [1, 1]} : vector<2x128xf32> to vector<1x128xf32>
    %187 = vector.broadcast %186 : vector<1x128xf32> to vector<24x128xf32>
    %188 = arith.mulf %185, %187 : vector<24x128xf32>
    %189 = arith.addf %171, %188 : vector<24x128xf32>
    %190 = vector.extract_strided_slice %184 {offsets = [24, 0], sizes = [24, 128], strides = [1, 1]} : vector<48x128xf32> to vector<24x128xf32>
    %191 = vector.extract_strided_slice %86 {offsets = [1, 0], sizes = [1, 128], strides = [1, 1]} : vector<2x128xf32> to vector<1x128xf32>
    %192 = vector.broadcast %191 : vector<1x128xf32> to vector<24x128xf32>
    %193 = arith.mulf %190, %192 : vector<24x128xf32>
    %194 = arith.addf %176, %193 : vector<24x128xf32>
    %195 = vector.extract_strided_slice %5 {offsets = [6, 0], sizes = [1, 128], strides = [1, 1]} : vector<8x128xi32> to vector<1x128xi32>
    %196 = vector.broadcast %195 : vector<1x128xi32> to vector<128x128xi32>
    %197 = arith.cmpi eq, %196, %89 : vector<128x128xi32>
    %198 = arith.extui %197 : vector<128x128xi1> to vector<128x128xi32>
    %199 = arith.sitofp %198 : vector<128x128xi32> to vector<128x128xf32>
    %cst_29 = arith.constant dense<0.000000e+00> : vector<2x128xf32>
    %200 = tpu.matmul %87, %199, %cst_29 {dimension_numbers = #tpu.dot_dimension_numbers<[1], [1], [0], [0], [0, 0, 1, 0], [], []>} : vector<2x128xf32>, vector<128x128xf32>, vector<2x128xf32> -> vector<2x128xf32>
    %201 = arith.addf %183, %200 : vector<2x128xf32>
    %202 = vector.extract_strided_slice %10 {offsets = [0, 768], sizes = [48, 128], strides = [1, 1]} : vector<48x1024xf32> to vector<48x128xf32>
    %203 = vector.extract_strided_slice %202 {offsets = [0, 0], sizes = [24, 128], strides = [1, 1]} : vector<48x128xf32> to vector<24x128xf32>
    %204 = vector.extract_strided_slice %87 {offsets = [0, 0], sizes = [1, 128], strides = [1, 1]} : vector<2x128xf32> to vector<1x128xf32>
    %205 = vector.broadcast %204 : vector<1x128xf32> to vector<24x128xf32>
    %206 = arith.mulf %203, %205 : vector<24x128xf32>
    %207 = arith.addf %189, %206 : vector<24x128xf32>
    %208 = vector.extract_strided_slice %202 {offsets = [24, 0], sizes = [24, 128], strides = [1, 1]} : vector<48x128xf32> to vector<24x128xf32>
    %209 = vector.extract_strided_slice %87 {offsets = [1, 0], sizes = [1, 128], strides = [1, 1]} : vector<2x128xf32> to vector<1x128xf32>
    %210 = vector.broadcast %209 : vector<1x128xf32> to vector<24x128xf32>
    %211 = arith.mulf %208, %210 : vector<24x128xf32>
    %212 = arith.addf %194, %211 : vector<24x128xf32>
    %213 = vector.extract_strided_slice %5 {offsets = [7, 0], sizes = [1, 128], strides = [1, 1]} : vector<8x128xi32> to vector<1x128xi32>
    %214 = vector.broadcast %213 : vector<1x128xi32> to vector<128x128xi32>
    %215 = arith.cmpi eq, %214, %89 : vector<128x128xi32>
    %216 = arith.extui %215 : vector<128x128xi1> to vector<128x128xi32>
    %217 = arith.sitofp %216 : vector<128x128xi32> to vector<128x128xf32>
    %cst_30 = arith.constant dense<0.000000e+00> : vector<2x128xf32>
    %218 = tpu.matmul %88, %217, %cst_30 {dimension_numbers = #tpu.dot_dimension_numbers<[1], [1], [0], [0], [0, 0, 1, 0], [], []>} : vector<2x128xf32>, vector<128x128xf32>, vector<2x128xf32> -> vector<2x128xf32>
    %219 = arith.addf %201, %218 : vector<2x128xf32>
    %220 = vector.extract_strided_slice %10 {offsets = [0, 896], sizes = [48, 128], strides = [1, 1]} : vector<48x1024xf32> to vector<48x128xf32>
    %221 = vector.extract_strided_slice %220 {offsets = [0, 0], sizes = [24, 128], strides = [1, 1]} : vector<48x128xf32> to vector<24x128xf32>
    %222 = vector.extract_strided_slice %88 {offsets = [0, 0], sizes = [1, 128], strides = [1, 1]} : vector<2x128xf32> to vector<1x128xf32>
    %223 = vector.broadcast %222 : vector<1x128xf32> to vector<24x128xf32>
    %224 = arith.mulf %221, %223 : vector<24x128xf32>
    %225 = arith.addf %207, %224 : vector<24x128xf32>
    %226 = vector.extract_strided_slice %220 {offsets = [24, 0], sizes = [24, 128], strides = [1, 1]} : vector<48x128xf32> to vector<24x128xf32>
    %227 = vector.extract_strided_slice %88 {offsets = [1, 0], sizes = [1, 128], strides = [1, 1]} : vector<2x128xf32> to vector<1x128xf32>
    %228 = vector.broadcast %227 : vector<1x128xf32> to vector<24x128xf32>
    %229 = arith.mulf %226, %228 : vector<24x128xf32>
    %230 = arith.addf %212, %229 : vector<24x128xf32>
    %c0_31 = arith.constant 0 : index
    %c0_32 = arith.constant 0 : index
    %c0_33 = arith.constant 0 : index
    %231 = vector.load %arg7[%c0_31, %c0_32, %c0_33] : memref<1x64x128xf32, #tpu.memory_space<vmem>>, vector<1x24x128xf32>
    %232 = vector.shape_cast %231 : vector<1x24x128xf32> to vector<24x128xf32>
    %233 = vector.shape_cast %225 : vector<24x128xf32> to vector<1x24x128xf32>
    tpu.vector_store %arg7[%c0_31, %c0_32, %c0_33], %233 {strides = array<i32>} : memref<1x64x128xf32, #tpu.memory_space<vmem>>, vector<1x24x128xf32>,
    %c0_34 = arith.constant 0 : index
    %c24 = arith.constant 24 : index
    %c0_35 = arith.constant 0 : index
    %234 = vector.load %arg7[%c0_34, %c24, %c0_35] : memref<1x64x128xf32, #tpu.memory_space<vmem>>, vector<1x24x128xf32>
    %235 = vector.shape_cast %234 : vector<1x24x128xf32> to vector<24x128xf32>
    %236 = vector.shape_cast %230 : vector<24x128xf32> to vector<1x24x128xf32>
    tpu.vector_store %arg7[%c0_34, %c24, %c0_35], %236 {strides = array<i32>} : memref<1x64x128xf32, #tpu.memory_space<vmem>>, vector<1x24x128xf32>,
    %237 = tpu.iota {dimensions = array<i32: 1>} : vector<2x128xi32>
    %238 = arith.sitofp %237 : vector<2x128xi32> to vector<2x128xf32>
    %cst_36 = arith.constant dense<0xFF800000> : vector<2xf32>
    %239 = vector.multi_reduction <maximumf>, %219, %cst_36 [1] : vector<2x128xf32> to vector<2xf32>
    %240 = vector.shape_cast %239 : vector<2xf32> to vector<2x1xf32>
    %241 = vector.broadcast %240 : vector<2x1xf32> to vector<2x128xf32>
    %242 = arith.cmpf oeq, %219, %241 : vector<2x128xf32>
    %cst_37 = arith.constant 1.280000e+02 : f32
    %243 = vector.broadcast %cst_37 : f32 to vector<2x128xf32>
    %244 = arith.select %242, %238, %243 : vector<2x128xi1>, vector<2x128xf32>
    %cst_38 = arith.constant dense<0x7F800000> : vector<2xf32>
    %245 = vector.multi_reduction <minimumf>, %244, %cst_38 [1] : vector<2x128xf32> to vector<2xf32>
    %246 = vector.shape_cast %245 : vector<2xf32> to vector<2x1xf32>
    %247 = vector.broadcast %246 : vector<2x1xf32> to vector<2x128xf32>
    %248 = arith.cmpf oeq, %238, %247 : vector<2x128xf32>
    %249 = arith.extui %248 : vector<2x128xi1> to vector<2x128xi32>
    %250 = arith.sitofp %249 : vector<2x128xi32> to vector<2x128xf32>
    %251 = vector.extract_strided_slice %250 {offsets = [0, 0], sizes = [1, 128], strides = [1, 1]} : vector<2x128xf32> to vector<1x128xf32>
    %252 = vector.extract_strided_slice %250 {offsets = [1, 0], sizes = [1, 128], strides = [1, 1]} : vector<2x128xf32> to vector<1x128xf32>
    %cst_39 = arith.constant 0xFF800000 : f32
    %253 = vector.broadcast %cst_39 : f32 to vector<2x128xf32>
    %254 = arith.select %248, %253, %219 : vector<2x128xi1>, vector<2x128xf32>
    %cst_40 = arith.constant dense<0xFF800000> : vector<2xf32>
    %255 = vector.multi_reduction <maximumf>, %254, %cst_40 [1] : vector<2x128xf32> to vector<2xf32>
    %256 = vector.shape_cast %255 : vector<2xf32> to vector<2x1xf32>
    %257 = vector.broadcast %256 : vector<2x1xf32> to vector<2x128xf32>
    %258 = arith.cmpf oeq, %254, %257 : vector<2x128xf32>
    %cst_41 = arith.constant 1.280000e+02 : f32
    %259 = vector.broadcast %cst_41 : f32 to vector<2x128xf32>
    %260 = arith.select %258, %238, %259 : vector<2x128xi1>, vector<2x128xf32>
    %cst_42 = arith.constant dense<0x7F800000> : vector<2xf32>
    %261 = vector.multi_reduction <minimumf>, %260, %cst_42 [1] : vector<2x128xf32> to vector<2xf32>
    %262 = vector.shape_cast %261 : vector<2xf32> to vector<2x1xf32>
    %263 = vector.broadcast %262 : vector<2x1xf32> to vector<2x128xf32>
    %264 = arith.cmpf oeq, %238, %263 : vector<2x128xf32>
    %265 = arith.extui %264 : vector<2x128xi1> to vector<2x128xi32>
    %266 = arith.sitofp %265 : vector<2x128xi32> to vector<2x128xf32>
    %267 = vector.extract_strided_slice %266 {offsets = [0, 0], sizes = [1, 128], strides = [1, 1]} : vector<2x128xf32> to vector<1x128xf32>
    %268 = vector.extract_strided_slice %266 {offsets = [1, 0], sizes = [1, 128], strides = [1, 1]} : vector<2x128xf32> to vector<1x128xf32>
    %cst_43 = arith.constant 0xFF800000 : f32
    %269 = vector.broadcast %cst_43 : f32 to vector<2x128xf32>
    %270 = arith.select %264, %269, %254 : vector<2x128xi1>, vector<2x128xf32>
    %cst_44 = arith.constant dense<0xFF800000> : vector<2xf32>
    %271 = vector.multi_reduction <maximumf>, %270, %cst_44 [1] : vector<2x128xf32> to vector<2xf32>
    %272 = vector.shape_cast %271 : vector<2xf32> to vector<2x1xf32>
    %273 = vector.broadcast %272 : vector<2x1xf32> to vector<2x128xf32>
    %274 = arith.cmpf oeq, %270, %273 : vector<2x128xf32>
    %cst_45 = arith.constant 1.280000e+02 : f32
    %275 = vector.broadcast %cst_45 : f32 to vector<2x128xf32>
    %276 = arith.select %274, %238, %275 : vector<2x128xi1>, vector<2x128xf32>
    %cst_46 = arith.constant dense<0x7F800000> : vector<2xf32>
    %277 = vector.multi_reduction <minimumf>, %276, %cst_46 [1] : vector<2x128xf32> to vector<2xf32>
    %278 = vector.shape_cast %277 : vector<2xf32> to vector<2x1xf32>
    %279 = vector.broadcast %278 : vector<2x1xf32> to vector<2x128xf32>
    %280 = arith.cmpf oeq, %238, %279 : vector<2x128xf32>
    %281 = arith.extui %280 : vector<2x128xi1> to vector<2x128xi32>
    %282 = arith.sitofp %281 : vector<2x128xi32> to vector<2x128xf32>
    %283 = vector.extract_strided_slice %282 {offsets = [0, 0], sizes = [1, 128], strides = [1, 1]} : vector<2x128xf32> to vector<1x128xf32>
    %284 = vector.extract_strided_slice %282 {offsets = [1, 0], sizes = [1, 128], strides = [1, 1]} : vector<2x128xf32> to vector<1x128xf32>
    %cst_47 = arith.constant 0xFF800000 : f32
    %285 = vector.broadcast %cst_47 : f32 to vector<2x128xf32>
    %286 = arith.select %280, %285, %270 : vector<2x128xi1>, vector<2x128xf32>
    %cst_48 = arith.constant dense<0xFF800000> : vector<2xf32>
    %287 = vector.multi_reduction <maximumf>, %286, %cst_48 [1] : vector<2x128xf32> to vector<2xf32>
    %288 = vector.shape_cast %287 : vector<2xf32> to vector<2x1xf32>
    %289 = vector.broadcast %288 : vector<2x1xf32> to vector<2x128xf32>
    %290 = arith.cmpf oeq, %286, %289 : vector<2x128xf32>
    %cst_49 = arith.constant 1.280000e+02 : f32
    %291 = vector.broadcast %cst_49 : f32 to vector<2x128xf32>
    %292 = arith.select %290, %238, %291 : vector<2x128xi1>, vector<2x128xf32>
    %cst_50 = arith.constant dense<0x7F800000> : vector<2xf32>
    %293 = vector.multi_reduction <minimumf>, %292, %cst_50 [1] : vector<2x128xf32> to vector<2xf32>
    %294 = vector.shape_cast %293 : vector<2xf32> to vector<2x1xf32>
    %295 = vector.broadcast %294 : vector<2x1xf32> to vector<2x128xf32>
    %296 = arith.cmpf oeq, %238, %295 : vector<2x128xf32>
    %297 = arith.extui %296 : vector<2x128xi1> to vector<2x128xi32>
    %298 = arith.sitofp %297 : vector<2x128xi32> to vector<2x128xf32>
    %299 = vector.extract_strided_slice %298 {offsets = [0, 0], sizes = [1, 128], strides = [1, 1]} : vector<2x128xf32> to vector<1x128xf32>
    %300 = vector.extract_strided_slice %298 {offsets = [1, 0], sizes = [1, 128], strides = [1, 1]} : vector<2x128xf32> to vector<1x128xf32>
    %cst_51 = arith.constant 0xFF800000 : f32
    %301 = vector.broadcast %cst_51 : f32 to vector<2x128xf32>
    %302 = arith.select %296, %301, %286 : vector<2x128xi1>, vector<2x128xf32>
    %cst_52 = arith.constant dense<0xFF800000> : vector<2xf32>
    %303 = vector.multi_reduction <maximumf>, %302, %cst_52 [1] : vector<2x128xf32> to vector<2xf32>
    %304 = vector.shape_cast %303 : vector<2xf32> to vector<2x1xf32>
    %305 = vector.broadcast %304 : vector<2x1xf32> to vector<2x128xf32>
    %306 = arith.cmpf oeq, %302, %305 : vector<2x128xf32>
    %cst_53 = arith.constant 1.280000e+02 : f32
    %307 = vector.broadcast %cst_53 : f32 to vector<2x128xf32>
    %308 = arith.select %306, %238, %307 : vector<2x128xi1>, vector<2x128xf32>
    %cst_54 = arith.constant dense<0x7F800000> : vector<2xf32>
    %309 = vector.multi_reduction <minimumf>, %308, %cst_54 [1] : vector<2x128xf32> to vector<2xf32>
    %310 = vector.shape_cast %309 : vector<2xf32> to vector<2x1xf32>
    %311 = vector.broadcast %310 : vector<2x1xf32> to vector<2x128xf32>
    %312 = arith.cmpf oeq, %238, %311 : vector<2x128xf32>
    %313 = arith.extui %312 : vector<2x128xi1> to vector<2x128xi32>
    %314 = arith.sitofp %313 : vector<2x128xi32> to vector<2x128xf32>
    %315 = vector.extract_strided_slice %314 {offsets = [0, 0], sizes = [1, 128], strides = [1, 1]} : vector<2x128xf32> to vector<1x128xf32>
    %316 = vector.extract_strided_slice %314 {offsets = [1, 0], sizes = [1, 128], strides = [1, 1]} : vector<2x128xf32> to vector<1x128xf32>
    %cst_55 = arith.constant 0xFF800000 : f32
    %317 = vector.broadcast %cst_55 : f32 to vector<2x128xf32>
    %318 = arith.select %312, %317, %302 : vector<2x128xi1>, vector<2x128xf32>
    %cst_56 = arith.constant dense<0xFF800000> : vector<2xf32>
    %319 = vector.multi_reduction <maximumf>, %318, %cst_56 [1] : vector<2x128xf32> to vector<2xf32>
    %320 = vector.shape_cast %319 : vector<2xf32> to vector<2x1xf32>
    %321 = vector.broadcast %320 : vector<2x1xf32> to vector<2x128xf32>
    %322 = arith.cmpf oeq, %318, %321 : vector<2x128xf32>
    %cst_57 = arith.constant 1.280000e+02 : f32
    %323 = vector.broadcast %cst_57 : f32 to vector<2x128xf32>
    %324 = arith.select %322, %238, %323 : vector<2x128xi1>, vector<2x128xf32>
    %cst_58 = arith.constant dense<0x7F800000> : vector<2xf32>
    %325 = vector.multi_reduction <minimumf>, %324, %cst_58 [1] : vector<2x128xf32> to vector<2xf32>
    %326 = vector.shape_cast %325 : vector<2xf32> to vector<2x1xf32>
    %327 = vector.broadcast %326 : vector<2x1xf32> to vector<2x128xf32>
    %328 = arith.cmpf oeq, %238, %327 : vector<2x128xf32>
    %329 = arith.extui %328 : vector<2x128xi1> to vector<2x128xi32>
    %330 = arith.sitofp %329 : vector<2x128xi32> to vector<2x128xf32>
    %331 = vector.extract_strided_slice %330 {offsets = [0, 0], sizes = [1, 128], strides = [1, 1]} : vector<2x128xf32> to vector<1x128xf32>
    %332 = vector.extract_strided_slice %330 {offsets = [1, 0], sizes = [1, 128], strides = [1, 1]} : vector<2x128xf32> to vector<1x128xf32>
    %cst_59 = arith.constant 0xFF800000 : f32
    %333 = vector.broadcast %cst_59 : f32 to vector<2x128xf32>
    %334 = arith.select %328, %333, %318 : vector<2x128xi1>, vector<2x128xf32>
    %cst_60 = arith.constant dense<0xFF800000> : vector<2xf32>
    %335 = vector.multi_reduction <maximumf>, %334, %cst_60 [1] : vector<2x128xf32> to vector<2xf32>
    %336 = vector.shape_cast %335 : vector<2xf32> to vector<2x1xf32>
    %337 = vector.broadcast %336 : vector<2x1xf32> to vector<2x128xf32>
    %338 = arith.cmpf oeq, %334, %337 : vector<2x128xf32>
    %cst_61 = arith.constant 1.280000e+02 : f32
    %339 = vector.broadcast %cst_61 : f32 to vector<2x128xf32>
    %340 = arith.select %338, %238, %339 : vector<2x128xi1>, vector<2x128xf32>
    %cst_62 = arith.constant dense<0x7F800000> : vector<2xf32>
    %341 = vector.multi_reduction <minimumf>, %340, %cst_62 [1] : vector<2x128xf32> to vector<2xf32>
    %342 = vector.shape_cast %341 : vector<2xf32> to vector<2x1xf32>
    %343 = vector.broadcast %342 : vector<2x1xf32> to vector<2x128xf32>
    %344 = arith.cmpf oeq, %238, %343 : vector<2x128xf32>
    %345 = arith.extui %344 : vector<2x128xi1> to vector<2x128xi32>
    %346 = arith.sitofp %345 : vector<2x128xi32> to vector<2x128xf32>
    %347 = vector.extract_strided_slice %346 {offsets = [0, 0], sizes = [1, 128], strides = [1, 1]} : vector<2x128xf32> to vector<1x128xf32>
    %348 = vector.extract_strided_slice %346 {offsets = [1, 0], sizes = [1, 128], strides = [1, 1]} : vector<2x128xf32> to vector<1x128xf32>
    %cst_63 = arith.constant 0xFF800000 : f32
    %349 = vector.broadcast %cst_63 : f32 to vector<2x128xf32>
    %350 = arith.select %344, %349, %334 : vector<2x128xi1>, vector<2x128xf32>
    %cst_64 = arith.constant dense<0xFF800000> : vector<2xf32>
    %351 = vector.multi_reduction <maximumf>, %350, %cst_64 [1] : vector<2x128xf32> to vector<2xf32>
    %352 = vector.shape_cast %351 : vector<2xf32> to vector<2x1xf32>
    %353 = vector.broadcast %352 : vector<2x1xf32> to vector<2x128xf32>
    %354 = arith.cmpf oeq, %350, %353 : vector<2x128xf32>
    %cst_65 = arith.constant 1.280000e+02 : f32
    %355 = vector.broadcast %cst_65 : f32 to vector<2x128xf32>
    %356 = arith.select %354, %238, %355 : vector<2x128xi1>, vector<2x128xf32>
    %cst_66 = arith.constant dense<0x7F800000> : vector<2xf32>
    %357 = vector.multi_reduction <minimumf>, %356, %cst_66 [1] : vector<2x128xf32> to vector<2xf32>
    %358 = vector.shape_cast %357 : vector<2xf32> to vector<2x1xf32>
    %359 = vector.broadcast %358 : vector<2x1xf32> to vector<2x128xf32>
    %360 = arith.cmpf oeq, %238, %359 : vector<2x128xf32>
    %361 = arith.extui %360 : vector<2x128xi1> to vector<2x128xi32>
    %362 = arith.sitofp %361 : vector<2x128xi32> to vector<2x128xf32>
    %363 = vector.extract_strided_slice %362 {offsets = [0, 0], sizes = [1, 128], strides = [1, 1]} : vector<2x128xf32> to vector<1x128xf32>
    %364 = vector.extract_strided_slice %362 {offsets = [1, 0], sizes = [1, 128], strides = [1, 1]} : vector<2x128xf32> to vector<1x128xf32>
    %c0_67 = arith.constant 0 : index
    %c0_68 = arith.constant 0 : index
    %365 = vector.load %arg6[%c0_67, %c0_68] : memref<64x8xf32, #tpu.memory_space<vmem>>, vector<64x8xf32>
    %cst_69 = arith.constant dense<0.000000e+00> : vector<64x128xf32>
    %366 = tpu.matmul %365, %1, %cst_69 {dimension_numbers = #tpu.dot_dimension_numbers<[1], [0], [0], [1], [0, 0, 1, 1], [], []>} : vector<64x8xf32>, vector<8x128xf32>, vector<64x128xf32> -> vector<64x128xf32>
    %367 = vector.extract_strided_slice %366 {offsets = [0, 0], sizes = [16, 128], strides = [1, 1]} : vector<64x128xf32> to vector<16x128xf32>
    %368 = vector.extract_strided_slice %366 {offsets = [32, 0], sizes = [16, 128], strides = [1, 1]} : vector<64x128xf32> to vector<16x128xf32>
    %369 = vector.extract_strided_slice %366 {offsets = [48, 0], sizes = [16, 128], strides = [1, 1]} : vector<64x128xf32> to vector<16x128xf32>
    %370 = tpu.concatenate %251, %267, %283, %299, %315, %331, %347, %363 in 0 : vector<1x128xf32>, vector<1x128xf32>, vector<1x128xf32>, vector<1x128xf32>, vector<1x128xf32>, vector<1x128xf32>, vector<1x128xf32>, vector<1x128xf32> -> vector<8x128xf32>
    %371 = vector.extract_strided_slice %219 {offsets = [0, 0], sizes = [1, 128], strides = [1, 1]} : vector<2x128xf32> to vector<1x128xf32>
    %372 = vector.broadcast %371 : vector<1x128xf32> to vector<8x128xf32>
    %373 = arith.mulf %370, %372 : vector<8x128xf32>
    %cst_70 = arith.constant dense<0.000000e+00> : vector<8xf32>
    %374 = vector.multi_reduction <add>, %373, %cst_70 [1] : vector<8x128xf32> to vector<8xf32>
    %375 = vector.shape_cast %374 : vector<8xf32> to vector<8x1xf32>
    %376 = math.tanh %375 : vector<8x1xf32>
    %cst_71 = arith.constant dense<0.000000e+00> : vector<8x64xf32>
    %377 = tpu.matmul %370, %366, %cst_71 {dimension_numbers = #tpu.dot_dimension_numbers<[1], [1], [0], [0], [0, 0, 1, 0], [], []>} : vector<8x128xf32>, vector<64x128xf32>, vector<8x64xf32> -> vector<8x64xf32>
    %378 = vector.extract_strided_slice %377 {offsets = [0, 16], sizes = [8, 8], strides = [1, 1]} : vector<8x64xf32> to vector<8x8xf32>
    %379 = vector.extract_strided_slice %377 {offsets = [0, 48], sizes = [8, 8], strides = [1, 1]} : vector<8x64xf32> to vector<8x8xf32>
    %380 = vector.extract_strided_slice %367 {offsets = [0, 0], sizes = [8, 128], strides = [1, 1]} : vector<16x128xf32> to vector<8x128xf32>
    %381 = vector.extract_strided_slice %368 {offsets = [0, 0], sizes = [8, 128], strides = [1, 1]} : vector<16x128xf32> to vector<8x128xf32>
    %382 = vector.extract_strided_slice %369 {offsets = [0, 0], sizes = [8, 128], strides = [1, 1]} : vector<16x128xf32> to vector<8x128xf32>
    %cst_72 = arith.constant dense<0.000000e+00> : vector<8x128xf32>
    %383 = tpu.matmul %378, %380, %cst_72 {dimension_numbers = #tpu.dot_dimension_numbers<[1], [0], [0], [1], [0, 0, 1, 1], [], []>} : vector<8x8xf32>, vector<8x128xf32>, vector<8x128xf32> -> vector<8x128xf32>
    %cst_73 = arith.constant dense<0xFF800000> : vector<128xf32>
    %384 = vector.multi_reduction <maximumf>, %383, %cst_73 [0] : vector<8x128xf32> to vector<128xf32>
    %385 = vector.shape_cast %384 : vector<128xf32> to vector<1x128xf32>
    %386 = vector.broadcast %385 : vector<1x128xf32> to vector<8x128xf32>
    %387 = arith.subf %383, %386 : vector<8x128xf32>
    %388 = math.exp %387 : vector<8x128xf32>
    %cst_74 = arith.constant dense<0.000000e+00> : vector<128xf32>
    %389 = vector.multi_reduction <add>, %388, %cst_74 [0] : vector<8x128xf32> to vector<128xf32>
    %390 = vector.shape_cast %389 : vector<128xf32> to vector<1x128xf32>
    %391 = vector.broadcast %390 : vector<1x128xf32> to vector<8x128xf32>
    %392 = arith.divf %388, %391 : vector<8x128xf32>
    %393 = vector.broadcast %376 : vector<8x1xf32> to vector<8x128xf32>
    %394 = arith.mulf %392, %393 : vector<8x128xf32>
    %cst_75 = arith.constant dense<0.000000e+00> : vector<128xf32>
    %395 = vector.multi_reduction <add>, %394, %cst_75 [0] : vector<8x128xf32> to vector<128xf32>
    %396 = vector.shape_cast %395 : vector<128xf32> to vector<1x128xf32>
    %397 = arith.subf %381, %382 : vector<8x128xf32>
    %398 = vector.broadcast %396 : vector<1x128xf32> to vector<8x128xf32>
    %399 = arith.mulf %397, %398 : vector<8x128xf32>
    %cst_76 = arith.constant dense<0.000000e+00> : vector<8x128xf32>
    %400 = tpu.matmul %379, %394, %cst_76 {dimension_numbers = #tpu.dot_dimension_numbers<[0], [0], [1], [1], [0, 1, 1, 1], [], []>} : vector<8x8xf32>, vector<8x128xf32>, vector<8x128xf32> -> vector<8x128xf32>
    %401 = arith.addf %399, %400 : vector<8x128xf32>
    %c0_77 = arith.constant 0 : index
    %c48 = arith.constant 48 : index
    %c0_78 = arith.constant 0 : index
    %402 = vector.load %arg7[%c0_77, %c48, %c0_78] : memref<1x64x128xf32, #tpu.memory_space<vmem>>, vector<1x8x128xf32>
    %403 = vector.shape_cast %402 : vector<1x8x128xf32> to vector<8x128xf32>
    %404 = vector.shape_cast %401 : vector<8x128xf32> to vector<1x8x128xf32>
    tpu.vector_store %arg7[%c0_77, %c48, %c0_78], %404 {strides = array<i32>} : memref<1x64x128xf32, #tpu.memory_space<vmem>>, vector<1x8x128xf32>,
    %405 = tpu.concatenate %252, %268, %284, %300, %316, %332, %348, %364 in 0 : vector<1x128xf32>, vector<1x128xf32>, vector<1x128xf32>, vector<1x128xf32>, vector<1x128xf32>, vector<1x128xf32>, vector<1x128xf32>, vector<1x128xf32> -> vector<8x128xf32>
    %406 = vector.extract_strided_slice %219 {offsets = [1, 0], sizes = [1, 128], strides = [1, 1]} : vector<2x128xf32> to vector<1x128xf32>
    %407 = vector.broadcast %406 : vector<1x128xf32> to vector<8x128xf32>
    %408 = arith.mulf %405, %407 : vector<8x128xf32>
    %cst_79 = arith.constant dense<0.000000e+00> : vector<8xf32>
    %409 = vector.multi_reduction <add>, %408, %cst_79 [1] : vector<8x128xf32> to vector<8xf32>
    %410 = vector.shape_cast %409 : vector<8xf32> to vector<8x1xf32>
    %411 = math.tanh %410 : vector<8x1xf32>
    %cst_80 = arith.constant dense<0.000000e+00> : vector<8x64xf32>
    %412 = tpu.matmul %405, %366, %cst_80 {dimension_numbers = #tpu.dot_dimension_numbers<[1], [1], [0], [0], [0, 0, 1, 0], [], []>} : vector<8x128xf32>, vector<64x128xf32>, vector<8x64xf32> -> vector<8x64xf32>
    %413 = vector.extract_strided_slice %412 {offsets = [0, 24], sizes = [8, 8], strides = [1, 1]} : vector<8x64xf32> to vector<8x8xf32>
    %414 = vector.extract_strided_slice %412 {offsets = [0, 56], sizes = [8, 8], strides = [1, 1]} : vector<8x64xf32> to vector<8x8xf32>
    %415 = vector.extract_strided_slice %367 {offsets = [8, 0], sizes = [8, 128], strides = [1, 1]} : vector<16x128xf32> to vector<8x128xf32>
    %416 = vector.extract_strided_slice %368 {offsets = [8, 0], sizes = [8, 128], strides = [1, 1]} : vector<16x128xf32> to vector<8x128xf32>
    %417 = vector.extract_strided_slice %369 {offsets = [8, 0], sizes = [8, 128], strides = [1, 1]} : vector<16x128xf32> to vector<8x128xf32>
    %cst_81 = arith.constant dense<0.000000e+00> : vector<8x128xf32>
    %418 = tpu.matmul %413, %415, %cst_81 {dimension_numbers = #tpu.dot_dimension_numbers<[1], [0], [0], [1], [0, 0, 1, 1], [], []>} : vector<8x8xf32>, vector<8x128xf32>, vector<8x128xf32> -> vector<8x128xf32>
    %cst_82 = arith.constant dense<0xFF800000> : vector<128xf32>
    %419 = vector.multi_reduction <maximumf>, %418, %cst_82 [0] : vector<8x128xf32> to vector<128xf32>
    %420 = vector.shape_cast %419 : vector<128xf32> to vector<1x128xf32>
    %421 = vector.broadcast %420 : vector<1x128xf32> to vector<8x128xf32>
    %422 = arith.subf %418, %421 : vector<8x128xf32>
    %423 = math.exp %422 : vector<8x128xf32>
    %cst_83 = arith.constant dense<0.000000e+00> : vector<128xf32>
    %424 = vector.multi_reduction <add>, %423, %cst_83 [0] : vector<8x128xf32> to vector<128xf32>
    %425 = vector.shape_cast %424 : vector<128xf32> to vector<1x128xf32>
    %426 = vector.broadcast %425 : vector<1x128xf32> to vector<8x128xf32>
    %427 = arith.divf %423, %426 : vector<8x128xf32>
    %428 = vector.broadcast %411 : vector<8x1xf32> to vector<8x128xf32>
    %429 = arith.mulf %427, %428 : vector<8x128xf32>
    %cst_84 = arith.constant dense<0.000000e+00> : vector<128xf32>
    %430 = vector.multi_reduction <add>, %429, %cst_84 [0] : vector<8x128xf32> to vector<128xf32>
    %431 = vector.shape_cast %430 : vector<128xf32> to vector<1x128xf32>
    %432 = arith.subf %416, %417 : vector<8x128xf32>
    %433 = vector.broadcast %431 : vector<1x128xf32> to vector<8x128xf32>
    %434 = arith.mulf %432, %433 : vector<8x128xf32>
    %cst_85 = arith.constant dense<0.000000e+00> : vector<8x128xf32>
    %435 = tpu.matmul %414, %429, %cst_85 {dimension_numbers = #tpu.dot_dimension_numbers<[0], [0], [1], [1], [0, 1, 1, 1], [], []>} : vector<8x8xf32>, vector<8x128xf32>, vector<8x128xf32> -> vector<8x128xf32>
    %436 = arith.addf %434, %435 : vector<8x128xf32>
    %c0_86 = arith.constant 0 : index
    %c56 = arith.constant 56 : index
    %c0_87 = arith.constant 0 : index
    %437 = vector.load %arg7[%c0_86, %c56, %c0_87] : memref<1x64x128xf32, #tpu.memory_space<vmem>>, vector<1x8x128xf32>
    %438 = vector.shape_cast %437 : vector<1x8x128xf32> to vector<8x128xf32>
    %439 = vector.shape_cast %436 : vector<8x128xf32> to vector<1x8x128xf32>
    tpu.vector_store %arg7[%c0_86, %c56, %c0_87], %439 {strides = array<i32>} : memref<1x64x128xf32, #tpu.memory_space<vmem>>, vector<1x8x128xf32>,
    return
  }
  func.func @transform_0(%arg0: i32) -> (i32, i32, i32) {
    %c0_i32 = arith.constant 0 : i32
    %c0_i32_0 = arith.constant 0 : i32
    %c0_i32_1 = arith.constant 0 : i32
    return %arg0, %c0_i32, %c0_i32_0 : i32, i32, i32
  }
  func.func @transform_1(%arg0: i32) -> (i32, i32, i32) {
    %c0_i32 = arith.constant 0 : i32
    %c0_i32_0 = arith.constant 0 : i32
    %c0_i32_1 = arith.constant 0 : i32
    return %arg0, %c0_i32, %c0_i32_0 : i32, i32, i32
  }
  func.func @transform_2(%arg0: i32) -> (i32, i32, i32) {
    %c0_i32 = arith.constant 0 : i32
    %c0_i32_0 = arith.constant 0 : i32
    %c0_i32_1 = arith.constant 0 : i32
    return %arg0, %c0_i32, %c0_i32_0 : i32, i32, i32
  }
  func.func @transform_3(%arg0: i32) -> (i32, i32) {
    %c0_i32 = arith.constant 0 : i32
    %c0_i32_0 = arith.constant 0 : i32
    %c0_i32_1 = arith.constant 0 : i32
    return %c0_i32, %c0_i32_0 : i32, i32
  }
  func.func @transform_4(%arg0: i32) -> (i32, i32) {
    %c0_i32 = arith.constant 0 : i32
    %c0_i32_0 = arith.constant 0 : i32
    %c0_i32_1 = arith.constant 0 : i32
    return %c0_i32, %c0_i32_0 : i32, i32
  }
  func.func @transform_5(%arg0: i32) -> (i32, i32) {
    %c0_i32 = arith.constant 0 : i32
    %c0_i32_0 = arith.constant 0 : i32
    %c0_i32_1 = arith.constant 0 : i32
    return %c0_i32, %c0_i32_0 : i32, i32
  }
  func.func @transform_6(%arg0: i32) -> (i32, i32, i32) {
    %c0_i32 = arith.constant 0 : i32
    %c0_i32_0 = arith.constant 0 : i32
    %c0_i32_1 = arith.constant 0 : i32
    return %arg0, %c0_i32, %c0_i32_0 : i32, i32, i32
  }
}

</mosaic_0001>

<bundles_post_ra>
// kernel: attention_conv_forward.1
= control target key start
LH: loop header
LB: loop body
LE: loop exit
PB: predicated region body
PF: predicated region fallthrough
CT: control target
= control target key end

     0   :  { %11 = vsyncpa [#allocation3], 0  ;;  %s4307_s0 = inlined_call_operand.vmem [shape: f32[2,16,1024], index: 0, kind: input, shape index: {}]   ;;  %s4308_s1 = inlined_call_operand.vmem [shape: f32[2,8,128], index: 1, kind: input, shape index: {}]   ;;  %s4309_s2 = inlined_call_operand.vmem [shape: s32[2,8,128], index: 2, kind: input, shape index: {}]   ;;  %s4310_s3 = inlined_call_operand.vmem [shape: f32[48,8], index: 3, kind: input, shape index: {}]   ;;  %s4311_s4 = inlined_call_operand.vmem [shape: f32[96,16], index: 4, kind: input, shape index: {}]   ;;  %s4312_s5 = inlined_call_operand.vmem [shape: f32[64,8], index: 5, kind: input, shape index: {}]   ;;  %s4313_s6 = inlined_call_operand.hbm [shape: f32[2,64,128], index: 6, kind: output, shape index: {}]  }
   0x1   :  { %13 = vsyncpa [#allocation3 + $0x1], 0  ;;  %s3020_s21 = smov 0   ;;  %s3022_s22 = smov 0  }
   0x2   :  { %s3024_s23 = smov 0   ;;  %s3026_s24 = smov 0  }
   0x3 LB: > { %s3041_s25 = sadd.s32 4294967295, %s2975_s24   ;;  %s2431_s26 = sadd.s32 4294967294, %s2975_s24   ;;  %s2975_s24 = sphi %s3026_s24, %s4361_s24   ;;  %s2971_s23 = sphi %s3024_s23, %s4360_s23   ;;  %s2967_s22 = sphi %s3022_s22, %s4359_s22   ;;  %s2963_s21 = sphi %s3020_s21, %s4358_s21  }
   0x4   : > { %s3045_s27 = sadd.s32 1, %s2975_s24   ;;  %s167_s28 = sadd.s32 1, %s2971_s23 }
   0x5   : > { %s164_s29 = ssub.s32 %s2975_s24, %s3045_s27  ;;  %p177_p0 = scmp.ne.s32.totalorder %s2971_s23, %s2967_s22 }
   0x6   : > { %p165_p1 = scmp.eq.s32.totalorder %s164_s29, 0  ;;  %p178_p2 = scmp.eq.s32.totalorder %s3041_s25, 1 }
   0x7   : > { %p183_p3 = scmp.ne.s32.totalorder %s2967_s22, %s2963_s21  ;;  %p184_p4 = scmp.eq.s32.totalorder %s2431_s26, 1 }
   0x8   : > { %s3056_s30 = scalar_select %p165_p1, %s2971_s23, %s167_s28  }
   0x9   : > { %p3058_p5 = por %p178_p2, %p177_p0  ;;  %p3062_p6 = por %p184_p4, %p183_p3 }
   0xa   : > { %p2434_p7 = scmp.ge.s32.totalorder %s2975_s24, 1  ;;  %p233_p8 = scmp.lt.s32.totalorder %s2975_s24, 3 }
   0xc   : > { %p234_p9 = pnand %p2434_p7, %p233_p8 }
   0xe   : > { %237 = sbr.rel (%p234_p9) target bundleno = 3200 (0xc80), region = 44 }
  0x13   : > { %p271_p10 = scmp.lt.s32.totalorder %s3041_s25, 1  ;;  %v302_v0 = vld [vmem:[%s4310_s3] sm:$0xff]  ;;  %v307_v1 = vld [vmem:[%s4310_s3 + $0x28] sm:$0xff]  ;;  %vm308_vm0 = vcmask 64512   ;;  %vm374_vm1 = vcmask 130048   ;;  %v304_v18 = vld [vmem:[%s4310_s3 + $0x10] sm:$0xff] }
  0x14   : > { %v3100_v7 = vld [vmem:[%s4311_s4] sm:$0xff]  ;;  %v303_v14 = vld [vmem:[%s4310_s3 + $0x8] sm:$0xff]  ;;  %v3137_v19 = vld [vmem:[%s4311_s4 + $0x10] sm:$0xff]  ;;  %vm853_vm5 = vcmask 392192   ;;  %s2980_s13 = smov 80   ;;  %s2981_s15 = smov 112  }
  0x15   : > { %s3070_s9 = scalar_select %p271_p10, %s3041_s25, 1  ;;  %v3120_v15 = vld [vmem:[%s4311_s4 + $0x8] sm:$0xff]  ;;  %v305_v20 = vld [vmem:[%s4310_s3 + $0x18] sm:$0xff]  ;;  %v306_v22 = vld [vmem:[%s4310_s3 + $0x20] sm:$0xff] }
  0x16   : > { %v3152_v21 = vld [vmem:[%s4311_s4 + $0x18] sm:$0xff]  ;;  %v3167_v23 = vld [vmem:[%s4311_s4 + $0x20] sm:$0xff]  ;;  %v3179_v24 = vld [vmem:[%s4311_s4 + $0x28] sm:$0xff]  ;;  %s2982_s16 = smov 72   ;;  %s2833_s18 = sshll.u32 %s3041_s25, 6 }
  0x17   : > { %s2832_s10 = sshll.u32 %s3070_s9, 7  ;;  %s2438_s11 = sshll.u32 %s3070_s9, 3  ;;  %v3192_v25 = vld [vmem:[%s4311_s4 + $0x30] sm:$0xff]  ;;  %v3207_v28 = vld [vmem:[%s4311_s4 + $0x38] sm:$0xff]  ;;  %v3222_v31 = vld [vmem:[%s4311_s4 + $0x40] sm:$0xff] }
  0x18   : > { %s3077_s14 = scalar_lea.vmem %s4307_s0, %s2832_s10  ;;  %s3084_s17 = scalar_lea.vmem %s4308_s1, %s2438_s11  ;;  %v3235_v32 = vld [vmem:[%s4311_s4 + $0x48] sm:$0xff]  ;;  %v3248_v33 = vld [vmem:[%s4311_s4 + $0x50] sm:$0xff]  ;;  %v3261_v34 = vld [vmem:[%s4311_s4 + $0x58] sm:$0xff] }
  0x19   : > { %v284_v2 = vld [vmem:[%s3084_s17] sm:$0xff]  ;;  %v294_v3 = vld [vmem:[%s3077_s14 + $0x48] sm:$0xff]  ;;  %v295_v4 = vld [vmem:[%s3077_s14 + $0x50] sm:$0xff]  ;;  %s283_s28 = scalar_lea.vmem %s4309_s2, %s2438_s11  ;;  %s268_s9 = sand.u32 1, %s2967_s22  }
  0x1a   : > { %342 = vmatpush.msra.mxu0 %v284_v2  ;;  %2834 = vmatpush.msra.mxu1 %v284_v2  ;;  %v286_v5 = vld [vmem:[%s3077_s14 + $0x8] sm:$0xff]  ;;  %v287_v6 = vld [vmem:[%s3077_s14 + $0x10] sm:$0xff]  ;;  %v293_v8 = vld [vmem:[%s3077_s14 + $0x40] sm:$0xff]  ;;  %s2435_s11 = sshll.u32 %s268_s9, 6  ;;  %s2341_s26 = scalar_lea.hbm %s4313_s6, %s2833_s18 }
  0x1b   : > { %478 = vmatpush.msra.mxu2 %v294_v3  ;;  %531 = vmatpush.msra.mxu3 %v295_v4  ;;  %v296_v9 = vld [vmem:[%s3077_s14 + $0x58] sm:$0xff]  ;;  %v285_v10 = vld [vmem:[%s3077_s14] sm:$0xff]  ;;  %v298_v12 = vld [vmem:[%s3077_s14 + $0x68] sm:$0xff]  ;;  %s2330_s29 = scalar_lea.sflag [#allocation3], %s268_s9 }
  0x1c   : > { %2440 = vmatmul.msk.f32.vlgmr.msra.gmra.mxu0 %vm308_vm0, %v302_v0  ;;  %2445 = vmatmul.msk.f32.vlgmr.msra.gmra.mxu1 %vm308_vm0, %v307_v1  ;;  %v288_v11 = vld [vmem:[%s3077_s14 + $0x18] sm:$0xff]  ;;  %v297_v13 = vld [vmem:[%s3077_s14 + $0x60] sm:$0xff]  ;;  %v299_v16 = vld [vmem:[%s3077_s14 + $0x70] sm:$0xff] }
  0x1d   : > { %479 = vmatpush.msra.mxu2 %v286_v5  ;;  %532 = vmatpush.msra.mxu3 %v287_v6  ;;  %v300_v17 = vld [vmem:[%s3077_s14 + $0x78] sm:$0xff]  ;;  %v290_v26 = vld [vmem:[%s3077_s14 + $0x28] sm:$0xff]  ;;  %v289_v27 = vld [vmem:[%s3077_s14 + $0x20] sm:$0xff] }
  0x1e   : > { %2458 = vmatmul.msk.f32.vlgmr.msra.gmra.mxu2 %vm374_vm1, %v3100_v7  ;;  %2470 = vmatmul.msk.f32.vlgmr.msra.gmra.mxu3 %vm374_vm1, %v3100_v7  ;;  %v291_v29 = vld [vmem:[%s3077_s14 + $0x30] sm:$0xff]  ;;  %v292_v30 = vld [vmem:[%s3077_s14 + $0x38] sm:$0xff]  ;;  %s2979_s14 = smov 104  }
  0x1f   : > { %425 = vmatpush.msrb.mxu1 %v293_v8  ;;  %584 = vmatpush.msrb.mxu0 %v296_v9 }
  0x20   : > { %690 = vmatpush.msrb.mxu2 %v298_v12  ;;  %743 = vmatpush.msrb.mxu3 %v299_v16 }
  0x21   : > { %426 = vmatpush.msrb.mxu1 %v285_v10  ;;  %585 = vmatpush.msrb.mxu0 %v288_v11 }
  0x22   : > { %691 = vmatpush.msrb.mxu2 %v290_v26  ;;  %744 = vmatpush.msrb.mxu3 %v291_v29 }
  0x23   : > { %637 = vmatpush.msra.mxu1 %v297_v13  ;;  %796 = vmatpush.msra.mxu0 %v300_v17 }
  0x24   : > { %2441 = vmatmul.msk.f32.gmra.mxu0 %vm308_vm0, %v303_v14  ;;  %2446 = vmatmul.msk.f32.vlgmr.msrb.gmra.mxu1 %vm374_vm1, %v3100_v7 }
  0x25   : > { %638 = vmatpush.msra.mxu1 %v289_v27  ;;  %797 = vmatpush.msra.mxu0 %v292_v30 }
  0x26   : > { %2459 = vmatmul.msk.f32.gmra.mxu2 %vm374_vm1, %v3120_v15  ;;  %2471 = vmatmul.msk.f32.gmra.mxu3 %vm374_vm1, %v3120_v15 }
  0x2c   : > { %2442 = vmatmul.msk.f32.gmra.mxu0 %vm308_vm0, %v304_v18  ;;  %2447 = vmatmul.msk.f32.gmra.mxu1 %vm374_vm1, %v3120_v15 }
  0x2e   : > { %2460 = vmatmul.msk.f32.gmra.mxu2 %vm374_vm1, %v3137_v19  ;;  %2472 = vmatmul.msk.f32.gmra.mxu3 %vm374_vm1, %v3137_v19 }
  0x34   : > { %2443 = vmatmul.msk.f32.gmra.mxu0 %vm308_vm0, %v305_v20  ;;  %2448 = vmatmul.msk.f32.gmra.mxu1 %vm374_vm1, %v3137_v19 }
  0x36   : > { %2461 = vmatmul.msk.f32.gmra.mxu2 %vm374_vm1, %v3152_v21  ;;  %2473 = vmatmul.msk.f32.gmra.mxu3 %vm374_vm1, %v3152_v21 }
  0x3c   : > { %2444 = vmatmul.msk.f32.gmra.mxu0 %vm308_vm0, %v306_v22  ;;  %2449 = vmatmul.msk.f32.gmra.mxu1 %vm374_vm1, %v3152_v21 }
  0x3e   : > { %2462 = vmatmul.msk.f32.gmra.mxu2 %vm374_vm1, %v3167_v23  ;;  %2474 = vmatmul.msk.f32.gmra.mxu3 %vm374_vm1, %v3167_v23 }
  0x44   : > { %2450 = vmatmul.msk.f32.gmra.mxu1 %vm374_vm1, %v3167_v23  ;;  %2482 = vmatmul.msk.f32.vlgmr.msrb.gmra.mxu0 %vm374_vm1, %v3100_v7 }
  0x46   : > { %2463 = vmatmul.msk.f32.gmra.mxu2 %vm374_vm1, %v3179_v24  ;;  %2475 = vmatmul.msk.f32.gmra.mxu3 %vm374_vm1, %v3179_v24 }
  0x4c   : > { %2451 = vmatmul.msk.f32.gmra.mxu1 %vm374_vm1, %v3179_v24  ;;  %2483 = vmatmul.msk.f32.gmra.mxu0 %vm374_vm1, %v3120_v15 }
  0x4e   : > { %2464 = vmatmul.msk.f32.gmra.mxu2 %vm374_vm1, %v3192_v25  ;;  %2476 = vmatmul.msk.f32.gmra.mxu3 %vm374_vm1, %v3192_v25 }
  0x54   : > { %2452 = vmatmul.msk.f32.gmra.mxu1 %vm374_vm1, %v3192_v25  ;;  %2484 = vmatmul.msk.f32.gmra.mxu0 %vm374_vm1, %v3137_v19 }
  0x56   : > { %2465 = vmatmul.msk.f32.gmra.mxu2 %vm374_vm1, %v3207_v28  ;;  %2477 = vmatmul.msk.f32.gmra.mxu3 %vm374_vm1, %v3207_v28 }
  0x5c   : > { %2453 = vmatmul.msk.f32.gmra.mxu1 %vm374_vm1, %v3207_v28  ;;  %2485 = vmatmul.msk.f32.gmra.mxu0 %vm374_vm1, %v3152_v21 }
  0x5e   : > { %2466 = vmatmul.msk.f32.gmra.mxu2 %vm374_vm1, %v3222_v31  ;;  %2478 = vmatmul.msk.f32.gmra.mxu3 %vm374_vm1, %v3222_v31 }
  0x64   : > { %2454 = vmatmul.msk.f32.gmra.mxu1 %vm374_vm1, %v3222_v31  ;;  %2486 = vmatmul.msk.f32.gmra.mxu0 %vm374_vm1, %v3167_v23 }
  0x66   : > { %2467 = vmatmul.msk.f32.gmra.mxu2 %vm374_vm1, %v3235_v32  ;;  %2479 = vmatmul.msk.f32.gmra.mxu3 %vm374_vm1, %v3235_v32 }
  0x6c   : > { %2455 = vmatmul.msk.f32.gmra.mxu1 %vm374_vm1, %v3235_v32  ;;  %2487 = vmatmul.msk.f32.gmra.mxu0 %vm374_vm1, %v3179_v24 }
  0x6e   : > { %2468 = vmatmul.msk.f32.gmra.mxu2 %vm374_vm1, %v3248_v33  ;;  %2480 = vmatmul.msk.f32.gmra.mxu3 %vm374_vm1, %v3248_v33 }
  0x74   : > { %2456 = vmatmul.msk.f32.gmra.mxu1 %vm374_vm1, %v3248_v33  ;;  %2488 = vmatmul.msk.f32.gmra.mxu0 %vm374_vm1, %v3192_v25 }
  0x76   : > { %2469 = vmatmul.msk.f32.gmra.mxu2 %vm374_vm1, %v3261_v34  ;;  %2481 = vmatmul.msk.f32.gmra.mxu3 %vm374_vm1, %v3261_v34 }
  0x7c   : > { %2457 = vmatmul.msk.f32.gmra.mxu1 %vm374_vm1, %v3261_v34  ;;  %2489 = vmatmul.msk.f32.gmra.mxu0 %vm374_vm1, %v3207_v28 }
  0x7e   : > { %2506 = vmatmul.msk.f32.vlgmr.msrb.gmra.mxu2 %vm374_vm1, %v3100_v7  ;;  %2518 = vmatmul.msk.f32.vlgmr.msrb.gmra.mxu3 %vm374_vm1, %v3100_v7 }
  0x84   : > { %2490 = vmatmul.msk.f32.gmra.mxu0 %vm374_vm1, %v3222_v31  ;;  %2494 = vmatmul.msk.f32.vlgmr.msra.gmra.mxu1 %vm374_vm1, %v3100_v7 }
  0x86   : > { %2507 = vmatmul.msk.f32.gmra.mxu2 %vm374_vm1, %v3120_v15  ;;  %2519 = vmatmul.msk.f32.gmra.mxu3 %vm374_vm1, %v3120_v15 }
  0x8c   : > { %2491 = vmatmul.msk.f32.gmra.mxu0 %vm374_vm1, %v3235_v32  ;;  %2495 = vmatmul.msk.f32.gmra.mxu1 %vm374_vm1, %v3120_v15 }
  0x8e   : > { %2508 = vmatmul.msk.f32.gmra.mxu2 %vm374_vm1, %v3137_v19  ;;  %2520 = vmatmul.msk.f32.gmra.mxu3 %vm374_vm1, %v3137_v19 }
  0x94   : > { %2492 = vmatmul.msk.f32.gmra.mxu0 %vm374_vm1, %v3248_v33  ;;  %2496 = vmatmul.msk.f32.gmra.mxu1 %vm374_vm1, %v3137_v19 }
  0x96   : > { %2509 = vmatmul.msk.f32.gmra.mxu2 %vm374_vm1, %v3152_v21  ;;  %2521 = vmatmul.msk.f32.gmra.mxu3 %vm374_vm1, %v3152_v21 }
  0x99   : > { %v3303_v35 = vpop.f32.mrf.mxu0  ;;  %v3305_v36 = vpop.f32.mrf.mxu1 }
  0x9c   : > { %2493 = vmatmul.msk.f32.gmra.mxu0 %vm374_vm1, %v3261_v34  ;;  %2497 = vmatmul.msk.f32.gmra.mxu1 %vm374_vm1, %v3152_v21 }
  0x9e   : > { %2510 = vmatmul.msk.f32.gmra.mxu2 %vm374_vm1, %v3167_v23  ;;  %2522 = vmatmul.msk.f32.gmra.mxu3 %vm374_vm1, %v3167_v23 }
  0xa1   : > { %v3315_v37 = vpop.f32.mrf.mxu0  ;;  %v3317_v38 = vpop.f32.mrf.mxu1 }
  0xa2   : > { %v3319_v39 = vpop.f32.mrf.mxu2  ;;  %v3321_v40 = vpop.f32.mrf.mxu3 }
  0xa4   : > { %2498 = vmatmul.msk.f32.gmra.mxu1 %vm374_vm1, %v3167_v23  ;;  %2530 = vmatmul.msk.f32.vlgmr.msra.gmra.mxu0 %vm374_vm1, %v3100_v7 }
  0xa6   : > { %2511 = vmatmul.msk.f32.gmra.mxu2 %vm374_vm1, %v3179_v24  ;;  %2523 = vmatmul.msk.f32.gmra.mxu3 %vm374_vm1, %v3179_v24 }
  0xa9   : > { %v3331_v41 = vpop.f32.mrf.mxu0  ;;  %v3333_v42 = vpop.f32.mrf.mxu1 }
  0xaa   : > { %v3335_v43 = vpop.f32.mrf.mxu2  ;;  %v3337_v44 = vpop.f32.mrf.mxu3 }
  0xac   : > { %2499 = vmatmul.msk.f32.gmra.mxu1 %vm374_vm1, %v3179_v24  ;;  %2531 = vmatmul.msk.f32.gmra.mxu0 %vm374_vm1, %v3120_v15 }
  0xae   : > { %2512 = vmatmul.msk.f32.gmra.mxu2 %vm374_vm1, %v3192_v25  ;;  %2524 = vmatmul.msk.f32.gmra.mxu3 %vm374_vm1, %v3192_v25 }
  0xb1   : > { %v3347_v45 = vpop.f32.mrf.mxu0  ;;  %v3349_v46 = vpop.f32.mrf.mxu1 }
  0xb2   : > { %v3351_v47 = vpop.f32.mrf.mxu2  ;;  %v3353_v48 = vpop.f32.mrf.mxu3 }
  0xb4   : > { %2500 = vmatmul.msk.f32.gmra.mxu1 %vm374_vm1, %v3192_v25  ;;  %2532 = vmatmul.msk.f32.gmra.mxu0 %vm374_vm1, %v3137_v19 }
  0xb6   : > { %2513 = vmatmul.msk.f32.gmra.mxu2 %vm374_vm1, %v3207_v28  ;;  %2525 = vmatmul.msk.f32.gmra.mxu3 %vm374_vm1, %v3207_v28 }
  0xb9   : > { %v3363_v49 = vpop.f32.mrf.mxu0  ;;  %v3365_v50 = vpop.f32.mrf.mxu1 }
  0xba   : > { %v3367_v51 = vpop.f32.mrf.mxu2  ;;  %v3369_v52 = vpop.f32.mrf.mxu3 }
  0xbc   : > { %2501 = vmatmul.msk.f32.gmra.mxu1 %vm374_vm1, %v3207_v28  ;;  %2533 = vmatmul.msk.f32.gmra.mxu0 %vm374_vm1, %v3152_v21 }
  0xbe   : > { %2514 = vmatmul.msk.f32.gmra.mxu2 %vm374_vm1, %v3222_v31  ;;  %2526 = vmatmul.msk.f32.gmra.mxu3 %vm374_vm1, %v3222_v31 }
  0xc1   : > { %v3379_v53 = vpop.f32.mrf.mxu1  ;;  %v3381_v54 = vpop.f32.mrf.mxu0 }
  0xc2   : > { %v3383_v55 = vpop.f32.mrf.mxu2  ;;  %v3385_v56 = vpop.f32.mrf.mxu3 }
  0xc4   : > { %2502 = vmatmul.msk.f32.gmra.mxu1 %vm374_vm1, %v3222_v31  ;;  %2534 = vmatmul.msk.f32.gmra.mxu0 %vm374_vm1, %v3167_v23 }
  0xc6   : > { %2515 = vmatmul.msk.f32.gmra.mxu2 %vm374_vm1, %v3235_v32  ;;  %2527 = vmatmul.msk.f32.gmra.mxu3 %vm374_vm1, %v3235_v32 }
  0xc9   : > { %v3395_v57 = vpop.f32.mrf.mxu1  ;;  %v3397_v58 = vpop.f32.mrf.mxu0 }
  0xca   : > { %v3399_v59 = vpop.f32.mrf.mxu2  ;;  %v3401_v60 = vpop.f32.mrf.mxu3 }
  0xcc   : > { %2503 = vmatmul.msk.f32.gmra.mxu1 %vm374_vm1, %v3235_v32  ;;  %2535 = vmatmul.msk.f32.gmra.mxu0 %vm374_vm1, %v3179_v24 }
  0xce   : > { %2516 = vmatmul.msk.f32.gmra.mxu2 %vm374_vm1, %v3248_v33  ;;  %2528 = vmatmul.msk.f32.gmra.mxu3 %vm374_vm1, %v3248_v33 }
  0xd1   : > { %v3411_v61 = vpop.f32.mrf.mxu1  ;;  %v3413_v62 = vpop.f32.mrf.mxu0 }
  0xd2   : > { %v3415_v63 = vpop.f32.mrf.mxu2  ;;  %v3417_v0 = vpop.f32.mrf.mxu3 }
  0xd4   : > { %2504 = vmatmul.msk.f32.gmra.mxu1 %vm374_vm1, %v3248_v33  ;;  %2536 = vmatmul.msk.f32.gmra.mxu0 %vm374_vm1, %v3192_v25 }
  0xd6   : > { %2517 = vmatmul.msk.f32.gmra.mxu2 %vm374_vm1, %v3261_v34  ;;  %2529 = vmatmul.msk.f32.gmra.mxu3 %vm374_vm1, %v3261_v34 }
  0xd9   : > { %v449_v1 = vpop.f32.mrf.mxu1  ;;  %v3427_v2 = vpop.f32.mrf.mxu0 }
  0xda   : > { %v502_v3 = vpop.f32.mrf.mxu2  ;;  %v555_v4 = vpop.f32.mrf.mxu3 }
  0xdc   : > { %2505 = vmatmul.msk.f32.gmra.mxu1 %vm374_vm1, %v3261_v34  ;;  %2537 = vmatmul.msk.f32.gmra.mxu0 %vm374_vm1, %v3207_v28 }
  0xe1   : > { %v452_v5 = vpop.f32.mrf.mxu1  ;;  %v3433_v6 = vpop.f32.mrf.mxu0 }
  0xe2   : > { %v505_v7 = vpop.f32.mrf.mxu2  ;;  %v558_v8 = vpop.f32.mrf.mxu3  ;;  %v849_v30 = vmul.f32 %v452_v5, %v3331_v41  ;;  %v904_v5 = vmul.f32 %v555_v4, %v3315_v37 }
  0xe4   : > { %2538 = vmatmul.msk.f32.gmra.mxu0 %vm374_vm1, %v3222_v31  ;;  %v879_v31 = vmul.f32 %v505_v7, %v3331_v41  ;;  %v847_v7 = vmul.f32 %v3411_v61, %v3303_v35 }
  0xe9   : > { %v455_v9 = vpop.f32.mrf.mxu1  ;;  %v3437_v10 = vpop.f32.mrf.mxu0 }
  0xea   : > { %v508_v11 = vpop.f32.mrf.mxu2  ;;  %v561_v12 = vpop.f32.mrf.mxu3  ;;  %v850_v27 = vmul.f32 %v455_v9, %v3347_v45  ;;  %v848_v9 = vmul.f32 %v449_v1, %v3315_v37  ;;  %v903_v1 = vmul.f32 %v3417_v0, %v3303_v35 }
  0xeb   : > { %v880_v28 = vmul.f32 %v508_v11, %v3347_v45  ;;  %v906_v29 = vmul.f32 %v561_v12, %v3347_v45  ;;  %v878_v12 = vmul.f32 %v502_v3, %v3315_v37 }
  0xec   : > { %2539 = vmatmul.msk.f32.gmra.mxu0 %vm374_vm1, %v3235_v32  ;;  %v905_v32 = vmul.f32 %v558_v8, %v3331_v41  ;;  %v877_v8 = vmul.f32 %v3415_v63, %v3303_v35 }
  0xf1   : > { %v458_v13 = vpop.f32.mrf.mxu1  ;;  %v3441_v14 = vpop.f32.mrf.mxu0 }
  0xf2   : > { %v511_v15 = vpop.f32.mrf.mxu2  ;;  %v564_v16 = vpop.f32.mrf.mxu3  ;;  %v851_v24 = vmul.f32 %v458_v13, %v3363_v49 }
  0xf3   : > { %v881_v25 = vmul.f32 %v511_v15, %v3363_v49  ;;  %v907_v26 = vmul.f32 %v564_v16, %v3363_v49 }
  0xf4   : > { %2540 = vmatmul.msk.f32.gmra.mxu0 %vm374_vm1, %v3248_v33 }
  0xf9   : > { %v461_v17 = vpop.f32.mrf.mxu1  ;;  %v3445_v18 = vpop.f32.mrf.mxu0 }
  0xfa   : > { %v852_v19 = vmul.f32 %v461_v17, %v3305_v36  ;;  %v514_v20 = vpop.f32.mrf.mxu2  ;;  %v567_v21 = vpop.f32.mrf.mxu3 }
  0xfb   : > { %v882_v22 = vmul.f32 %v514_v20, %v3305_v36  ;;  %v908_v23 = vmul.f32 %v567_v21, %v3305_v36 }
  0xfc   : > { %2541 = vmatmul.msk.f32.gmra.mxu0 %vm374_vm1, %v3261_v34  ;;  %867 = vmatpush.msrb.mxu1 %v852_v19 }
  0xfd   : > { %893 = vmatpush.msra.mxu2 %v882_v22  ;;  %919 = vmatpush.msra.mxu3 %v908_v23 }
  0xfe   : > { %868 = vmatpush.msrb.mxu1 %v851_v24 }
  0xff   : > { %894 = vmatpush.msra.mxu2 %v881_v25  ;;  %920 = vmatpush.msra.mxu3 %v907_v26 }
 0x100   : > { %869 = vmatpush.msrb.mxu1 %v850_v27 }
 0x101   : > { %895 = vmatpush.msra.mxu2 %v880_v28  ;;  %921 = vmatpush.msra.mxu3 %v906_v29  ;;  %v611_v33 = vpop.f32.mrf.mxu0  ;;  %v3461_v34 = vpop.f32.mrf.mxu1  ;;  %v930_v29 = vmul.f32 %v3445_v18, %v3315_v37 }
 0x102   : > { %v3464_v13 = vpop.f32.mrf.mxu2  ;;  %v3466_v11 = vpop.f32.mrf.mxu3  ;;  %870 = vmatpush.msrb.mxu1 %v849_v30  ;;  %v931_v26 = vmul.f32 %v611_v33, %v3331_v41 }
 0x103   : > { %4319 = vst [vmem:[#allocation5_spill] sm:$0xff] %v3464_v13  ;;  %896 = vmatpush.msra.mxu2 %v879_v31  ;;  %922 = vmatpush.msra.mxu3 %v905_v32  ;;  %v929_v32 = vmul.f32 %v3441_v14, %v3303_v35 }
 0x104   : > { %4320 = vst [vmem:[#allocation6_spill] sm:$0xff] %v3466_v11  ;;  %871 = vmatpush.msrb.mxu1 %v848_v9 }
 0x105   : > { %897 = vmatpush.msra.mxu2 %v878_v12  ;;  %923 = vmatpush.msra.mxu3 %v904_v5 }
 0x106   : > { %872 = vmatpush.msrb.mxu1 %v847_v7 }
 0x107   : > { %898 = vmatpush.msra.mxu2 %v877_v8  ;;  %924 = vmatpush.msra.mxu3 %v903_v1 }
 0x109   : > { %v614_v3 = vpop.f32.mrf.mxu0  ;;  %v3476_v15 = vpop.f32.mrf.mxu1 }
 0x10a   : > { %v3478_v4 = vpop.f32.mrf.mxu2  ;;  %v3480_v16 = vpop.f32.mrf.mxu3  ;;  %v932_v25 = vmul.f32 %v614_v3, %v3347_v45  ;;  %v835_v3 = vlaneseq }
 0x10b   : > { %4321 = vst [vmem:[#allocation7_spill] sm:$0xff] %v3478_v4 }
 0x10c   : > { %4322 = vst [vmem:[#allocation8_spill] sm:$0xff] %v3480_v16  ;;  %v3526_v14 = vshrl.u32 %v835_v3, 7 }
 0x111   : > { %v617_v61 = vpop.f32.mrf.mxu0  ;;  %v3482_v17 = vpop.f32.mrf.mxu1 }
 0x112   : > { %v3484_v19 = vpop.f32.mrf.mxu2  ;;  %v3486_v63 = vpop.f32.mrf.mxu3  ;;  %v933_v24 = vmul.f32 %v617_v61, %v3363_v49  ;;  %v841_v61 = vadd.s32 1, %v3526_v14 }
 0x113   : > { %4323 = vst [vmem:[#allocation9_spill] sm:$0xff] %v3484_v19 }
 0x114   : > { %4324 = vst [vmem:[#allocation10_spill] sm:$0xff] %v3486_v63 }
 0x119   : > { %v620_v0 = vpop.f32.mrf.mxu0  ;;  %v3488_v20 = vpop.f32.mrf.mxu1 }
 0x11a   : > { %4325 = vst [vmem:[#allocation11_spill] sm:$0xff] %v3488_v20  ;;  %v934_v21 = vmul.f32 %v620_v0, %v3305_v36  ;;  %v3491_v22 = vpop.f32.mrf.mxu2  ;;  %v3493_v23 = vpop.f32.mrf.mxu3  ;;  %v3529_v0 = vand.u32 127, %v835_v3 }
 0x11b   : > { %4326 = vst [vmem:[#allocation12_spill] sm:$0xff] %v3491_v22 }
 0x11c   : > { %4327 = vst [vmem:[#allocation13_spill] sm:$0xff] %v3493_v23  ;;  %945 = vmatpush.msra.mxu1 %v934_v21  ;;  %v839_v21 = vmul.u32 24, %v3526_v14 }
 0x11d   : > { %4334 = vst [vmem:[#allocation20_spill] sm:$0xff] %v3529_v0 }
 0x11e   : > { %946 = vmatpush.msra.mxu1 %v933_v24  ;;  %v842_v24 = vmul.u32 24, %v841_v61  ;;  %vm840_vm2 = vcmp.ge.s32.totalorder %v3529_v0, %v839_v21 }
 0x120   : > { %947 = vmatpush.msra.mxu1 %v932_v25  ;;  %vm843_vm3 = vcmp.lt.s32.totalorder %v3529_v0, %v842_v24 }
 0x121   : > { %v3498_v27 = vpop.f32.mrf.mxu1  ;;  %v3500_v28 = vpop.f32.mrf.mxu0  ;;  %vm844_vm4 = vmand %vm840_vm2, %vm843_vm3 }
 0x122   : > { %4328 = vst [vmem:[#allocation14_spill] sm:$0xff] %v3498_v27  ;;  %v3504_v30 = vpop.f32.mrf.mxu2  ;;  %v3506_v31 = vpop.f32.mrf.mxu3  ;;  %948 = vmatpush.msra.mxu1 %v931_v26 }
 0x123   : > { %4329 = vst [vmem:[#allocation15_spill] sm:$0xff] %v3504_v30 }
 0x124   : > { %4330 = vst [vmem:[#allocation16_spill] sm:$0xff] %v3506_v31  ;;  %949 = vmatpush.msra.mxu1 %v930_v29 }
 0x126   : > { %950 = vmatpush.msra.mxu1 %v929_v32 }
 0x129   : > { %v3510_v9 = vpop.f32.mrf.mxu1  ;;  %v3512_v33 = vpop.f32.mrf.mxu0 }
 0x12a   : > { %4331 = vst [vmem:[#allocation17_spill] sm:$0xff] %v3510_v9  ;;  %v3514_v12 = vpop.f32.mrf.mxu2  ;;  %v3516_v5 = vpop.f32.mrf.mxu3 }
 0x12b   : > { %4332 = vst [vmem:[#allocation18_spill] sm:$0xff] %v3514_v12 }
 0x12c   : > { %4333 = vst [vmem:[#allocation19_spill] sm:$0xff] %v3516_v5  ;;  %v4315_v5 = vmov 0.0  }
 0x12d   : > { %v3537_v31 = vsel %vm844_vm4, 1.0, %v4315_v5 }
 0x12e   : > { %2543 = vmatmul.msk.f32.vlgmr.msrb.gmra.mxu1 %vm853_vm5, %v3537_v31  ;;  %2544 = vmatmul.msk.f32.vlgmr.msra.gmra.mxu2 %vm853_vm5, %v3537_v31 }
 0x12f   : > { %2545 = vmatmul.msk.f32.vlgmr.msra.gmra.mxu3 %vm853_vm5, %v3537_v31 }
 0x131   : > { %v3518_v7 = vpop.f32.mrf.mxu1  ;;  %v3520_v18 = vpop.f32.mrf.mxu0 }
 0x132   : > { %v3522_v8 = vpop.f32.mrf.mxu2  ;;  %v3524_v1 = vpop.f32.mrf.mxu3 }
 0x136   : > { %2546 = vmatmul.msk.f32.vlgmr.msra.gmra.mxu1 %vm853_vm5, %v3537_v31 }
 0x139   : > { %v661_v25 = vpop.f32.mrf.mxu1  ;;  %v3532_v26 = vpop.f32.mrf.mxu0 }
 0x13a   : > { %4335 = vst [vmem:[#allocation21_spill] sm:$0xff] %v3532_v26  ;;  %v714_v29 = vpop.f32.mrf.mxu2  ;;  %v767_v32 = vpop.f32.mrf.mxu3 }
 0x141   : > { %v664_v3 = vpop.f32.mrf.mxu1  ;;  %v3545_v61 = vpop.f32.mrf.mxu0 }
 0x142   : > { %4336 = vst [vmem:[#allocation22_spill] sm:$0xff] %v3545_v61  ;;  %v717_v21 = vpop.f32.mrf.mxu2  ;;  %v770_v24 = vpop.f32.mrf.mxu3 }
 0x149   : > { %v667_v0 = vpop.f32.mrf.mxu1  ;;  %v3549_v5 = vpop.f32.mrf.mxu0 }
 0x14a   : > { %4337 = vst [vmem:[#allocation23_spill] sm:$0xff] %v3549_v5  ;;  %v720_v26 = vpop.f32.mrf.mxu2  ;;  %v773_v23 = vpop.f32.mrf.mxu3 }
 0x151   : > { %v670_v63 = vpop.f32.mrf.mxu1  ;;  %v3551_v16 = vpop.f32.mrf.mxu0 }
 0x152   : > { %v723_v11 = vpop.f32.mrf.mxu2  ;;  %v776_v12 = vpop.f32.mrf.mxu3  ;;  %v959_v5 = vmul.f32 %v670_v63, %v3363_v49  ;;  %v3570_v63 = vld [vmem:[%s283_s28] sm:$0xff] }
 0x153   : > { %v985_v27 = vmul.f32 %v723_v11, %v3363_v49  ;;  %v1011_v20 = vmul.f32 %v776_v12, %v3363_v49  ;;  %v957_v11 = vmul.f32 %v664_v3, %v3331_v41  ;;  %v3588_v3 = vperm.slane %v3570_v63, 2 }
 0x159   : > { %v673_v30 = vpop.f32.mrf.mxu1  ;;  %v3553_v22 = vpop.f32.mrf.mxu0 }
 0x15a   : > { %v960_v61 = vmul.f32 %v673_v30, %v3305_v36  ;;  %v726_v19 = vpop.f32.mrf.mxu2  ;;  %v779_v4 = vpop.f32.mrf.mxu3  ;;  %v958_v30 = vmul.f32 %v667_v0, %v3347_v45  ;;  %v955_v0 = vmul.f32 %v3518_v7, %v3303_v35  ;;  %v3595_v7 = vadd.s32 120, %v3526_v14 }
 0x15b   : > { %v986_v13 = vmul.f32 %v726_v19, %v3305_v36  ;;  %v1012_v9 = vmul.f32 %v779_v4, %v3305_v36  ;;  %v984_v19 = vmul.f32 %v720_v26, %v3347_v45  ;;  %v1010_v4 = vmul.f32 %v773_v23, %v3347_v45 }
 0x15c   : > { %971 = vmatpush.msrb.mxu2 %v960_v61  ;;  %v982_v23 = vmul.f32 %v714_v29, %v3315_v37  ;;  %v3585_v26 = vperm.slane %v3570_v63, 1  ;;  %v1007_v29 = vmul.f32 %v3524_v1, %v3303_v35  ;;  %vm1311_vm8 = vcmp.eq.s32.totalorder %v3588_v3, %v3595_v7 }
 0x15d   : > { %997 = vmatpush.msrb.mxu3 %v986_v13  ;;  %1023 = vmatpush.msrb.mxu1 %v1012_v9  ;;  %v983_v13 = vmul.f32 %v717_v21, %v3331_v41  ;;  %v1009_v9 = vmul.f32 %v770_v24, %v3331_v41  ;;  %v2978_v1 = vmov 1.0   ;;  %v3622_v61 = vadd.s32 104, %v3526_v14 }
 0x15e   : > { %972 = vmatpush.msrb.mxu2 %v959_v5  ;;  %v956_v5 = vmul.f32 %v661_v25, %v3315_v37  ;;  %v981_v25 = vmul.f32 %v3522_v8, %v3303_v35  ;;  %vm1208_vm6 = vcmp.eq.s32.totalorder %v3585_v26, %v3595_v7  ;;  %v3634_v21 = vadd.s32 96, %v3526_v14 }
 0x15f   : > { %998 = vmatpush.msrb.mxu3 %v985_v27  ;;  %1024 = vmatpush.msrb.mxu1 %v1011_v20  ;;  %v1008_v20 = vmul.f32 %v767_v32, %v3315_v37  ;;  %v3580_v27 = vperm.slane %v3570_v63, 0  ;;  %v3602_v32 = vadd.s32 112, %v3526_v14  ;;  %vm1206_vm12 = vcmp.eq.s32.totalorder %v3585_v26, %v3622_v61 }
 0x160   : > { %973 = vmatpush.msrb.mxu2 %v958_v30  ;;  %2583 = vmatpush.xpose.msk.msrb.mxu0 %vm1208_vm6, %v2978_v1  ;;  %vm1309_vm14 = vcmp.eq.s32.totalorder %v3588_v3, %v3622_v61  ;;  %vm1205_vm15 = vcmp.eq.s32.totalorder %v3585_v26, %v3634_v21  ;;  %vm1308_vm2 = vcmp.eq.s32.totalorder %v3588_v3, %v3634_v21  ;;  %v3646_v30 = vadd.s32 88, %v3526_v14 }
 0x161   : > { %999 = vmatpush.msrb.mxu3 %v984_v19  ;;  %1025 = vmatpush.msrb.mxu1 %v1010_v4  ;;  %v3574_v12 = vpop.f32.mrf.mxu0  ;;  %vm1151_vm7 = vcmp.eq.s32.totalorder %v3580_v27, %v3595_v7  ;;  %vm1207_vm9 = vcmp.eq.s32.totalorder %v3585_v26, %v3602_v32  ;;  %vm1150_vm10 = vcmp.eq.s32.totalorder %v3580_v27, %v3602_v32  ;;  %v3658_v19 = vadd.s32 80, %v3526_v14 }
 0x162   : > { %974 = vmatpush.msrb.mxu2 %v957_v11  ;;  %vm1310_vm11 = vcmp.eq.s32.totalorder %v3588_v3, %v3602_v32  ;;  %vm1149_vm13 = vcmp.eq.s32.totalorder %v3580_v27, %v3622_v61  ;;  %vm1148_vm1 = vcmp.eq.s32.totalorder %v3580_v27, %v3634_v21  ;;  %vm1204_vm3 = vcmp.eq.s32.totalorder %v3585_v26, %v3646_v30 }
 0x163   : > { %1000 = vmatpush.msrb.mxu3 %v983_v13  ;;  %1026 = vmatpush.msrb.mxu1 %v1009_v9  ;;  %vm1147_vm4 = vcmp.eq.s32.totalorder %v3580_v27, %v3646_v30  ;;  %vm1307_vm6 = vcmp.eq.s32.totalorder %v3588_v3, %v3646_v30 }
 0x164   : > { %975 = vmatpush.msrb.mxu2 %v956_v5  ;;  %2584 = vmatpush.xpose.msk.msrb.mxu0 %vm1207_vm9, %v2978_v1  ;;  %vm1306_vm9 = vcmp.eq.s32.totalorder %v3588_v3, %v3658_v19  ;;  %v3690_v5 = vperm.slane %v3570_v63, 3 }
 0x165   : > { %1001 = vmatpush.msrb.mxu3 %v982_v23  ;;  %1027 = vmatpush.msrb.mxu1 %v1008_v20  ;;  %v1034_v23 = vmul.f32 %v3553_v22, %v3315_v37  ;;  %v3736_v37 = vadd.s32 40, %v3526_v14  ;;  %v3776_v22 = vadd.s32 24, %v3526_v14  ;;  %v3808_v20 = vadd.s32 8, %v3526_v14 }
 0x166   : > { %976 = vmatpush.msrb.mxu2 %v955_v0  ;;  %v3840_v0 = vperm.slane %v3570_v63, 4 }
 0x167   : > { %1002 = vmatpush.msrb.mxu3 %v981_v25  ;;  %1028 = vmatpush.msrb.mxu1 %v1007_v29  ;;  %v3843_v25 = vperm.slane %v3570_v63, 5  ;;  %v3846_v29 = vperm.slane %v3570_v63, 6 }
 0x168   : > { %2547 = vmatmul.msk.f32.vlgmr.msrb.gmra.mxu2 %vm853_vm5, %v3537_v31  ;;  %2548 = vmatmul.msk.f32.vlgmr.msrb.gmra.mxu3 %vm853_vm5, %v3537_v31 }
 0x169   : > { %v826_v8 = vpop.f32.mrf.mxu0  ;;  %2549 = vmatmul.msk.f32.vlgmr.msrb.gmra.mxu1 %vm853_vm5, %v3537_v31  ;;  %2599 = vmatpush.xpose.msk.msra.mxu3 %vm1151_vm7, %v2978_v1  ;;  %vm1203_vm7 = vcmp.eq.s32.totalorder %v3585_v26, %v3658_v19 }
 0x16a   : > { %2631 = vmatpush.xpose.msk.msra.mxu1 %vm1311_vm8, %v2978_v1  ;;  %2585 = vmatpush.xpose.msk.msrb.mxu0 %vm1206_vm12, %v2978_v1  ;;  %vm1146_vm8 = vcmp.eq.s32.totalorder %v3580_v27, %v3658_v19  ;;  %v1036_v9 = vmul.f32 %v826_v8, %v3347_v45  ;;  %v3687_v45 = vadd.s32 64, %v3526_v14  ;;  %v3849_v8 = vperm.slane %v3570_v63, 7 }
 0x16d   : > { %2600 = vmatpush.xpose.msk.msra.mxu3 %vm1150_vm10, %v2978_v1 }
 0x16e   : > { %2632 = vmatpush.xpose.msk.msra.mxu1 %vm1310_vm11, %v2978_v1  ;;  %2586 = vmatpush.xpose.msk.msrb.mxu0 %vm1205_vm15, %v2978_v1  ;;  %vm1395_vm15 = vcmp.eq.s32.totalorder %v3690_v5, %v3595_v7 }
 0x171   : > { %v829_v24 = vpop.f32.mrf.mxu0  ;;  %2601 = vmatpush.xpose.msk.msra.mxu3 %vm1149_vm13, %v2978_v1  ;;  %vm1201_vm13 = vcmp.eq.s32.totalorder %v3585_v26, %v3687_v45 }
 0x172   : > { %2633 = vmatpush.xpose.msk.msra.mxu1 %vm1309_vm14, %v2978_v1  ;;  %2587 = vmatpush.xpose.msk.msrb.mxu0 %vm1204_vm3, %v2978_v1  ;;  %v1037_v13 = vmul.f32 %v829_v24, %v3363_v49  ;;  %v1035_v49 = vmul.f32 %v3574_v12, %v3331_v41  ;;  %v1033_v41 = vmul.f32 %v3551_v16, %v3303_v35  ;;  %v3704_v12 = vadd.s32 56, %v3526_v14 }
 0x173   : > { %vm1144_vm14 = vcmp.eq.s32.totalorder %v3580_v27, %v3687_v45  ;;  %v3721_v35 = vadd.s32 48, %v3526_v14  ;;  %v3751_v16 = vadd.s32 32, %v3526_v14 }
 0x174   : > { %vm1143_vm3 = vcmp.eq.s32.totalorder %v3580_v27, %v3704_v12 }
 0x175   : > { %2602 = vmatpush.xpose.msk.msra.mxu3 %vm1148_vm1, %v2978_v1  ;;  %vm1304_vm1 = vcmp.eq.s32.totalorder %v3588_v3, %v3687_v45 }
 0x176   : > { %2634 = vmatpush.xpose.msk.msra.mxu1 %vm1308_vm2, %v2978_v1  ;;  %2588 = vmatpush.xpose.msk.msrb.mxu0 %vm1203_vm7, %v2978_v1  ;;  %vm1200_vm2 = vcmp.eq.s32.totalorder %v3585_v26, %v3704_v12  ;;  %vm1142_vm7 = vcmp.eq.s32.totalorder %v3580_v27, %v3721_v35 }
 0x179   : > { %v832_v4 = vpop.f32.mrf.mxu0  ;;  %2603 = vmatpush.xpose.msk.msra.mxu3 %vm1147_vm4, %v2978_v1  ;;  %vm1394_vm4 = vcmp.eq.s32.totalorder %v3690_v5, %v3602_v32 }
 0x17a   : > { %v1038_v11 = vmul.f32 %v832_v4, %v3305_v36  ;;  %2635 = vmatpush.xpose.msk.msra.mxu1 %vm1307_vm6, %v2978_v1  ;;  %v3672_v36 = vadd.s32 72, %v3526_v14  ;;  %vm1199_vm6 = vcmp.eq.s32.totalorder %v3585_v26, %v3721_v35 }
 0x17c   : > { %1049 = vmatpush.msra.mxu2 %v1038_v11  ;;  %vm1202_vm10 = vcmp.eq.s32.totalorder %v3585_v26, %v3672_v36  ;;  %vm1145_vm11 = vcmp.eq.s32.totalorder %v3580_v27, %v3672_v36  ;;  %vm1305_vm12 = vcmp.eq.s32.totalorder %v3588_v3, %v3672_v36 }
 0x17d   : > { %2604 = vmatpush.xpose.msk.msra.mxu3 %vm1146_vm8, %v2978_v1  ;;  %2589 = vmatpush.xpose.msk.msrb.mxu0 %vm1202_vm10, %v2978_v1  ;;  %vm1393_vm8 = vcmp.eq.s32.totalorder %v3690_v5, %v3622_v61  ;;  %vm1198_vm10 = vcmp.eq.s32.totalorder %v3585_v26, %v3736_v37 }
 0x17e   : > { %1050 = vmatpush.msra.mxu2 %v1037_v13  ;;  %2636 = vmatpush.xpose.msk.msra.mxu1 %vm1306_vm9, %v2978_v1  ;;  %vm1302_vm9 = vcmp.eq.s32.totalorder %v3588_v3, %v3721_v35 }
 0x180   : > { %1051 = vmatpush.msra.mxu2 %v1036_v9 }
 0x181   : > { %2605 = vmatpush.xpose.msk.msra.mxu3 %vm1145_vm11, %v2978_v1  ;;  %2590 = vmatpush.xpose.msk.msrb.mxu0 %vm1201_vm13, %v2978_v1  ;;  %vm1141_vm11 = vcmp.eq.s32.totalorder %v3580_v27, %v3736_v37  ;;  %vm1301_vm13 = vcmp.eq.s32.totalorder %v3588_v3, %v3736_v37 }
 0x182   : > { %1052 = vmatpush.msra.mxu2 %v1035_v49  ;;  %2637 = vmatpush.xpose.msk.msra.mxu1 %vm1305_vm12, %v2978_v1  ;;  %vm1392_vm12 = vcmp.eq.s32.totalorder %v3690_v5, %v3634_v21 }
 0x184   : > { %1053 = vmatpush.msra.mxu2 %v1034_v23 }
 0x185   : > { %2606 = vmatpush.xpose.msk.msra.mxu3 %vm1144_vm14, %v2978_v1  ;;  %2591 = vmatpush.xpose.msk.msrb.mxu0 %vm1200_vm2, %v2978_v1  ;;  %vm1197_vm14 = vcmp.eq.s32.totalorder %v3585_v26, %v3751_v16  ;;  %vm1300_vm2 = vcmp.eq.s32.totalorder %v3588_v3, %v3751_v16 }
 0x186   : > { %1054 = vmatpush.msra.mxu2 %v1033_v41  ;;  %2638 = vmatpush.xpose.msk.msra.mxu1 %vm1304_vm1, %v2978_v1  ;;  %vm1391_vm1 = vcmp.eq.s32.totalorder %v3690_v5, %v3646_v30 }
 0x187   : > { %2550 = vmatmul.msk.f32.vlgmr.msra.gmra.mxu2 %vm853_vm5, %v3537_v31  ;;  %vm1303_vm5 = vcmp.eq.s32.totalorder %v3588_v3, %v3704_v12  ;;  %v3794_v31 = vadd.s32 16, %v3526_v14 }
 0x188   : > { %2663 = vmatpush.xpose.msk.msrb.mxu2 %vm1395_vm15, %v2978_v1  ;;  %vm1140_vm15 = vcmp.eq.s32.totalorder %v3580_v27, %v3751_v16 }
 0x189   : > { %2607 = vmatpush.xpose.msk.msra.mxu3 %vm1143_vm3, %v2978_v1  ;;  %2592 = vmatpush.xpose.msk.msrb.mxu0 %vm1199_vm6, %v2978_v1  ;;  %vm1390_vm3 = vcmp.eq.s32.totalorder %v3690_v5, %v3658_v19  ;;  %vm1299_vm6 = vcmp.eq.s32.totalorder %v3588_v3, %v3776_v22 }
 0x18a   : > { %2639 = vmatpush.xpose.msk.msra.mxu1 %vm1303_vm5, %v2978_v1  ;;  %vm1139_vm5 = vcmp.eq.s32.totalorder %v3580_v27, %v3776_v22 }
 0x18c   : > { %2664 = vmatpush.xpose.msk.msrb.mxu2 %vm1394_vm4, %v2978_v1  ;;  %vm1196_vm4 = vcmp.eq.s32.totalorder %v3585_v26, %v3776_v22 }
 0x18d   : > { %2608 = vmatpush.xpose.msk.msra.mxu3 %vm1142_vm7, %v2978_v1  ;;  %2593 = vmatpush.xpose.msk.msrb.mxu0 %vm1198_vm10, %v2978_v1  ;;  %vm1389_vm7 = vcmp.eq.s32.totalorder %v3690_v5, %v3672_v36  ;;  %vm1195_vm10 = vcmp.eq.s32.totalorder %v3585_v26, %v3794_v31 }
 0x18e   : > { %2640 = vmatpush.xpose.msk.msra.mxu1 %vm1302_vm9, %v2978_v1  ;;  %vm1387_vm9 = vcmp.eq.s32.totalorder %v3690_v5, %v3704_v12 }
 0x190   : > { %2665 = vmatpush.xpose.msk.msrb.mxu2 %vm1393_vm8, %v2978_v1  ;;  %vm1388_vm8 = vcmp.eq.s32.totalorder %v3690_v5, %v3687_v45 }
 0x191   : > { %2609 = vmatpush.xpose.msk.msra.mxu3 %vm1141_vm11, %v2978_v1  ;;  %2594 = vmatpush.xpose.msk.msrb.mxu0 %vm1197_vm14, %v2978_v1  ;;  %vm1138_vm11 = vcmp.eq.s32.totalorder %v3580_v27, %v3794_v31  ;;  %vm1137_vm14 = vcmp.eq.s32.totalorder %v3580_v27, %v3808_v20 }
 0x192   : > { %2641 = vmatpush.xpose.msk.msra.mxu1 %vm1301_vm13, %v2978_v1  ;;  %vm1194_vm13 = vcmp.eq.s32.totalorder %v3585_v26, %v3808_v20 }
 0x194   : > { %2666 = vmatpush.xpose.msk.msrb.mxu2 %vm1392_vm12, %v2978_v1  ;;  %vm1298_vm12 = vcmp.eq.s32.totalorder %v3588_v3, %v3794_v31 }
 0x195   : > { %2610 = vmatpush.xpose.msk.msra.mxu3 %vm1140_vm15, %v2978_v1  ;;  %2595 = vmatpush.xpose.msk.msrb.mxu0 %vm1196_vm4, %v2978_v1  ;;  %vm1297_vm15 = vcmp.eq.s32.totalorder %v3588_v3, %v3808_v20  ;;  %vm1383_vm4 = vcmp.eq.s32.totalorder %v3690_v5, %v3776_v22 }
 0x196   : > { %2642 = vmatpush.xpose.msk.msra.mxu1 %vm1300_vm2, %v2978_v1  ;;  %vm1385_vm2 = vcmp.eq.s32.totalorder %v3690_v5, %v3736_v37 }
 0x198   : > { %2667 = vmatpush.xpose.msk.msrb.mxu2 %vm1391_vm1, %v2978_v1  ;;  %vm1386_vm1 = vcmp.eq.s32.totalorder %v3690_v5, %v3721_v35 }
 0x199   : > { %2611 = vmatpush.xpose.msk.msra.mxu3 %vm1139_vm5, %v2978_v1  ;;  %2596 = vmatpush.xpose.msk.msrb.mxu0 %vm1195_vm10, %v2978_v1  ;;  %vm1382_vm5 = vcmp.eq.s32.totalorder %v3690_v5, %v3794_v31  ;;  %vm1380_vm10 = vcmp.eq.s32.totalorder %v3690_v5, %v3526_v14 }
 0x19a   : > { %2643 = vmatpush.xpose.msk.msra.mxu1 %vm1299_vm6, %v2978_v1  ;;  %vm1381_vm6 = vcmp.eq.s32.totalorder %v3690_v5, %v3808_v20 }
 0x19c   : > { %2668 = vmatpush.xpose.msk.msrb.mxu2 %vm1390_vm3, %v2978_v1  ;;  %vm1384_vm3 = vcmp.eq.s32.totalorder %v3690_v5, %v3751_v16 }
 0x19d   : > { %2612 = vmatpush.xpose.msk.msra.mxu3 %vm1138_vm11, %v2978_v1  ;;  %2597 = vmatpush.xpose.msk.msrb.mxu0 %vm1194_vm13, %v2978_v1  ;;  %vm1479_vm11 = vcmp.eq.s32.totalorder %v3840_v0, %v3595_v7  ;;  %vm1647_vm13 = vcmp.eq.s32.totalorder %v3846_v29, %v3595_v7 }
 0x19e   : > { %2644 = vmatpush.xpose.msk.msra.mxu1 %vm1298_vm12, %v2978_v1  ;;  %vm1563_vm12 = vcmp.eq.s32.totalorder %v3843_v25, %v3595_v7 }
 0x1a0   : > { %2669 = vmatpush.xpose.msk.msrb.mxu2 %vm1389_vm7, %v2978_v1  ;;  %vm1193_vm7 = vcmp.eq.s32.totalorder %v3585_v26, %v3526_v14 }
 0x1a1   : > { %2613 = vmatpush.xpose.msk.msra.mxu3 %vm1137_vm14, %v2978_v1  ;;  %2598 = vmatpush.xpose.msk.msrb.mxu0 %vm1193_vm7, %v2978_v1  ;;  %vm1731_vm14 = vcmp.eq.s32.totalorder %v3849_v8, %v3595_v7  ;;  %vm1729_vm7 = vcmp.eq.s32.totalorder %v3849_v8, %v3622_v61 }
 0x1a2   : > { %2645 = vmatpush.xpose.msk.msra.mxu1 %vm1297_vm15, %v2978_v1  ;;  %vm1478_vm15 = vcmp.eq.s32.totalorder %v3840_v0, %v3602_v32 }
 0x1a4   : > { %2670 = vmatpush.xpose.msk.msrb.mxu2 %vm1388_vm8, %v2978_v1  ;;  %vm1136_vm8 = vcmp.eq.s32.totalorder %v3580_v27, %v3526_v14 }
 0x1a5   : > { %2614 = vmatpush.xpose.msk.msra.mxu3 %vm1136_vm8, %v2978_v1  ;;  %2695 = vmatpush.xpose.msk.msra.mxu0 %vm1479_vm11, %v2978_v1  ;;  %vm1476_vm8 = vcmp.eq.s32.totalorder %v3840_v0, %v3634_v21  ;;  %vm1728_vm11 = vcmp.eq.s32.totalorder %v3849_v8, %v3634_v21 }
 0x1a8   : > { %2671 = vmatpush.xpose.msk.msrb.mxu2 %vm1387_vm9, %v2978_v1  ;;  %vm1296_vm9 = vcmp.eq.s32.totalorder %v3588_v3, %v3526_v14 }
 0x1a9   : > { %2646 = vmatpush.xpose.msk.msra.mxu1 %vm1296_vm9, %v2978_v1  ;;  %2727 = vmatpush.xpose.msk.msrb.mxu3 %vm1563_vm12, %v2978_v1  ;;  %vm1560_vm9 = vcmp.eq.s32.totalorder %v3843_v25, %v3634_v21  ;;  %vm1475_vm12 = vcmp.eq.s32.totalorder %v3840_v0, %v3646_v30 }
 0x1aa   : > { %2696 = vmatpush.xpose.msk.msra.mxu0 %vm1478_vm15, %v2978_v1  ;;  %vm1727_vm15 = vcmp.eq.s32.totalorder %v3849_v8, %v3646_v30 }
 0x1ab   : > { %v3897_v63 = vpop.f32.mrf.mxu1 }
 0x1ac   : > { %2672 = vmatpush.xpose.msk.msrb.mxu2 %vm1386_vm1, %v2978_v1  ;;  %vm1562_vm1 = vcmp.eq.s32.totalorder %v3843_v25, %v3602_v32 }
 0x1ad   : > { %2759 = vmatpush.xpose.msk.msrb.mxu1 %vm1647_vm13, %v2978_v1  ;;  %2728 = vmatpush.xpose.msk.msrb.mxu3 %vm1562_vm1, %v2978_v1  ;;  %vm1559_vm13 = vcmp.eq.s32.totalorder %v3843_v25, %v3646_v30  ;;  %vm1474_vm1 = vcmp.eq.s32.totalorder %v3840_v0, %v3658_v19 }
 0x1b0   : > { %2673 = vmatpush.xpose.msk.msrb.mxu2 %vm1385_vm2, %v2978_v1  ;;  %vm1646_vm2 = vcmp.eq.s32.totalorder %v3846_v29, %v3602_v32 }
 0x1b1   : > { %2760 = vmatpush.xpose.msk.msrb.mxu1 %vm1646_vm2, %v2978_v1  ;;  %v3901_v27 = vpop.f32.mrf.mxu2  ;;  %vm1558_vm2 = vcmp.eq.s32.totalorder %v3843_v25, %v3658_v19 }
 0x1b2   : > { %v1059_v26 = vmax.f32 %v3897_v63, %v3901_v27  ;;  %v3917_v3 = vpop.f32.mrf.mxu3 }
 0x1b4   : > { %2674 = vmatpush.xpose.msk.msrb.mxu2 %vm1384_vm3, %v2978_v1  ;;  %vm1730_vm3 = vcmp.eq.s32.totalorder %v3849_v8, %v3602_v32  ;;  %v1060_v7 = vmax.f32 %v1059_v26, %v3917_v3  ;;  %v3932_v32 = vpop.f32.mrf.mxu1 }
 0x1b8   : > { %2675 = vmatpush.xpose.msk.msrb.mxu2 %vm1383_vm4, %v2978_v1  ;;  %vm1477_vm4 = vcmp.eq.s32.totalorder %v3840_v0, %v3622_v61 }
 0x1b9   : > { %2697 = vmatpush.xpose.msk.msra.mxu0 %vm1477_vm4, %v2978_v1  ;;  %vm1726_vm4 = vcmp.eq.s32.totalorder %v3849_v8, %v3658_v19 }
 0x1bc   : > { %2676 = vmatpush.xpose.msk.msrb.mxu2 %vm1382_vm5, %v2978_v1  ;;  %vm1561_vm5 = vcmp.eq.s32.totalorder %v3843_v25, %v3622_v61 }
 0x1bd   : > { %2729 = vmatpush.xpose.msk.msrb.mxu3 %vm1561_vm5, %v2978_v1  ;;  %2698 = vmatpush.xpose.msk.msra.mxu0 %vm1476_vm8, %v2978_v1  ;;  %vm1473_vm5 = vcmp.eq.s32.totalorder %v3840_v0, %v3672_v36  ;;  %vm1725_vm8 = vcmp.eq.s32.totalorder %v3849_v8, %v3672_v36 }
 0x1c0   : > { %2677 = vmatpush.xpose.msk.msrb.mxu2 %vm1381_vm6, %v2978_v1  ;;  %vm1645_vm6 = vcmp.eq.s32.totalorder %v3846_v29, %v3622_v61  ;;  %v1061_v61 = vmax.f32 %v1060_v7, %v3932_v32 }
 0x1c1   : > { %2761 = vmatpush.xpose.msk.msrb.mxu1 %vm1645_vm6, %v2978_v1  ;;  %2730 = vmatpush.xpose.msk.msrb.mxu3 %vm1560_vm9, %v2978_v1  ;;  %vm1557_vm6 = vcmp.eq.s32.totalorder %v3843_v25, %v3672_v36  ;;  %vm1472_vm9 = vcmp.eq.s32.totalorder %v3840_v0, %v3687_v45 }
 0x1c2   : > { %2699 = vmatpush.xpose.msk.msra.mxu0 %vm1475_vm12, %v2978_v1  ;;  %vm1724_vm12 = vcmp.eq.s32.totalorder %v3849_v8, %v3687_v45 }
 0x1c4   : > { %2678 = vmatpush.xpose.msk.msrb.mxu2 %vm1380_vm10, %v2978_v1  ;;  %vm1644_vm10 = vcmp.eq.s32.totalorder %v3846_v29, %v3634_v21 }
 0x1c5   : > { %2762 = vmatpush.xpose.msk.msrb.mxu1 %vm1644_vm10, %v2978_v1  ;;  %2731 = vmatpush.xpose.msk.msrb.mxu3 %vm1559_vm13, %v2978_v1  ;;  %vm1556_vm10 = vcmp.eq.s32.totalorder %v3843_v25, %v3687_v45  ;;  %vm1471_vm13 = vcmp.eq.s32.totalorder %v3840_v0, %v3704_v12 }
 0x1c6   : > { %2700 = vmatpush.xpose.msk.msra.mxu0 %vm1474_vm1, %v2978_v1  ;;  %vm1723_vm1 = vcmp.eq.s32.totalorder %v3849_v8, %v3704_v12 }
 0x1c8   : > { %2791 = vmatpush.xpose.msk.msra.mxu2 %vm1731_vm14, %v2978_v1  ;;  %vm1643_vm14 = vcmp.eq.s32.totalorder %v3846_v29, %v3646_v30 }
 0x1c9   : > { %2763 = vmatpush.xpose.msk.msrb.mxu1 %vm1643_vm14, %v2978_v1  ;;  %2732 = vmatpush.xpose.msk.msrb.mxu3 %vm1558_vm2, %v2978_v1  ;;  %vm1555_vm14 = vcmp.eq.s32.totalorder %v3843_v25, %v3704_v12  ;;  %vm1470_vm2 = vcmp.eq.s32.totalorder %v3840_v0, %v3721_v35 }
 0x1ca   : > { %2701 = vmatpush.xpose.msk.msra.mxu0 %vm1473_vm5, %v2978_v1  ;;  %vm1722_vm5 = vcmp.eq.s32.totalorder %v3849_v8, %v3721_v35 }
 0x1cc   : > { %2792 = vmatpush.xpose.msk.msra.mxu2 %vm1730_vm3, %v2978_v1  ;;  %vm1642_vm3 = vcmp.eq.s32.totalorder %v3846_v29, %v3658_v19 }
 0x1cd   : > { %2764 = vmatpush.xpose.msk.msrb.mxu1 %vm1642_vm3, %v2978_v1  ;;  %2733 = vmatpush.xpose.msk.msrb.mxu3 %vm1557_vm6, %v2978_v1  ;;  %vm1554_vm3 = vcmp.eq.s32.totalorder %v3843_v25, %v3721_v35  ;;  %vm1469_vm6 = vcmp.eq.s32.totalorder %v3840_v0, %v3736_v37 }
 0x1ce   : > { %2702 = vmatpush.xpose.msk.msra.mxu0 %vm1472_vm9, %v2978_v1  ;;  %vm1721_vm9 = vcmp.eq.s32.totalorder %v3849_v8, %v3736_v37 }
 0x1d0   : > { %2793 = vmatpush.xpose.msk.msra.mxu2 %vm1729_vm7, %v2978_v1  ;;  %vm1641_vm7 = vcmp.eq.s32.totalorder %v3846_v29, %v3672_v36 }
 0x1d1   : > { %2765 = vmatpush.xpose.msk.msrb.mxu1 %vm1641_vm7, %v2978_v1  ;;  %2734 = vmatpush.xpose.msk.msrb.mxu3 %vm1556_vm10, %v2978_v1  ;;  %vm1553_vm7 = vcmp.eq.s32.totalorder %v3843_v25, %v3736_v37  ;;  %vm1468_vm10 = vcmp.eq.s32.totalorder %v3840_v0, %v3751_v16 }
 0x1d2   : > { %2703 = vmatpush.xpose.msk.msra.mxu0 %vm1471_vm13, %v2978_v1  ;;  %vm1720_vm13 = vcmp.eq.s32.totalorder %v3849_v8, %v3751_v16 }
 0x1d4   : > { %2794 = vmatpush.xpose.msk.msra.mxu2 %vm1728_vm11, %v2978_v1  ;;  %vm1640_vm11 = vcmp.eq.s32.totalorder %v3846_v29, %v3687_v45 }
 0x1d5   : > { %2766 = vmatpush.xpose.msk.msrb.mxu1 %vm1640_vm11, %v2978_v1  ;;  %2735 = vmatpush.xpose.msk.msrb.mxu3 %vm1555_vm14, %v2978_v1  ;;  %vm1552_vm11 = vcmp.eq.s32.totalorder %v3843_v25, %v3751_v16  ;;  %vm1467_vm14 = vcmp.eq.s32.totalorder %v3840_v0, %v3776_v22 }
 0x1d6   : > { %2704 = vmatpush.xpose.msk.msra.mxu0 %vm1470_vm2, %v2978_v1  ;;  %vm1719_vm2 = vcmp.eq.s32.totalorder %v3849_v8, %v3776_v22 }
 0x1d8   : > { %2795 = vmatpush.xpose.msk.msra.mxu2 %vm1727_vm15, %v2978_v1  ;;  %vm1639_vm15 = vcmp.eq.s32.totalorder %v3846_v29, %v3704_v12 }
 0x1d9   : > { %2767 = vmatpush.xpose.msk.msrb.mxu1 %vm1639_vm15, %v2978_v1  ;;  %2736 = vmatpush.xpose.msk.msrb.mxu3 %vm1554_vm3, %v2978_v1  ;;  %vm1551_vm15 = vcmp.eq.s32.totalorder %v3843_v25, %v3776_v22  ;;  %vm1466_vm3 = vcmp.eq.s32.totalorder %v3840_v0, %v3794_v31 }
 0x1da   : > { %2705 = vmatpush.xpose.msk.msra.mxu0 %vm1469_vm6, %v2978_v1  ;;  %vm1718_vm6 = vcmp.eq.s32.totalorder %v3849_v8, %v3794_v31 }
 0x1dc   : > { %2796 = vmatpush.xpose.msk.msra.mxu2 %vm1726_vm4, %v2978_v1  ;;  %vm1638_vm4 = vcmp.eq.s32.totalorder %v3846_v29, %v3721_v35 }
 0x1dd   : > { %2768 = vmatpush.xpose.msk.msrb.mxu1 %vm1638_vm4, %v2978_v1  ;;  %2737 = vmatpush.xpose.msk.msrb.mxu3 %vm1553_vm7, %v2978_v1  ;;  %vm1550_vm4 = vcmp.eq.s32.totalorder %v3843_v25, %v3794_v31  ;;  %vm1465_vm7 = vcmp.eq.s32.totalorder %v3840_v0, %v3808_v20 }
 0x1de   : > { %2706 = vmatpush.xpose.msk.msra.mxu0 %vm1468_vm10, %v2978_v1  ;;  %vm1717_vm10 = vcmp.eq.s32.totalorder %v3849_v8, %v3808_v20 }
 0x1e0   : > { %2797 = vmatpush.xpose.msk.msra.mxu2 %vm1725_vm8, %v2978_v1  ;;  %vm1637_vm8 = vcmp.eq.s32.totalorder %v3846_v29, %v3736_v37 }
 0x1e1   : > { %2769 = vmatpush.xpose.msk.msrb.mxu1 %vm1637_vm8, %v2978_v1  ;;  %2738 = vmatpush.xpose.msk.msrb.mxu3 %vm1552_vm11, %v2978_v1  ;;  %vm1549_vm8 = vcmp.eq.s32.totalorder %v3843_v25, %v3808_v20  ;;  %vm1464_vm11 = vcmp.eq.s32.totalorder %v3840_v0, %v3526_v14 }
 0x1e2   : > { %2707 = vmatpush.xpose.msk.msra.mxu0 %vm1467_vm14, %v2978_v1  ;;  %vm1716_vm14 = vcmp.eq.s32.totalorder %v3849_v8, %v3526_v14 }
 0x1e4   : > { %2798 = vmatpush.xpose.msk.msra.mxu2 %vm1724_vm12, %v2978_v1  ;;  %vm1636_vm12 = vcmp.eq.s32.totalorder %v3846_v29, %v3751_v16 }
 0x1e5   : > { %2770 = vmatpush.xpose.msk.msrb.mxu1 %vm1636_vm12, %v2978_v1  ;;  %2739 = vmatpush.xpose.msk.msrb.mxu3 %vm1551_vm15, %v2978_v1  ;;  %vm1548_vm12 = vcmp.eq.s32.totalorder %v3843_v25, %v3526_v14 }
 0x1e6   : > { %v1030_v4 = vpop.f32.mrf.mxu1  ;;  %2708 = vmatpush.xpose.msk.msra.mxu0 %vm1466_vm3, %v2978_v1 }
 0x1e8   : > { %2799 = vmatpush.xpose.msk.msra.mxu2 %vm1723_vm1, %v2978_v1  ;;  %vm1635_vm1 = vcmp.eq.s32.totalorder %v3846_v29, %v3776_v22 }
 0x1e9   : > { %2771 = vmatpush.xpose.msk.msrb.mxu1 %vm1635_vm1, %v2978_v1  ;;  %2740 = vmatpush.xpose.msk.msrb.mxu3 %vm1550_vm4, %v2978_v1  ;;  %vm1806_vm4 = vcmask 1041408  }
 0x1ea   : > { %2709 = vmatpush.xpose.msk.msra.mxu0 %vm1465_vm7, %v2978_v1 }
 0x1eb   : > { %v978_v21 = vpop.f32.mrf.mxu2  ;;  %v1004_v30 = vpop.f32.mrf.mxu3 }
 0x1ec   : > { %v1062_v24 = vmax.f32 %v1061_v61, %v978_v21  ;;  %2800 = vmatpush.xpose.msk.msra.mxu2 %vm1722_vm5, %v2978_v1  ;;  %vm1634_vm5 = vcmp.eq.s32.totalorder %v3846_v29, %v3794_v31 }
 0x1ed   : > { %2772 = vmatpush.xpose.msk.msrb.mxu1 %vm1634_vm5, %v2978_v1  ;;  %2741 = vmatpush.xpose.msk.msrb.mxu3 %vm1549_vm8, %v2978_v1  ;;  %vm1996_vm8 = vcmask 1040384  }
 0x1ee   : > { %v1063_v19 = vmax.f32 %v1062_v24, %v1004_v30  ;;  %2710 = vmatpush.xpose.msk.msra.mxu0 %vm1464_vm11, %v2978_v1 }
 0x1f0   : > { %v1064_v11 = vmax.f32 %v1063_v19, %v1030_v4  ;;  %2801 = vmatpush.xpose.msk.msra.mxu2 %vm1721_vm9, %v2978_v1  ;;  %vm1633_vm9 = vcmp.eq.s32.totalorder %v3846_v29, %v3808_v20 }
 0x1f1   : > { %2773 = vmatpush.xpose.msk.msrb.mxu1 %vm1633_vm9, %v2978_v1  ;;  %2742 = vmatpush.xpose.msk.msrb.mxu3 %vm1548_vm12, %v2978_v1 }
 0x1f4   : > { %2802 = vmatpush.xpose.msk.msra.mxu2 %vm1720_vm13, %v2978_v1  ;;  %vm1632_vm13 = vcmp.eq.s32.totalorder %v3846_v29, %v3526_v14 }
 0x1f5   : > { %2774 = vmatpush.xpose.msk.msrb.mxu1 %vm1632_vm13, %v2978_v1 }
 0x1f8   : > { %2803 = vmatpush.xpose.msk.msra.mxu2 %vm1719_vm2, %v2978_v1 }
 0x1fc   : > { %2804 = vmatpush.xpose.msk.msra.mxu2 %vm1718_vm6, %v2978_v1 }
 0x200   : > { %2805 = vmatpush.xpose.msk.msra.mxu2 %vm1717_vm10, %v2978_v1 }
 0x204   : > { %2806 = vmatpush.xpose.msk.msra.mxu2 %vm1716_vm14, %v2978_v1  ;;  %vm1999_vm14 = vcmask 1042432  }
 0x20a   : > { %v1056_v13 = vpop.f32.mrf.mxu2 }
 0x20b   : > { %v1065_v36 = vmax.f32 %v1064_v11, %v1056_v13 }
 0x20d   : > { %v1066_v9 = vsub.f32 %v3897_v63, %v1065_v36  ;;  %v1069_v49 = vsub.f32 %v3901_v27, %v1065_v36  ;;  %v1072_v45 = vsub.f32 %v3917_v3, %v1065_v36  ;;  %v1075_v5 = vsub.f32 %v3932_v32, %v1065_v36 }
 0x20e   : > { %v1078_v12 = vsub.f32 %v978_v21, %v1065_v36  ;;  %v1081_v63 = vsub.f32 %v1004_v30, %v1065_v36  ;;  %v1084_v3 = vsub.f32 %v1030_v4, %v1065_v36  ;;  %v1087_v7 = vsub.f32 %v1056_v13, %v1065_v36 }
 0x20f   : > { %v1067_v23 = vmul.f32 1.442695, %v1066_v9  ;;  %v1070_v41 = vmul.f32 1.442695, %v1069_v49  ;;  %v1073_v35 = vmul.f32 1.442695, %v1072_v45 }
 0x210   : > { %v1076_v27 = vmul.f32 1.442695, %v1075_v5  ;;  %v1079_v26 = vmul.f32 1.442695, %v1078_v12  ;;  %v1082_v37 = vmul.f32 1.442695, %v1081_v63 }
 0x211   : > { %2882 = vpow2.f32 %v1067_v23  ;;  %v1085_v61 = vmul.f32 1.442695, %v1084_v3  ;;  %v1088_v30 = vmul.f32 1.442695, %v1087_v7 }
 0x212   : > { %2884 = vpow2.f32 %v1070_v41 }
 0x213   : > { %2886 = vpow2.f32 %v1073_v35 }
 0x214   : > { %2888 = vpow2.f32 %v1076_v27 }
 0x215   : > { %2890 = vpow2.f32 %v1079_v26 }
 0x216   : > { %2892 = vpow2.f32 %v1082_v37 }
 0x217   : > { %v4021_v32 = vpop.eup %2882  ;;  %2894 = vpow2.f32 %v1085_v61 }
 0x218   : > { %v4025_v21 = vpop.eup %2884  ;;  %2896 = vpow2.f32 %v1088_v30 }
 0x219   : > { %v1090_v16 = vadd.f32 %v4025_v21, %v4021_v32  ;;  %v2887_v24 = vpop.eup %2886 }
 0x21a   : > { %v2889_v4 = vpop.eup %2888 }
 0x21b   : > { %v1091_v19 = vadd.f32 %v2887_v24, %v1090_v16  ;;  %v2891_v11 = vpop.eup %2890 }
 0x21c   : > { %v2893_v36 = vpop.eup %2892 }
 0x21d   : > { %v1092_v22 = vadd.f32 %v2889_v4, %v1091_v19  ;;  %v2895_v9 = vpop.eup %2894 }
 0x21e   : > { %v2897_v5 = vpop.eup %2896 }
 0x21f   : > { %v1093_v13 = vadd.f32 %v2891_v11, %v1092_v22 }
 0x221   : > { %v1094_v49 = vadd.f32 %v2893_v36, %v1093_v13 }
 0x223   : > { %v1095_v45 = vadd.f32 %v2895_v9, %v1094_v49  ;;  %v2912_v49 = vld [vmem:[%s3084_s17] sm:$0xff]  ;;  %s4155_s17 = scalar_lea.vmem [#allocation2], %s2435_s11  ;;  %s2344_s11 = sshll.u32 %s2341_s26, 4  ;;  %s2345_s11 = int_to_ptr.hbm [resolvable:$true] %s2344_s11 }
 0x224   : > { %s2342_s28 = sshll.u32 %s4155_s17, 4  ;;  %s2927_s10 = sshra.s32 %s2345_s11, 4  ;;  %s2343_s28 = int_to_ptr.vmem [resolvable:$true] %s2342_s28  ;;  %s2928_s10 = int_to_ptr.hbm [resolvable:$true] %s2927_s10 }
 0x225   : > { %v1096_v23 = vadd.f32 %v2897_v5, %v1095_v45  ;;  %s2929_s25 = scalar_lea.hbm %s2928_s10, 64  ;;  %p2934_p0 = scmp.lt.s32.totalorder %s2928_s10, %s4313_s6 }
 0x226   : > { %p2930_p11 = scmp.ne.s32.totalorder %s2928_s10, %s2929_s25 }
 0x227   : > { %2898 = vrcp.f32 %v1096_v23  ;;  %v1108_v41 = vand.u32 2147483648, %v1096_v23  ;;  %v1106_v25 = vand.u32 2147483647, %v1096_v23  ;;  %vm1102_vm1 = vweird.f32 %v1096_v23 }
 0x228   : > { %p2931_p12 = pnand %p2930_p11, %p3058_p5 }
 0x229   : > { %v1109_v63 = vor.u32 1.1754944e-38, %v1108_v41  ;;  %vm1107_vm3 = vcmp.eq.f32.partialorder %v1106_v25, 8.507059e+37 }
 0x22a   : > { %p2932_p13 = pneg %p2931_p12 }
 0x22d   : > { %v2899_v31 = vpop.eup %2898 }
 0x22e   : > { %v1098_v20 = vmul.f32 %v2899_v31, %v1096_v23  ;;  %vm1103_vm15 = vweird.f32 %v2899_v31 }
 0x22f   : > { %vm1104_vm2 = vmor %vm1102_vm1, %vm1103_vm15 }
 0x230   : > { %v1099_v0 = vsub.f32 1.0, %v1098_v20 }
 0x232   : > { %v1100_v12 = vmul.f32 %v2899_v31, %v1099_v0 }
 0x234   : > { %v1101_v35 = vadd.f32 %v2899_v31, %v1100_v12 }
 0x236   : > { %v1105_v27 = vsel %vm1104_vm2, %v2899_v31, %v1101_v35  ;;  %vm2001_vm2 = vcmask 1043456  }
 0x237   : > { %v1110_v29 = vsel %vm1107_vm3, %v1109_v63, %v1105_v27 }
 0x238   : > { %v1119_v26 = vmul.f32 %v2897_v5, %v1110_v29  ;;  %v1113_v14 = vmul.f32 %v4025_v21, %v1110_v29  ;;  %v1112_v8 = vmul.f32 %v4021_v32, %v1110_v29  ;;  %v1114_v1 = vmul.f32 %v2887_v24, %v1110_v29 }
 0x239   : > { %v1115_v3 = vmul.f32 %v2889_v4, %v1110_v29  ;;  %v1116_v16 = vmul.f32 %v2891_v11, %v1110_v29  ;;  %v4079_v22 = vmul.f32 %v2893_v36, %v1110_v29  ;;  %v4081_v13 = vmul.f32 %v2895_v9, %v1110_v29 }
 0x23a   : > { %v1785_v37 = vperm.slane %v1119_v26, 0  ;;  %1257 = vmatmul.f32.vlgmr.msrb.gmra.mxu0 %v1113_v14  ;;  %v1281_v7 = vperm.slane %v1113_v14, 0  ;;  %v1288_v61 = vperm.slane %v1113_v14, 1  ;;  %1277 = vmatmul.f32.vlgmr.msra.gmra.mxu3 %v1112_v8  ;;  %v1184_v30 = vperm.slane %v1112_v8, 0 }
 0x23b   : > { %v1188_v19 = vperm.slane %v1112_v8, 1  ;;  %1360 = vmatmul.f32.vlgmr.msra.gmra.mxu1 %v1114_v1  ;;  %1444 = vmatmul.f32.vlgmr.msrb.gmra.mxu2 %v1115_v3  ;;  %v4086_v32 = vperm.slane %v1119_v26, 1  ;;  %v1365_v24 = vperm.slane %v1114_v1, 0  ;;  %v1372_v4 = vperm.slane %v1114_v1, 1 }
 0x23c   : > { %v4084_v21 = vmul.f32 %v1785_v37, %v3500_v28  ;;  %1949 = vmatpush.msrb.mxu0 %v2912_v49  ;;  %v4090_v45 = vmul.f32 %v1785_v37, %v3512_v33  ;;  %v4093_v11 = vmul.f32 %v1785_v37, %v3520_v18  ;;  %v1282_v36 = vmul.f32 %v1281_v7, %v3319_v39 }
 0x23d   : > { %v1283_v9 = vmul.f32 %v1281_v7, %v3335_v43  ;;  %v1284_v5 = vmul.f32 %v1281_v7, %v3351_v47  ;;  %v1289_v28 = vmul.f32 %v1288_v61, %v3367_v51  ;;  %v1290_v23 = vmul.f32 %v1288_v61, %v3383_v55 }
 0x23e   : > { %v1291_v31 = vmul.f32 %v1288_v61, %v3399_v59  ;;  %v1185_v20 = vmul.f32 %v1184_v30, %v3317_v38  ;;  %v1186_v33 = vmul.f32 %v1184_v30, %v3333_v42  ;;  %v1187_v0 = vmul.f32 %v1184_v30, %v3349_v46 }
 0x23f   : > { %v1189_v18 = vmul.f32 %v1188_v19, %v3365_v50  ;;  %v1190_v39 = vmul.f32 %v1188_v19, %v3379_v53  ;;  %v1191_v43 = vmul.f32 %v1188_v19, %v3395_v57  ;;  %v1366_v47 = vmul.f32 %v1365_v24, %v3321_v40 }
 0x240   : > { %v1367_v51 = vmul.f32 %v1365_v24, %v3337_v44  ;;  %v1285_v41 = vadd.f32 %v1282_v36, %v1185_v20  ;;  %v1286_v55 = vadd.f32 %v1283_v9, %v1186_v33  ;;  %v1287_v12 = vadd.f32 %v1284_v5, %v1187_v0  ;;  %v4341_v33 = vld [vmem:[#allocation5_spill] sm:$0xff] }
 0x241   : > { %v1292_v59 = vadd.f32 %v1289_v28, %v1189_v18  ;;  %v1293_v25 = vadd.f32 %v1290_v23, %v1190_v39  ;;  %v1294_v38 = vadd.f32 %v1291_v31, %v1191_v43  ;;  %v1368_v42 = vmul.f32 %v1365_v24, %v3353_v48  ;;  %v4342_v18 = vld [vmem:[#allocation7_spill] sm:$0xff]  ;;  %v4343_v43 = vld [vmem:[#allocation9_spill] sm:$0xff] }
 0x242   : > { %v1373_v46 = vmul.f32 %v1372_v4, %v3369_v52  ;;  %1528 = vmatmul.f32.vlgmr.msra.gmra.mxu0 %v1116_v16  ;;  %v1369_v50 = vadd.f32 %v1366_v47, %v1285_v41  ;;  %v1370_v35 = vadd.f32 %v1367_v51, %v1286_v55  ;;  %v1374_v53 = vmul.f32 %v1372_v4, %v3385_v56  ;;  %v4344_v51 = vld [vmem:[#allocation12_spill] sm:$0xff]  ;;  %v4345_v55 = vld [vmem:[#allocation15_spill] sm:$0xff] }
 0x243   : > { %v1375_v57 = vmul.f32 %v1372_v4, %v3401_v60  ;;  %1612 = vmatmul.f32.vlgmr.msrb.gmra.mxu3 %v4079_v22  ;;  %v1371_v40 = vadd.f32 %v1368_v42, %v1287_v12  ;;  %v1449_v63 = vperm.slane %v1115_v3, 0  ;;  %v1456_v27 = vperm.slane %v1115_v3, 1  ;;  %1696 = vmatmul.f32.vlgmr.msrb.gmra.mxu1 %v4081_v13  ;;  %v4348_v42 = vld [vmem:[#allocation8_spill] sm:$0xff] }
 0x244   : > { %v1376_v44 = vadd.f32 %v1373_v46, %v1292_v59  ;;  %1780 = vmatmul.f32.vlgmr.msra.gmra.mxu2 %v1119_v26  ;;  %v1377_v29 = vadd.f32 %v1374_v53, %v1293_v25  ;;  %v1533_v14 = vperm.slane %v1116_v16, 0  ;;  %v1540_v52 = vperm.slane %v1116_v16, 1  ;;  %v4346_v59 = vld [vmem:[#allocation18_spill] sm:$0xff] }
 0x245   : > { %v1378_v48 = vadd.f32 %v1375_v57, %v1294_v38  ;;  %v1450_v8 = vmul.f32 %v1449_v63, %v3381_v54  ;;  %v1451_v1 = vmul.f32 %v1449_v63, %v3397_v58  ;;  %v1452_v56 = vmul.f32 %v1449_v63, %v3413_v62  ;;  %v4338_v62 = vld [vmem:[#allocation11_spill] sm:$0xff]  ;;  %v4347_v25 = vld [vmem:[#allocation6_spill] sm:$0xff] }
 0x246   : > { %v1457_v60 = vmul.f32 %v1456_v27, %v3427_v2  ;;  %v1458_v37 = vmul.f32 %v1456_v27, %v3433_v6  ;;  %v1459_v7 = vmul.f32 %v1456_v27, %v3437_v10  ;;  %v1534_v3 = vmul.f32 %v1533_v14, %v3461_v34  ;;  %v4339_v6 = vld [vmem:[#allocation14_spill] sm:$0xff]  ;;  %v4340_v10 = vld [vmem:[#allocation17_spill] sm:$0xff] }
 0x247   : > { %v1535_v26 = vmul.f32 %v1533_v14, %v3476_v15  ;;  %v1453_v61 = vadd.f32 %v1450_v8, %v1369_v50  ;;  %v1454_v30 = vadd.f32 %v1451_v1, %v1370_v35  ;;  %v1455_v19 = vadd.f32 %v1452_v56, %v1371_v40  ;;  %v4350_v27 = vld [vmem:[#allocation13_spill] sm:$0xff]  ;;  %v4352_v1 = vld [vmem:[#allocation19_spill] sm:$0xff] }
 0x248   : > { %v1460_v16 = vadd.f32 %v1457_v60, %v1376_v44  ;;  %v1461_v54 = vadd.f32 %v1458_v37, %v1377_v29  ;;  %v1462_v24 = vadd.f32 %v1459_v7, %v1378_v48  ;;  %v1536_v58 = vmul.f32 %v1533_v14, %v3482_v17  ;;  %v4349_v44 = vld [vmem:[#allocation10_spill] sm:$0xff]  ;;  %v4353_v60 = vld [vmem:[#allocation21_spill] sm:$0xff] }
 0x249   : > { %v1541_v4 = vmul.f32 %v1540_v52, %v4338_v62  ;;  %v1537_v2 = vadd.f32 %v1534_v3, %v1453_v61  ;;  %v1538_v49 = vadd.f32 %v1535_v26, %v1454_v30  ;;  %v1542_v36 = vmul.f32 %v1540_v52, %v4339_v6  ;;  %v4354_v7 = vld [vmem:[#allocation22_spill] sm:$0xff] }
 0x24a   : > { %v1543_v9 = vmul.f32 %v1540_v52, %v4340_v10  ;;  %v1539_v34 = vadd.f32 %v1536_v58, %v1455_v19  ;;  %v1617_v15 = vperm.slane %v4079_v22, 0  ;;  %v1624_v28 = vperm.slane %v4079_v22, 1  ;;  %v4351_v52 = vld [vmem:[#allocation16_spill] sm:$0xff] }
 0x24b   : > { %v1544_v5 = vadd.f32 %v1541_v4, %v1460_v16  ;;  %v1545_v23 = vadd.f32 %v1542_v36, %v1461_v54  ;;  %v1701_v17 = vperm.slane %v4081_v13, 0  ;;  %v1708_v20 = vperm.slane %v4081_v13, 1 }
 0x24c   : > { %v1546_v31 = vadd.f32 %v1543_v9, %v1462_v24  ;;  %v1618_v0 = vmul.f32 %v1617_v15, %v4341_v33  ;;  %v1619_v39 = vmul.f32 %v1617_v15, %v4342_v18  ;;  %v1620_v47 = vmul.f32 %v1617_v15, %v4343_v43  ;;  %v4355_v24 = vld [vmem:[#allocation23_spill] sm:$0xff]  ;;  %v4356_v33 = vld [vmem:[#allocation20_spill] sm:$0xff] }
 0x24d   : > { %v1625_v41 = vmul.f32 %v1624_v28, %v4344_v51  ;;  %v1626_v12 = vmul.f32 %v1624_v28, %v4345_v55  ;;  %v1627_v22 = vmul.f32 %v1624_v28, %v4346_v59  ;;  %v1702_v38 = vmul.f32 %v1701_v17, %v4347_v25 }
 0x24e   : > { %v1703_v46 = vmul.f32 %v1701_v17, %v4348_v42  ;;  %v1621_v50 = vadd.f32 %v1618_v0, %v1537_v2  ;;  %v1622_v35 = vadd.f32 %v1619_v39, %v1538_v49  ;;  %v1623_v53 = vadd.f32 %v1620_v47, %v1539_v34 }
 0x24f   : > { %v1628_v13 = vadd.f32 %v1625_v41, %v1544_v5  ;;  %v1629_v57 = vadd.f32 %v1626_v12, %v1545_v23  ;;  %v1630_v40 = vadd.f32 %v1627_v22, %v1546_v31  ;;  %v1704_v63 = vmul.f32 %v1701_v17, %v4349_v44 }
 0x250   : > { %v1709_v29 = vmul.f32 %v1708_v20, %v4350_v27  ;;  %v1705_v48 = vadd.f32 %v1702_v38, %v1621_v50  ;;  %v1706_v14 = vadd.f32 %v1703_v46, %v1622_v35  ;;  %v1710_v8 = vmul.f32 %v1708_v20, %v4351_v52 }
 0x251   : > { %v1711_v56 = vmul.f32 %v1708_v20, %v4352_v1  ;;  %v1793_v37 = vmul.f32 %v4086_v32, %v4353_v60  ;;  %v1794_v3 = vmul.f32 %v4086_v32, %v4354_v7  ;;  %v1707_v26 = vadd.f32 %v1704_v63, %v1623_v53 }
 0x252   : > { %v1712_v61 = vadd.f32 %v1709_v29, %v1628_v13  ;;  %v1713_v30 = vadd.f32 %v1710_v8, %v1629_v57  ;;  %v1789_v16 = vadd.f32 %v4084_v21, %v1705_v48  ;;  %v1790_v54 = vadd.f32 %v4090_v45, %v1706_v14 }
 0x253   : > { %v1714_v19 = vadd.f32 %v1711_v56, %v1630_v40  ;;  %v1795_v58 = vmul.f32 %v4086_v32, %v4355_v24  ;;  %v1791_v62 = vadd.f32 %v4093_v11, %v1707_v26  ;;  %v4168_v0 = vcvt.s32.f32 %v4356_v33 }
 0x254   : > { %v1796_v4 = vadd.f32 %v1793_v37, %v1712_v61  ;;  %v1797_v2 = vadd.f32 %v1794_v3, %v1713_v30  ;;  %1799 = vst [vmem:[%s4155_s17] sm:$0xff] %v1789_v16  ;;  %v4357_v22 = vmov 0.0  }
 0x255   : > { %v1798_v49 = vadd.f32 %v1795_v58, %v1714_v19  ;;  %1800 = vst [vmem:[%s4155_s17 + $0x8] sm:$0xff] %v1790_v54 }
 0x256   : > { %1801 = vst [vmem:[%s4155_s17 + $0x10] sm:$0xff] %v1791_v62 }
 0x257   : > { %1802 = vst [vmem:[%s4155_s17 + $0x18] sm:$0xff] %v1796_v4 }
 0x258   : > { %1803 = vst [vmem:[%s4155_s17 + $0x20] sm:$0xff] %v1797_v2 }
 0x259   : > { %1804 = vst [vmem:[%s4155_s17 + $0x28] sm:$0xff] %v1798_v49 }
 0x2b7   : > { %v1258_v21 = vpop.f32.mrf.mxu0 }
 0x2b8   : > { %v1361_v45 = vpop.f32.mrf.mxu1 }
 0x2bd   : > { %v1278_v32 = vpop.f32.mrf.mxu3 }
 0x2be   : > { %v1279_v11 = vadd.f32 %v1278_v32, %v1258_v21  ;;  %v1445_v36 = vpop.f32.mrf.mxu2 }
 0x2bf   : > { %v1529_v9 = vpop.f32.mrf.mxu0 }
 0x2c0   : > { %v1364_v6 = vadd.f32 %v1361_v45, %v1279_v11  ;;  %v1697_v28 = vpop.f32.mrf.mxu1 }
 0x2c2   : > { %v1448_v10 = vadd.f32 %v1445_v36, %v1364_v6 }
 0x2c4   : > { %v1532_v34 = vadd.f32 %v1529_v9, %v1448_v10 }
 0x2c6   : > { %v1613_v5 = vpop.f32.mrf.mxu3 }
 0x2c7   : > { %v1616_v15 = vadd.f32 %v1613_v5, %v1532_v34  ;;  %v1781_v31 = vpop.f32.mrf.mxu2 }
 0x2c9   : > { %v1700_v23 = vadd.f32 %v1697_v28, %v1616_v15 }
 0x2cb   : > { %v4163_v17 = vadd.f32 %v1781_v31, %v1700_v23 }
 0x2cd   : > { %v1807_v20 = vsel %vm1806_vm4, %v4163_v17, -inf }
 0x2ce   : > { %1808 = vmax.xlane.f32.xlu0 %v1807_v20 }
 0x341   : > { %v1809_v18 = vpop.xlane.xlu0 %1808 }
 0x342   : > { %vm1810_vm5 = vcmp.eq.f32.partialorder %v4163_v17, %v1809_v18 }
 0x343   : > { %v1811_v39 = vsel %vm1810_vm5, %v4168_v0, 128.0 }
 0x344   : > { %v1812_v43 = vsel %vm1806_vm4, %v1811_v39, inf  ;;  %v1902_v39 = vld [vmem:[%s4312_s5] sm:$0xff] }
 0x345   : > { %1813 = vmin.xlane.f32.xlu0 %v1812_v43  ;;  %2815 = vmatmul.msk.f32.vlgmr.msrb.gmra.mxu0 %vm308_vm0, %v1902_v39  ;;  %v1903_v43 = vld [vmem:[%s4312_s5 + $0x8] sm:$0xff] }
 0x34d   : > { %2816 = vmatmul.msk.f32.gmra.mxu0 %vm308_vm0, %v1903_v43 }
 0x3b8   : > { %v1814_v47 = vpop.xlane.xlu0 %1813 }
 0x3b9   : > { %vm1815_vm6 = vcmp.eq.f32.partialorder %v4168_v0, %v1814_v47  ;;  %v1904_v47 = vld [vmem:[%s4312_s5 + $0x10] sm:$0xff] }
 0x3ba   : > { %v1818_v51 = vsel %vm1815_vm6, -inf, %v4163_v17  ;;  %v2807_v25 = vsel %vm1815_vm6, 1.0, %v4357_v22  ;;  %vm2003_vm6 = vcmask 1044480   ;;  %2817 = vmatmul.msk.f32.gmra.mxu0 %vm308_vm0, %v1904_v47 }
 0x3bb   : > { %v1819_v41 = vsel %vm1806_vm4, %v1818_v51, -inf  ;;  %v2159_v42 = vrot.slane %v2807_v25, 1 }
 0x3bc   : > { %1820 = vmax.xlane.f32.xlu1 %v1819_v41 }
 0x42f   : > { %v1821_v55 = vpop.xlane.xlu1 %1820 }
 0x430   : > { %vm1822_vm7 = vcmp.eq.f32.partialorder %v1818_v51, %v1821_v55 }
 0x431   : > { %v1823_v12 = vsel %vm1822_vm7, %v4168_v0, 128.0 }
 0x432   : > { %v1824_v59 = vsel %vm1806_vm4, %v1823_v12, inf  ;;  %v1906_v12 = vld [vmem:[%s4312_s5 + $0x20] sm:$0xff] }
 0x433   : > { %1825 = vmin.xlane.f32.xlu1 %v1824_v59 }
 0x4a6   : > { %v1826_v38 = vpop.xlane.xlu1 %1825 }
 0x4a7   : > { %vm1827_vm9 = vcmp.eq.f32.partialorder %v4168_v0, %v1826_v38  ;;  %v1908_v38 = vld [vmem:[%s4312_s5 + $0x30] sm:$0xff] }
 0x4a8   : > { %v2808_v46 = vsel %vm1827_vm9, 1.0, %v4357_v22  ;;  %v1830_v50 = vsel %vm1827_vm9, -inf, %v1818_v51  ;;  %v1905_v51 = vld [vmem:[%s4312_s5 + $0x18] sm:$0xff]  ;;  %vm2005_vm9 = vcmask 1045504  }
 0x4a9   : > { %v1976_v35 = vrot.slane %v2808_v46, 7  ;;  %v2173_v53 = vsel %vm1996_vm8, %v2159_v42, %v2808_v46  ;;  %v1831_v13 = vsel %vm1806_vm4, %v1830_v50, -inf  ;;  %2818 = vmatmul.msk.f32.gmra.mxu0 %vm308_vm0, %v1905_v51  ;;  %v1909_v42 = vld [vmem:[%s4312_s5 + $0x38] sm:$0xff]  ;;  %v1951_v46 = vpop.f32.mrf.mxu0 }
 0x4aa   : > { %1832 = vmax.xlane.f32.xlu2 %v1831_v13  ;;  %2054 = vmatpush.msra.mxu1 %v1951_v46 }
 0x4ab   : > { %v1997_v57 = vsel %vm1996_vm8, %v2807_v25, %v1976_v35  ;;  %v1907_v25 = vld [vmem:[%s4312_s5 + $0x28] sm:$0xff] }
 0x4b1   : > { %2819 = vmatmul.msk.f32.gmra.mxu0 %vm308_vm0, %v1906_v12 }
 0x4b9   : > { %2820 = vmatmul.msk.f32.gmra.mxu0 %vm308_vm0, %v1907_v25 }
 0x4c1   : > { %2821 = vmatmul.msk.f32.gmra.mxu0 %vm308_vm0, %v1908_v38 }
 0x4c9   : > { %2822 = vmatmul.msk.f32.gmra.mxu0 %vm308_vm0, %v1909_v42 }
 0x51d   : > { %v1833_v40 = vpop.xlane.xlu2 %1832 }
 0x51e   : > { %vm1834_vm10 = vcmp.eq.f32.partialorder %v1830_v50, %v1833_v40 }
 0x51f   : > { %v1835_v44 = vsel %vm1834_vm10, %v4168_v0, 128.0 }
 0x520   : > { %v1836_v63 = vsel %vm1806_vm4, %v1835_v44, inf }
 0x521   : > { %1837 = vmin.xlane.f32.xlu2 %v1836_v63 }
 0x594   : > { %v1838_v27 = vpop.xlane.xlu2 %1837 }
 0x595   : > { %vm1839_vm11 = vcmp.eq.f32.partialorder %v4168_v0, %v1838_v27 }
 0x596   : > { %v2809_v29 = vsel %vm1839_vm11, 1.0, %v4357_v22  ;;  %v1842_v48 = vsel %vm1839_vm11, -inf, %v1830_v50  ;;  %v1954_v50 = vpop.f32.mrf.mxu0 }
 0x597   : > { %v1979_v14 = vrot.slane %v2809_v29, 6  ;;  %v2161_v52 = vrot.slane %v2809_v29, 7  ;;  %v1843_v8 = vsel %vm1806_vm4, %v1842_v48, -inf  ;;  %2225 = vmatpush.msrb.mxu1 %v1954_v50 }
 0x598   : > { %1844 = vmax.xlane.f32.xlu0 %v1843_v8 }
 0x599   : > { %v1998_v1 = vsel %vm1806_vm4, %v1997_v57, %v1979_v14  ;;  %v2174_v56 = vsel %vm1806_vm4, %v2173_v53, %v2161_v52 }
 0x59e   : > { %v1957_v29 = vpop.f32.mrf.mxu0 }
 0x60b   : > { %v1845_v60 = vpop.xlane.xlu0 %1844 }
 0x60c   : > { %vm1846_vm12 = vcmp.eq.f32.partialorder %v1842_v48, %v1845_v60 }
 0x60d   : > { %v1847_v37 = vsel %vm1846_vm12, %v4168_v0, 128.0  ;;  %vm2007_vm12 = vcmask 1046528  }
 0x60e   : > { %v1848_v7 = vsel %vm1806_vm4, %v1847_v37, inf }
 0x60f   : > { %1849 = vmin.xlane.f32.xlu1 %v1848_v7 }
 0x682   : > { %v1850_v3 = vpop.xlane.xlu1 %1849 }
 0x683   : > { %vm1851_vm13 = vcmp.eq.f32.partialorder %v4168_v0, %v1850_v3 }
 0x684   : > { %v2810_v26 = vsel %vm1851_vm13, 1.0, %v4357_v22  ;;  %v1854_v61 = vsel %vm1851_vm13, -inf, %v1842_v48  ;;  %v1960_v48 = vpop.f32.mrf.mxu0 }
 0x685   : > { %v1982_v30 = vrot.slane %v2810_v26, 5  ;;  %v2163_v19 = vrot.slane %v2810_v26, 6  ;;  %v1855_v16 = vsel %vm1806_vm4, %v1854_v61, -inf }
 0x686   : > { %1856 = vmax.xlane.f32.xlu2 %v1855_v16 }
 0x687   : > { %v2000_v54 = vsel %vm1999_vm14, %v1998_v1, %v1982_v30  ;;  %v2175_v24 = vsel %vm1999_vm14, %v2174_v56, %v2163_v19 }
 0x68c   : > { %v4241_v14 = vpop.f32.mrf.mxu0 }
 0x694   : > { %v4243_v52 = vpop.f32.mrf.mxu0 }
 0x69c   : > { %v4245_v8 = vpop.f32.mrf.mxu0 }
 0x6a4   : > { %v4247_v1 = vpop.f32.mrf.mxu0 }
 0x6a5   : > { %2022 = vmatpush.xpose.msra.mxu3 %v4247_v1  ;;  %2193 = vmatpush.xpose.msra.mxu0 %v4247_v1 }
 0x6a9   : > { %2023 = vmatpush.xpose.msra.mxu3 %v4245_v8  ;;  %2194 = vmatpush.xpose.msra.mxu0 %v4245_v8 }
 0x6ad   : > { %2024 = vmatpush.xpose.msra.mxu3 %v4243_v52  ;;  %2195 = vmatpush.xpose.msra.mxu0 %v4243_v52 }
 0x6b1   : > { %2025 = vmatpush.xpose.msra.mxu3 %v4241_v14  ;;  %2196 = vmatpush.xpose.msra.mxu0 %v4241_v14 }
 0x6b5   : > { %2026 = vmatpush.xpose.msra.mxu3 %v1960_v48  ;;  %2197 = vmatpush.xpose.msra.mxu0 %v1960_v48 }
 0x6b9   : > { %2027 = vmatpush.xpose.msra.mxu3 %v1957_v29  ;;  %2198 = vmatpush.xpose.msra.mxu0 %v1957_v29 }
 0x6bd   : > { %2028 = vmatpush.xpose.msra.mxu3 %v1954_v50  ;;  %2199 = vmatpush.xpose.msra.mxu0 %v1954_v50 }
 0x6c1   : > { %2029 = vmatpush.xpose.msra.mxu3 %v1951_v46  ;;  %2200 = vmatpush.xpose.msra.mxu0 %v1951_v46 }
 0x6f9   : > { %v1857_v58 = vpop.xlane.xlu2 %1856 }
 0x6fa   : > { %vm1858_vm15 = vcmp.eq.f32.partialorder %v1854_v61, %v1857_v58 }
 0x6fb   : > { %v1859_v62 = vsel %vm1858_vm15, %v4168_v0, 128.0 }
 0x6fc   : > { %v1860_v4 = vsel %vm1806_vm4, %v1859_v62, inf }
 0x6fd   : > { %1861 = vmin.xlane.f32.xlu0 %v1860_v4 }
 0x770   : > { %v1862_v2 = vpop.xlane.xlu0 %1861 }
 0x771   : > { %vm1863_vm1 = vcmp.eq.f32.partialorder %v4168_v0, %v1862_v2 }
 0x772   : > { %v2811_v49 = vsel %vm1863_vm1, 1.0, %v4357_v22  ;;  %v1866_v21 = vsel %vm1863_vm1, -inf, %v1854_v61 }
 0x773   : > { %v1985_v32 = vrot.slane %v2811_v49, 4  ;;  %v2165_v45 = vrot.slane %v2811_v49, 5  ;;  %v1867_v11 = vsel %vm1806_vm4, %v1866_v21, -inf }
 0x774   : > { %1868 = vmax.xlane.f32.xlu1 %v1867_v11 }
 0x775   : > { %v2002_v6 = vsel %vm2001_vm2, %v2000_v54, %v1985_v32  ;;  %v2176_v36 = vsel %vm2001_vm2, %v2175_v24, %v2165_v45  ;;  %v2180_v24 = vperm.slane %v4163_v17, 1 }
 0x7e7   : > { %v1869_v10 = vpop.xlane.xlu1 %1868 }
 0x7e8   : > { %vm1870_vm3 = vcmp.eq.f32.partialorder %v1866_v21, %v1869_v10 }
 0x7e9   : > { %v1871_v9 = vsel %vm1870_vm3, %v4168_v0, 128.0 }
 0x7ea   : > { %v1872_v34 = vsel %vm1806_vm4, %v1871_v9, inf }
 0x7eb   : > { %1873 = vmin.xlane.f32.xlu2 %v1872_v34 }
 0x85e   : > { %v1874_v5 = vpop.xlane.xlu2 %1873 }
 0x85f   : > { %vm1875_vm5 = vcmp.eq.f32.partialorder %v4168_v0, %v1874_v5 }
 0x860   : > { %v2812_v15 = vsel %vm1875_vm5, 1.0, %v4357_v22  ;;  %v1878_v28 = vsel %vm1875_vm5, -inf, %v1866_v21 }
 0x861   : > { %v1988_v23 = vrot.slane %v2812_v15, 3  ;;  %v2167_v31 = vrot.slane %v2812_v15, 4  ;;  %v1879_v20 = vsel %vm1806_vm4, %v1878_v28, -inf }
 0x862   : > { %1880 = vmax.xlane.f32.xlu0 %v1879_v20 }
 0x863   : > { %v2004_v33 = vsel %vm2003_vm6, %v2002_v6, %v1988_v23  ;;  %v2177_v18 = vsel %vm2003_vm6, %v2176_v36, %v2167_v31 }
 0x8d5   : > { %v1881_v41 = vpop.xlane.xlu0 %1880 }
 0x8d6   : > { %vm1882_vm7 = vcmp.eq.f32.partialorder %v1878_v28, %v1881_v41 }
 0x8d7   : > { %v1883_v55 = vsel %vm1882_vm7, %v4168_v0, 128.0 }
 0x8d8   : > { %v1884_v59 = vsel %vm1806_vm4, %v1883_v55, inf }
 0x8d9   : > { %1885 = vmin.xlane.f32.xlu1 %v1884_v59 }
 0x94c   : > { %v1886_v35 = vpop.xlane.xlu1 %1885 }
 0x94d   : > { %vm1887_vm8 = vcmp.eq.f32.partialorder %v4168_v0, %v1886_v35 }
 0x94e   : > { %v2813_v53 = vsel %vm1887_vm8, 1.0, %v4357_v22  ;;  %v1890_v13 = vsel %vm1887_vm8, -inf, %v1878_v28 }
 0x94f   : > { %v1991_v57 = vrot.slane %v2813_v53, 2  ;;  %v2169_v40 = vrot.slane %v2813_v53, 3  ;;  %v1891_v44 = vsel %vm1806_vm4, %v1890_v13, -inf }
 0x950   : > { %1892 = vmax.xlane.f32.xlu2 %v1891_v44 }
 0x951   : > { %v2006_v63 = vsel %vm2005_vm9, %v2004_v33, %v1991_v57  ;;  %v2178_v27 = vsel %vm2005_vm9, %v2177_v18, %v2169_v40 }
 0x9c3   : > { %v1893_v56 = vpop.xlane.xlu2 %1892 }
 0x9c4   : > { %vm1894_vm10 = vcmp.eq.f32.partialorder %v1890_v13, %v1893_v56 }
 0x9c5   : > { %v1895_v60 = vsel %vm1894_vm10, %v4168_v0, 128.0 }
 0x9c6   : > { %v1896_v37 = vsel %vm1806_vm4, %v1895_v60, inf }
 0x9c7   : > { %1897 = vmin.xlane.f32.xlu0 %v1896_v37 }
 0xa3a   : > { %v1898_v7 = vpop.xlane.xlu0 %1897 }
 0xa3b   : > { %vm1899_vm11 = vcmp.eq.f32.partialorder %v4168_v0, %v1898_v7  ;;  %v2009_v0 = vperm.slane %v4163_v17, 0 }
 0xa3c   : > { %v2814_v3 = vsel %vm1899_vm11, 1.0, %v4357_v22 }
 0xa3d   : > { %v1994_v26 = vrot.slane %v2814_v3, 1  ;;  %v2171_v61 = vrot.slane %v2814_v3, 2 }
 0xa3f   : > { %v2008_v30 = vsel %vm2007_vm12, %v2006_v63, %v1994_v26  ;;  %v2179_v19 = vsel %vm2007_vm12, %v2178_v27, %v2171_v61 }
 0xa40   : > { %2030 = vmatmul.f32.vlgmr.msra.gmra.mxu3 %v2008_v30  ;;  %2201 = vmatmul.f32.vlgmr.msra.gmra.mxu0 %v2179_v19  ;;  %v2010_v22 = vmul.f32 %v2009_v0, %v2008_v30  ;;  %v2181_v58 = vmul.f32 %v2180_v24, %v2179_v19 }
 0xabd   : > { %v2202_v16 = vpop.f32.mrf.mxu0 }
 0xabe   : > { %2206 = vrot.lane.b32.xlu2 %v2202_v16, %s2979_s14 }
 0xac3   : > { %v2031_v54 = vpop.f32.mrf.mxu3 }
 0xac4   : > { %2098 = vrot.lane.b32.xlu0 %v2031_v54, %s2980_s13  ;;  %2035 = vrot.lane.b32.xlu1 %v2031_v54, %s2981_s15  ;;  %s2933_s13 = scalar_lea.hbm %s4313_s6, 128 }
 0xac5   : > { %p2935_p1 = scmp.lt.s32.totalorder %s2933_s13, %s2929_s25 }
 0xac7   : > { %p2936_p2 = por %p2935_p1, %p2934_p0 }
 0xac9   : > { %p2937_p3 = pnand %p2936_p2, %p2932_p13 }
 0xacc   : > { %2269 = vrot.lane.b32.xlu1 %v2202_v16, %s2982_s16 }
 0xae7   : > { %2011 = vadd.xlane.f32.xlu2 %v2010_v22 }
 0xaee   : > { %2182 = vadd.xlane.f32.xlu0 %v2181_v58 }
 0xb18   : > { %v2207_v2 = vpop.permute.xlu2 %2206 }
 0xb36   : > { %v2099_v62 = vpop.permute.xlu0 %2098  ;;  %v2036_v4 = vpop.permute.xlu1 %2035 }
 0xb37   : > { %2101 = vxpose.xlu1.b32.start.end [1/1] (short) (narrow) %v2099_v62, 8  ;;  %2823 = vmatmul.msk.f32.vlgmr.msra.gmra.mxu1 %vm308_vm0, %v2036_v4 }
 0xb3e   : > { %v2270_v49 = vpop.permute.xlu1 %2269 }
 0xb3f   : > { %2825 = vmatmul.msk.f32.vlgmr.msrb.gmra.mxu1 %vm308_vm0, %v2207_v2  ;;  %2272 = vxpose.xlu2.b32.start.end [1/1] (short) (narrow) %v2270_v49, 8 }
 0xb5a   : > { %v2012_v57 = vpop.xlane.xlu2 %2011 }
 0xb61   : > { %v2183_v3 = vpop.xlane.xlu0 %2182 }
 0xbb4   : > { %v2056_v21 = vpop.f32.mrf.mxu1 }
 0xbb5   : > { %v2059_v32 = vrot.slane %v2056_v21, 4 }
 0xbb7   : > { %v2060_v45 = vmax.f32 %v2056_v21, %v2059_v32 }
 0xbb9   : > { %v2061_v11 = vrot.slane %v2060_v45, 2 }
 0xbbb   : > { %v2062_v6 = vmax.f32 %v2060_v45, %v2061_v11 }
 0xbbc   : > { %v2227_v36 = vpop.f32.mrf.mxu1 }
 0xbbd   : > { %v2063_v10 = vrot.slane %v2062_v6, 1  ;;  %v2230_v17 = vrot.slane %v2227_v36, 4 }
 0xbbf   : > { %v2064_v9 = vmax.f32 %v2062_v6, %v2063_v10  ;;  %v2231_v34 = vmax.f32 %v2227_v36, %v2230_v17 }
 0xbc1   : > { %v2065_v5 = vsub.f32 %v2056_v21, %v2064_v9  ;;  %v2232_v15 = vrot.slane %v2231_v34, 2  ;;  %v2096_v9 = vsub.f32 %v4241_v14, %v4245_v8 }
 0xbc3   : > { %v2066_v28 = vmul.f32 1.442695, %v2065_v5  ;;  %v2233_v23 = vmax.f32 %v2231_v34, %v2232_v15 }
 0xbc5   : > { %2900 = vpow2.f32 %v2066_v28  ;;  %v2234_v31 = vrot.slane %v2233_v23, 1 }
 0xbc7   : > { %v2235_v20 = vmax.f32 %v2233_v23, %v2234_v31 }
 0xbc9   : > { %v2236_v33 = vsub.f32 %v2227_v36, %v2235_v20  ;;  %v2267_v20 = vsub.f32 %v4243_v52, %v4247_v1 }
 0xbcb   : > { %v2901_v18 = vpop.eup %2900  ;;  %v2237_v39 = vmul.f32 1.442695, %v2236_v33 }
 0xbcc   : > { %v2068_v43 = vrot.slane %v2901_v18, 4 }
 0xbcd   : > { %2902 = vpow2.f32 %v2237_v39 }
 0xbce   : > { %v2069_v47 = vadd.f32 %v2901_v18, %v2068_v43 }
 0xbd0   : > { %v2070_v51 = vrot.slane %v2069_v47, 2 }
 0xbd2   : > { %v2071_v41 = vadd.f32 %v2070_v51, %v2069_v47 }
 0xbd3   : > { %v2903_v55 = vpop.eup %2902 }
 0xbd4   : > { %v2072_v12 = vrot.slane %v2071_v41, 1  ;;  %v2239_v59 = vrot.slane %v2903_v55, 4 }
 0xbd6   : > { %v2073_v25 = vadd.f32 %v2072_v12, %v2071_v41  ;;  %v2240_v38 = vadd.f32 %v2903_v55, %v2239_v59 }
 0xbd8   : > { %2904 = vrcp.f32 %v2073_v25  ;;  %v2241_v42 = vrot.slane %v2240_v38, 2  ;;  %v2085_v44 = vand.u32 2147483648, %v2073_v25  ;;  %v2083_v27 = vand.u32 2147483647, %v2073_v25  ;;  %v2288_v6 = vpop.trf.xlu2 }
 0xbd9   : > { %vm2079_vm13 = vweird.f32 %v2073_v25 }
 0xbda   : > { %v2242_v46 = vadd.f32 %v2241_v42, %v2240_v38  ;;  %v2086_v56 = vor.u32 1.1754944e-38, %v2085_v44  ;;  %vm2084_vm15 = vcmp.eq.f32.partialorder %v2083_v27, 8.507059e+37 }
 0xbdb   : > { %v2117_v16 = vpop.trf.xlu1 }
 0xbdc   : > { %v2243_v50 = vrot.slane %v2242_v46, 1 }
 0xbde   : > { %v2905_v35 = vpop.eup %2904  ;;  %v2244_v53 = vadd.f32 %v2243_v50, %v2242_v46 }
 0xbdf   : > { %v2075_v13 = vmul.f32 %v2905_v35, %v2073_v25  ;;  %vm2080_vm4 = vweird.f32 %v2905_v35 }
 0xbe0   : > { %2906 = vrcp.f32 %v2244_v53  ;;  %vm2081_vm14 = vmor %vm2079_vm13, %vm2080_vm4  ;;  %v2256_v19 = vand.u32 2147483648, %v2244_v53  ;;  %v2254_v22 = vand.u32 2147483647, %v2244_v53  ;;  %vm2250_vm2 = vweird.f32 %v2244_v53 }
 0xbe1   : > { %v2076_v40 = vsub.f32 1.0, %v2075_v13  ;;  %2908 = vtanh.f32 %v2012_v57 }
 0xbe2   : > { %2910 = vtanh.f32 %v2183_v3  ;;  %v2257_v62 = vor.u32 1.1754944e-38, %v2256_v19  ;;  %vm2255_vm5 = vcmp.eq.f32.partialorder %v2254_v22, 8.507059e+37 }
 0xbe3   : > { %v2077_v63 = vmul.f32 %v2905_v35, %v2076_v40 }
 0xbe5   : > { %v2078_v29 = vadd.f32 %v2905_v35, %v2077_v63 }
 0xbe6   : > { %v2907_v48 = vpop.eup %2906 }
 0xbe7   : > { %v2082_v60 = vsel %vm2081_vm14, %v2905_v35, %v2078_v29  ;;  %v2246_v37 = vmul.f32 %v2907_v48, %v2244_v53  ;;  %v2909_v30 = vpop.eup %2908  ;;  %vm2251_vm1 = vweird.f32 %v2907_v48 }
 0xbe8   : > { %v2087_v7 = vsel %vm2084_vm15, %v2086_v56, %v2082_v60  ;;  %vm2252_vm3 = vmor %vm2250_vm2, %vm2251_vm1  ;;  %v2911_v45 = vpop.eup %2910 }
 0xbe9   : > { %v2088_v26 = vmul.f32 %v2901_v18, %v2087_v7  ;;  %v2247_v61 = vsub.f32 1.0, %v2246_v37 }
 0xbeb   : > { %v2089_v54 = vmul.f32 %v2909_v30, %v2088_v26  ;;  %v2248_v0 = vmul.f32 %v2907_v48, %v2247_v61 }
 0xbed   : > { %2151 = vmatpush.msrb.mxu2 %v2089_v54  ;;  %v2249_v24 = vadd.f32 %v2907_v48, %v2248_v0  ;;  %v2090_v58 = vrot.slane %v2089_v54, 4 }
 0xbee   : > { %2824 = vmatmul.msk.f32.vlgmr.msrb.gmra.mxu2 %vm308_vm0, %v2117_v16 }
 0xbef   : > { %v2253_v4 = vsel %vm2252_vm3, %v2907_v48, %v2249_v24  ;;  %v2091_v2 = vadd.f32 %v2090_v58, %v2089_v54 }
 0xbf0   : > { %v2258_v49 = vsel %vm2255_vm5, %v2257_v62, %v2253_v4 }
 0xbf1   : > { %v2259_v21 = vmul.f32 %v2903_v55, %v2258_v49  ;;  %v2092_v32 = vrot.slane %v2091_v2, 2 }
 0xbf3   : > { %v2260_v11 = vmul.f32 %v2911_v45, %v2259_v21  ;;  %v2093_v36 = vadd.f32 %v2092_v32, %v2091_v2 }
 0xbf5   : > { %2322 = vmatpush.msra.mxu2 %v2260_v11  ;;  %v2094_v10 = vrot.slane %v2093_v36, 1  ;;  %v2261_v17 = vrot.slane %v2260_v11, 4 }
 0xbf6   : > { %2826 = vmatmul.msk.f32.vlgmr.msra.gmra.mxu2 %vm308_vm0, %v2288_v6 }
 0xbf7   : > { %v2095_v34 = vadd.f32 %v2094_v10, %v2093_v36  ;;  %v2262_v5 = vadd.f32 %v2261_v17, %v2260_v11 }
 0xbf9   : > { %v2097_v15 = vmul.f32 %v2096_v9, %v2095_v34  ;;  %v2263_v28 = vrot.slane %v2262_v5, 2 }
 0xbfb   : > { %v2264_v23 = vadd.f32 %v2263_v28, %v2262_v5 }
 0xbfd   : > { %v2265_v31 = vrot.slane %v2264_v23, 1 }
 0xbff   : > { %v2266_v33 = vadd.f32 %v2265_v31, %v2264_v23 }
 0xc01   : > { %v2268_v18 = vmul.f32 %v2267_v20, %v2266_v33 }
 0xc71   : > { %v2153_v39 = vpop.f32.mrf.mxu2 }
 0xc72   : > { %v2156_v43 = vadd.f32 %v2153_v39, %v2097_v15 }
 0xc74   : > { %2157 = vst [vmem:[%s4155_s17 + $0x30] sm:$0xff] %v2156_v43 }
 0xc79   : > { %v2324_v14 = vpop.f32.mrf.mxu2 }
 0xc7a   : > { %v2327_v8 = vadd.f32 %v2324_v14, %v2268_v18 }
 0xc7c   : > { %2328 = vst [vmem:[%s4155_s17 + $0x38] sm:$0xff] %v2327_v8 }
 0xc7d   : > { %2940 = shalt.err (!%p2937_p3)
}
 0xc7e   : > { %s2983_s9 = smov 128   ;;  %s2984_s17 = smov 8  }
 0xc7f   : > { %2835 = dma.vmem_to_hbm [thread:$0]  (%p3058_p5), %s2343_s28, 1024, %s2345_s11, %s2330_s29, %s2983_s9, %s2983_s9, %s2984_s17  }
 0xc80 PF: > { %p2841_p4 = scmp.ge.s32.totalorder %s2975_s24, 2  ;;  %s2359_s18 = sand.u32 1, %s2963_s21  }
 0xc81   : > { %s2360_s19 = scalar_lea.sflag [#allocation3], %s2359_s18 }
 0xc82   : > { %p2838_p7 = pnand %p2841_p4, %p3062_p6 }
 0xc84   : > { %p2839_p8 = pneg %p2838_p7 }
 0xc86   : > { %2958 = dma.done.wait (%p2839_p8), %s2360_s19, 1024  }
 0xc87   : > { %2960 = vsyncadd (%p2839_p8), %s2360_s19, 4294966272  ;;  %p16_p9 = scmp.ge.s32.totalorder %s3045_s27, 4   ;;  %s4358_s21 = smov %s2967_s22 }
 0xc88   : > { %s4359_s22 = smov %s2971_s23  ;;  %s4360_s23 = smov %s3056_s30 }
 0xc89   : > { %s4361_s24 = smov %s3045_s27  ;;  %18 = sbr.rel (!%p16_p9) target bundleno = 3 (0x3), region = 85 }
 0xc8e   :  { %2366 = vsyncpa [#allocation3], 1 }
 0xc8f   :  { %2368 = vsyncpa [#allocation3 + $0x1], 1 }

</bundles_post_ra>
